<compile_context>
chip_gen: v6e
topology: v6e:2x2x1
jax: 0.10.0
libtpu: 0.0.40
codegen_flags: <defaults>
</compile_context>

<pallas_src>
import functools
import math

import jax
import jax.numpy as jnp
import numpy as np
from jax import lax
from jax.experimental import pallas as pl


# --------------------------------------------------------------------------
# In-kernel helpers (traced inside the Pallas kernel)
# --------------------------------------------------------------------------
def _layernorm(x, gamma, beta, eps=1e-5):
    mu = jnp.mean(x, axis=-1, keepdims=True)
    var = jnp.mean((x - mu) ** 2, axis=-1, keepdims=True)
    return (x - mu) * lax.rsqrt(var + eps) * gamma + beta


def _split_heads(x, batch, length, heads):
    """[batch*length, heads*dh] -> [batch*heads, length, dh] via static slices."""
    dh = x.shape[-1] // heads
    parts = []
    for b in range(batch):
        xb = x[b * length:(b + 1) * length, :]
        for h in range(heads):
            parts.append(xb[:, h * dh:(h + 1) * dh])
    return jnp.stack(parts, axis=0)


def _merge_heads(ctx, batch, heads):
    """[batch*heads, length, dh] -> [batch*length, heads*dh] (lane re-concat)."""
    rows = [jnp.concatenate([ctx[b * heads + h] for h in range(heads)], axis=-1)
            for b in range(batch)]
    return jnp.concatenate(rows, axis=0)


def _attend(q, k, v, batch, len_q, len_kv, heads):
    """Scaled-dot-product attention batched over (batch*heads).

    q: [batch*len_q, H*dh] f32, k/v: [batch*len_kv, H*dh] f32.
    Returns the head-concatenated context [batch*len_q, H*dh] (f32), ready for
    a single full-depth output projection with the original Wo.
    """
    bf16 = jnp.bfloat16
    dh = q.shape[-1] // heads
    scale = 1.0 / math.sqrt(dh)
    qh = _split_heads(q * scale, batch, len_q, heads).astype(bf16)    # [BH, Tq, dh]
    kh = _split_heads(k, batch, len_kv, heads).astype(bf16)           # [BH, Sk, dh]
    vh = _split_heads(v, batch, len_kv, heads).astype(bf16)           # [BH, Sk, dh]

    # scores: 'btd,bsd->bts'  (bf16 operands, f32 accumulation on the MXU)
    s = lax.dot_general(qh, kh, (((2,), (2,)), ((0,), (0,))),
                        preferred_element_type=jnp.float32)           # [BH, Tq, Sk]
    s = s - jnp.max(s, axis=-1, keepdims=True)
    p = jnp.exp(s)                                                    # f32 (EUP)
    p = p * pl.reciprocal(jnp.sum(p, axis=-1, keepdims=True), approx=True)

    # context: 'bts,bsd->btd'
    ctx = lax.dot_general(p.astype(bf16), vh, (((2,), (1,)), ((0,), (0,))),
                          preferred_element_type=jnp.float32)         # [BH, Tq, dh]
    return _merge_heads(ctx, batch, heads)                            # [B*Tq, H*dh]


# --------------------------------------------------------------------------
# Fused decoder-layer kernel (single invocation, no grid)
# --------------------------------------------------------------------------
def decoder_layer_kernel(tgt_ref, gmem_ref, smem_ref,
                         wqkv_ref, wo_sa_ref, wq_gs_ref,
                         wkv_g_ref, wo_g_ref, wkv_s_ref, wo_s_ref,
                         w1_ref, w2_ref,
                         vq_ref, vg_ref, vs_ref, b1_ref,
                         out_ref, *, batch, t_len, sg_len, ss_len, heads):
    f32, bf16 = jnp.float32, jnp.bfloat16
    x = tgt_ref[...]                      # [B*T, Dq]  residual stream (stays in VMEM)
    vq = vq_ref[...]                      # [16, Dq]   packed LN params / Dq-wide biases
    vg = vg_ref[...]                      # [3, Dg]    graph-attn q/k/v biases
    vs = vs_ref[...]                      # [3, Ds]    sent-attn  q/k/v biases
    dq = x.shape[-1]
    # vq rows: 0 g1 | 1 b1 | 2 g_g | 3 b_g | 4 g2 | 5 b2 | 6 g3 | 7 b3 |
    #          8 bo_self | 9 bo_graph | 10 bo_sent | 11 b2_ffn |
    #          12 bq_self | 13 bk_self | 14 bv_self | 15 pad

    def ln(y, row):
        return _layernorm(y, vq[row:row + 1, :], vq[row + 1:row + 2, :])

    # ---- 1) self-attention + LN1 (fused lane-dense QKV projection) ----------
    qkv = jnp.dot(x.astype(bf16), wqkv_ref[...],
                  preferred_element_type=f32)                          # [BT, 3*Dq]
    q = qkv[:, :dq] + vq[12:13, :]
    k = qkv[:, dq:2 * dq] + vq[13:14, :]
    v = qkv[:, 2 * dq:] + vq[14:15, :]
    ctx = _attend(q, k, v, batch, t_len, t_len, heads)
    attn = jnp.dot(ctx.astype(bf16), wo_sa_ref[...],
                   preferred_element_type=f32) + vq[8:9, :]
    x = ln(x + attn, 0)

    # ---- 2) graph cross-attention + LN_g (graph-first order) ----------------
    dg = wkv_g_ref.shape[0]
    wq_gs = wq_gs_ref[...]                                             # [Dq, Dg+Ds] bf16
    q_g = jnp.dot(x.astype(bf16), wq_gs[:, :dg],
                  preferred_element_type=f32) + vg[0:1, :]             # [BT, Dg]
    kv_g = jnp.dot(gmem_ref[...].astype(bf16), wkv_g_ref[...],
                   preferred_element_type=f32)                         # [BSg, 2*Dg]
    ctx = _attend(q_g, kv_g[:, :dg] + vg[1:2, :], kv_g[:, dg:] + vg[2:3, :],
                  batch, t_len, sg_len, heads)
    attn = jnp.dot(ctx.astype(bf16), wo_g_ref[...],
                   preferred_element_type=f32) + vq[9:10, :]
    x = ln(x + attn, 2)

    # ---- 3) sentence cross-attention + LN2 -----------------------------------
    ds = wkv_s_ref.shape[0]
    q_s = jnp.dot(x.astype(bf16), wq_gs[:, dg:],
                  preferred_element_type=f32) + vs[0:1, :]             # [BT, Ds]
    kv_s = jnp.dot(smem_ref[...].astype(bf16), wkv_s_ref[...],
                   preferred_element_type=f32)                         # [BSs, 2*Ds]
    ctx = _attend(q_s, kv_s[:, :ds] + vs[1:2, :], kv_s[:, ds:] + vs[2:3, :],
                  batch, t_len, ss_len, heads)
    attn = jnp.dot(ctx.astype(bf16), wo_s_ref[...],
                   preferred_element_type=f32) + vq[10:11, :]
    x = ln(x + attn, 4)

    # ---- 4) FFN + LN3 ---------------------------------------------------------
    h = jnp.dot(x.astype(bf16), w1_ref[...],
                preferred_element_type=f32) + b1_ref[...]
    h = jnp.maximum(h, 0.0)                                            # relu (f32, VPU)
    y = jnp.dot(h.astype(bf16), w2_ref[...],
                preferred_element_type=f32) + vq[11:12, :]
    x = ln(x + y, 6)

    out_ref[...] = x.astype(out_ref.dtype)


# --------------------------------------------------------------------------
# Wrapper: trace-time weight packing + single pallas_call (no grid)
# --------------------------------------------------------------------------
def pack_params(params):
    """Fuse QKV / KV weights, pack the two cross-attn query weights into one
    operand, pack LN params and d_model-wide biases into one lane-dense array,
    and cast matmul weights to bf16 (halves weight DMA traffic)."""
    bf16 = jnp.bfloat16
    sa, ga, se, ffn = (params["self_attn"], params["graph_attn"],
                       params["sent_attn"], params["ffn"])
    dq = params["norm1"]["gamma"].shape[-1]
    vecs_q = jnp.concatenate([
        params["norm1"]["gamma"], params["norm1"]["beta"],
        params["norm_g"]["gamma"], params["norm_g"]["beta"],
        params["norm2"]["gamma"], params["norm2"]["beta"],
        params["norm3"]["gamma"], params["norm3"]["beta"],
        sa["bo"], ga["bo"], se["bo"], ffn["b2"],
        sa["bq"], sa["bk"], sa["bv"],
        jnp.zeros((1, dq), jnp.float32),           # pad to 16 rows (sublane x8)
    ], axis=0)
    return dict(
        w_qkv_self=jnp.concatenate([sa["wq"], sa["wk"], sa["wv"]], axis=1).astype(bf16),
        wo_self=sa["wo"].astype(bf16),
        wq_gs=jnp.concatenate([ga["wq"], se["wq"]], axis=1).astype(bf16),
        wkv_g=jnp.concatenate([ga["wk"], ga["wv"]], axis=1).astype(bf16),
        wo_g=ga["wo"].astype(bf16),
        wkv_s=jnp.concatenate([se["wk"], se["wv"]], axis=1).astype(bf16),
        wo_s=se["wo"].astype(bf16),
        w1=ffn["w1"].astype(bf16),
        w2=ffn["w2"].astype(bf16),
        vecs_q=vecs_q,
        vecs_g=jnp.concatenate([ga["bq"], ga["bk"], ga["bv"]], axis=0),
        vecs_s=jnp.concatenate([se["bq"], se["bk"], se["bv"]], axis=0),
        b1=ffn["b1"],
    )


def decoder_layer_forward(tgt, sent_memory, graph_memory, params, heads,
                          *, interpret=False):
    packed = pack_params(params)
    B, T, Dq = tgt.shape
    Ss, Ds = sent_memory.shape[1], sent_memory.shape[2]
    Sg, Dg = graph_memory.shape[1], graph_memory.shape[2]

    kernel = functools.partial(decoder_layer_kernel, batch=B, t_len=T,
                               sg_len=Sg, ss_len=Ss, heads=heads)

    # No grid: batch folded into the row dimension; all operands live fully in
    # VMEM for the single invocation (nothing to pipeline / double-buffer).
    out2d = pl.pallas_call(
        kernel,
        out_shape=jax.ShapeDtypeStruct((B * T, Dq), tgt.dtype),
        interpret=interpret,
    )(tgt.reshape(B * T, Dq),
      graph_memory.reshape(B * Sg, Dg),
      sent_memory.reshape(B * Ss, Ds),
      packed["w_qkv_self"], packed["wo_self"], packed["wq_gs"],
      packed["wkv_g"], packed["wo_g"], packed["wkv_s"], packed["wo_s"],
      packed["w1"], packed["w2"],
      packed["vecs_q"], packed["vecs_g"], packed["vecs_s"], packed["b1"])
    return out2d.reshape(B, T, Dq)


# --------------------------------------------------------------------------
# Pure-JAX f32 reference (graph-first order) for correctness check
# --------------------------------------------------------------------------
def _ref_mha(q, kv, p, heads):
    Q = q @ p["wq"] + p["bq"][0]
    K = kv @ p["wk"] + p["bk"][0]
    V = kv @ p["wv"] + p["bv"][0]
    B, T, Dt = Q.shape
    S = K.shape[1]
    dh = Dt // heads
    Qh = Q.reshape(B, T, heads, dh).transpose(0, 2, 1, 3) / math.sqrt(dh)
    Kh = K.reshape(B, S, heads, dh).transpose(0, 2, 1, 3)
    Vh = V.reshape(B, S, heads, dh).transpose(0, 2, 1, 3)
    s = jnp.einsum("bhtd,bhsd->bhts", Qh, Kh)
    p_attn = jax.nn.softmax(s, axis=-1)
    ctx = jnp.einsum("bhts,bhsd->bhtd", p_attn, Vh).transpose(0, 2, 1, 3).reshape(B, T, Dt)
    return ctx @ p["wo"] + p["bo"][0]


def _ref_ln(x, n):
    mu = jnp.mean(x, -1, keepdims=True)
    var = jnp.mean((x - mu) ** 2, -1, keepdims=True)
    return (x - mu) / jnp.sqrt(var + 1e-5) * n["gamma"][0] + n["beta"][0]


def reference_forward(tgt, sent_memory, graph_memory, params, heads):
    x = _ref_ln(tgt + _ref_mha(tgt, tgt, params["self_attn"], heads), params["norm1"])
    x = _ref_ln(x + _ref_mha(x, graph_memory, params["graph_attn"], heads), params["norm_g"])
    x = _ref_ln(x + _ref_mha(x, sent_memory, params["sent_attn"], heads), params["norm2"])
    h = jnp.maximum(x @ params["ffn"]["w1"] + params["ffn"]["b1"][0], 0.0)
    y = h @ params["ffn"]["w2"] + params["ffn"]["b2"][0]
    return _ref_ln(x + y, params["norm3"])


# --------------------------------------------------------------------------
# Deterministic parameter construction
# --------------------------------------------------------------------------
def make_params(key, d_model, d_enc, heads, d_ff):
    d_graph = d_enc - d_model
    ks = iter(jax.random.split(key, 64))

    def lin(in_d, out_d):
        w = jax.random.normal(next(ks), (in_d, out_d), jnp.float32) * 0.05
        b = jax.random.normal(next(ks), (1, out_d), jnp.float32) * 0.01
        return w, b

    def attn(kv_dim, q_dim):
        wq, bq = lin(q_dim, kv_dim)
        wk, bk = lin(kv_dim, kv_dim)
        wv, bv = lin(kv_dim, kv_dim)
        wo, bo = lin(kv_dim, q_dim)
        return dict(wq=wq, bq=bq, wk=wk, bk=bk, wv=wv, bv=bv, wo=wo, bo=bo)

    def norm(d):
        return dict(gamma=jnp.ones((1, d), jnp.float32),
                    beta=jnp.zeros((1, d), jnp.float32))

    w1, b1 = lin(d_model, d_ff)
    w2, b2 = lin(d_ff, d_model)
    return dict(
        self_attn=attn(d_model, d_model),
        graph_attn=attn(d_graph, d_model),
        sent_attn=attn(d_model, d_model),
        ffn=dict(w1=w1, b1=b1, w2=w2, b2=b2),
        norm1=norm(d_model), norm_g=norm(d_model),
        norm2=norm(d_model), norm3=norm(d_model),
    )


# --------------------------------------------------------------------------
if __name__ == "__main__":
    # Small but lane-dense shapes: d_model and d_graph are multiples of 128 so
    # every matmul output / final store is lane-dense.
    B, T_TGT, T_SENT, T_GRAPH = 2, 8, 8, 8
    D_MODEL, D_ENC, HEADS, D_FF = 128, 256, 4, 256      # d_graph = D_ENC - D_MODEL = 128

    key = jax.random.PRNGKey(0)
    k_p, k_t, k_s, k_g = jax.random.split(key, 4)

    params = make_params(k_p, D_MODEL, D_ENC, HEADS, D_FF)
    tgt = jax.random.normal(k_t, (B, T_TGT, D_MODEL), jnp.float32)
    sent_memory = jax.random.normal(k_s, (B, T_SENT, D_MODEL), jnp.float32)
    graph_memory = jax.random.normal(k_g, (B, T_GRAPH, D_ENC - D_MODEL), jnp.float32)

    fwd = jax.jit(functools.partial(decoder_layer_forward, heads=HEADS))
    out = jax.block_until_ready(fwd(tgt, sent_memory, graph_memory, params))

    ref = jax.block_until_ready(
        reference_forward(tgt, sent_memory, graph_memory, params, HEADS))

    assert out.shape == (B, T_TGT, D_MODEL)
    # bf16 MXU operands + approx reciprocal vs. a pure-f32 reference -> relaxed tolerance.
    np.testing.assert_allclose(np.asarray(out, dtype=np.float32), np.asarray(ref),
                               atol=3e-2, rtol=3e-2)
    print("KERNEL_OK")
</pallas_src>

<mosaic_0001>
module attributes {stable_mosaic.version = 11 : i64} {
  func.func @decoder_layer_kernel(%arg0: memref<16x128xf32, #tpu.memory_space<vmem>>, %arg1: memref<16x128xf32, #tpu.memory_space<vmem>>, %arg2: memref<16x128xf32, #tpu.memory_space<vmem>>, %arg3: memref<128x384xbf16, #tpu.memory_space<vmem>>, %arg4: memref<128x128xbf16, #tpu.memory_space<vmem>>, %arg5: memref<128x256xbf16, #tpu.memory_space<vmem>>, %arg6: memref<128x256xbf16, #tpu.memory_space<vmem>>, %arg7: memref<128x128xbf16, #tpu.memory_space<vmem>>, %arg8: memref<128x256xbf16, #tpu.memory_space<vmem>>, %arg9: memref<128x128xbf16, #tpu.memory_space<vmem>>, %arg10: memref<128x256xbf16, #tpu.memory_space<vmem>>, %arg11: memref<256x128xbf16, #tpu.memory_space<vmem>>, %arg12: memref<16x128xf32, #tpu.memory_space<vmem>>, %arg13: memref<3x128xf32, #tpu.memory_space<vmem>>, %arg14: memref<3x128xf32, #tpu.memory_space<vmem>>, %arg15: memref<1x256xf32, #tpu.memory_space<vmem>>, %arg16: memref<16x128xf32, #tpu.memory_space<vmem>>) attributes {dimension_semantics = [], scalar_prefetch = 0 : i64, scratch_operands = 0 : i64, tpu.core_type = #tpu.core_type<tc>} {
    %c0 = arith.constant 0 : index
    %c0_0 = arith.constant 0 : index
    %0 = vector.load %arg0[%c0, %c0_0] : memref<16x128xf32, #tpu.memory_space<vmem>>, vector<16x128xf32>
    %c0_1 = arith.constant 0 : index
    %c0_2 = arith.constant 0 : index
    %1 = vector.load %arg12[%c0_1, %c0_2] : memref<16x128xf32, #tpu.memory_space<vmem>>, vector<16x128xf32>
    %c0_3 = arith.constant 0 : index
    %c0_4 = arith.constant 0 : index
    %2 = vector.load %arg13[%c0_3, %c0_4] : memref<3x128xf32, #tpu.memory_space<vmem>>, vector<3x128xf32>
    %c0_5 = arith.constant 0 : index
    %c0_6 = arith.constant 0 : index
    %3 = vector.load %arg14[%c0_5, %c0_6] : memref<3x128xf32, #tpu.memory_space<vmem>>, vector<3x128xf32>
    %4 = arith.truncf %0 : vector<16x128xf32> to vector<16x128xbf16>
    %c0_7 = arith.constant 0 : index
    %c0_8 = arith.constant 0 : index
    %5 = vector.load %arg3[%c0_7, %c0_8] : memref<128x384xbf16, #tpu.memory_space<vmem>>, vector<128x384xbf16>
    %cst = arith.constant dense<0.000000e+00> : vector<16x384xf32>
    %6 = tpu.matmul %4, %5, %cst {dimension_numbers = #tpu.dot_dimension_numbers<[1], [0], [0], [1], [0, 0, 1, 1], [], []>} : vector<16x128xbf16>, vector<128x384xbf16>, vector<16x384xf32> -> vector<16x384xf32>
    %7 = vector.extract_strided_slice %6 {offsets = [0, 0], sizes = [16, 128], strides = [1, 1]} : vector<16x384xf32> to vector<16x128xf32>
    %8 = vector.extract_strided_slice %1 {offsets = [12, 0], sizes = [1, 128], strides = [1, 1]} : vector<16x128xf32> to vector<1x128xf32>
    %9 = vector.broadcast %8 : vector<1x128xf32> to vector<16x128xf32>
    %10 = arith.addf %7, %9 : vector<16x128xf32>
    %11 = vector.extract_strided_slice %6 {offsets = [0, 128], sizes = [16, 128], strides = [1, 1]} : vector<16x384xf32> to vector<16x128xf32>
    %12 = vector.extract_strided_slice %1 {offsets = [13, 0], sizes = [1, 128], strides = [1, 1]} : vector<16x128xf32> to vector<1x128xf32>
    %13 = vector.broadcast %12 : vector<1x128xf32> to vector<16x128xf32>
    %14 = arith.addf %11, %13 : vector<16x128xf32>
    %15 = vector.extract_strided_slice %6 {offsets = [0, 256], sizes = [16, 128], strides = [1, 1]} : vector<16x384xf32> to vector<16x128xf32>
    %16 = vector.extract_strided_slice %1 {offsets = [14, 0], sizes = [1, 128], strides = [1, 1]} : vector<16x128xf32> to vector<1x128xf32>
    %17 = vector.broadcast %16 : vector<1x128xf32> to vector<16x128xf32>
    %18 = arith.addf %15, %17 : vector<16x128xf32>
    %cst_9 = arith.constant 0.176776692 : f32
    %19 = vector.broadcast %cst_9 : f32 to vector<16x128xf32>
    %20 = arith.mulf %10, %19 : vector<16x128xf32>
    %21 = vector.extract_strided_slice %20 {offsets = [0, 0], sizes = [8, 128], strides = [1, 1]} : vector<16x128xf32> to vector<8x128xf32>
    %22 = vector.extract_strided_slice %21 {offsets = [0, 0], sizes = [8, 32], strides = [1, 1]} : vector<8x128xf32> to vector<8x32xf32>
    %23 = vector.extract_strided_slice %21 {offsets = [0, 32], sizes = [8, 32], strides = [1, 1]} : vector<8x128xf32> to vector<8x32xf32>
    %24 = vector.extract_strided_slice %21 {offsets = [0, 64], sizes = [8, 32], strides = [1, 1]} : vector<8x128xf32> to vector<8x32xf32>
    %25 = vector.extract_strided_slice %21 {offsets = [0, 96], sizes = [8, 32], strides = [1, 1]} : vector<8x128xf32> to vector<8x32xf32>
    %26 = vector.extract_strided_slice %20 {offsets = [8, 0], sizes = [8, 128], strides = [1, 1]} : vector<16x128xf32> to vector<8x128xf32>
    %27 = vector.extract_strided_slice %26 {offsets = [0, 0], sizes = [8, 32], strides = [1, 1]} : vector<8x128xf32> to vector<8x32xf32>
    %28 = vector.extract_strided_slice %26 {offsets = [0, 32], sizes = [8, 32], strides = [1, 1]} : vector<8x128xf32> to vector<8x32xf32>
    %29 = vector.extract_strided_slice %26 {offsets = [0, 64], sizes = [8, 32], strides = [1, 1]} : vector<8x128xf32> to vector<8x32xf32>
    %30 = vector.extract_strided_slice %26 {offsets = [0, 96], sizes = [8, 32], strides = [1, 1]} : vector<8x128xf32> to vector<8x32xf32>
    %31 = vector.shape_cast %22 : vector<8x32xf32> to vector<1x8x32xf32>
    %32 = vector.shape_cast %23 : vector<8x32xf32> to vector<1x8x32xf32>
    %33 = vector.shape_cast %24 : vector<8x32xf32> to vector<1x8x32xf32>
    %34 = vector.shape_cast %25 : vector<8x32xf32> to vector<1x8x32xf32>
    %35 = vector.shape_cast %27 : vector<8x32xf32> to vector<1x8x32xf32>
    %36 = vector.shape_cast %28 : vector<8x32xf32> to vector<1x8x32xf32>
    %37 = vector.shape_cast %29 : vector<8x32xf32> to vector<1x8x32xf32>
    %38 = vector.shape_cast %30 : vector<8x32xf32> to vector<1x8x32xf32>
    %39 = tpu.concatenate %31, %32, %33, %34, %35, %36, %37, %38 in 0 : vector<1x8x32xf32>, vector<1x8x32xf32>, vector<1x8x32xf32>, vector<1x8x32xf32>, vector<1x8x32xf32>, vector<1x8x32xf32>, vector<1x8x32xf32>, vector<1x8x32xf32> -> vector<8x8x32xf32>
    %40 = arith.truncf %39 : vector<8x8x32xf32> to vector<8x8x32xbf16>
    %41 = vector.extract_strided_slice %14 {offsets = [0, 0], sizes = [8, 128], strides = [1, 1]} : vector<16x128xf32> to vector<8x128xf32>
    %42 = vector.extract_strided_slice %41 {offsets = [0, 0], sizes = [8, 32], strides = [1, 1]} : vector<8x128xf32> to vector<8x32xf32>
    %43 = vector.extract_strided_slice %41 {offsets = [0, 32], sizes = [8, 32], strides = [1, 1]} : vector<8x128xf32> to vector<8x32xf32>
    %44 = vector.extract_strided_slice %41 {offsets = [0, 64], sizes = [8, 32], strides = [1, 1]} : vector<8x128xf32> to vector<8x32xf32>
    %45 = vector.extract_strided_slice %41 {offsets = [0, 96], sizes = [8, 32], strides = [1, 1]} : vector<8x128xf32> to vector<8x32xf32>
    %46 = vector.extract_strided_slice %14 {offsets = [8, 0], sizes = [8, 128], strides = [1, 1]} : vector<16x128xf32> to vector<8x128xf32>
    %47 = vector.extract_strided_slice %46 {offsets = [0, 0], sizes = [8, 32], strides = [1, 1]} : vector<8x128xf32> to vector<8x32xf32>
    %48 = vector.extract_strided_slice %46 {offsets = [0, 32], sizes = [8, 32], strides = [1, 1]} : vector<8x128xf32> to vector<8x32xf32>
    %49 = vector.extract_strided_slice %46 {offsets = [0, 64], sizes = [8, 32], strides = [1, 1]} : vector<8x128xf32> to vector<8x32xf32>
    %50 = vector.extract_strided_slice %46 {offsets = [0, 96], sizes = [8, 32], strides = [1, 1]} : vector<8x128xf32> to vector<8x32xf32>
    %51 = vector.shape_cast %42 : vector<8x32xf32> to vector<1x8x32xf32>
    %52 = vector.shape_cast %43 : vector<8x32xf32> to vector<1x8x32xf32>
    %53 = vector.shape_cast %44 : vector<8x32xf32> to vector<1x8x32xf32>
    %54 = vector.shape_cast %45 : vector<8x32xf32> to vector<1x8x32xf32>
    %55 = vector.shape_cast %47 : vector<8x32xf32> to vector<1x8x32xf32>
    %56 = vector.shape_cast %48 : vector<8x32xf32> to vector<1x8x32xf32>
    %57 = vector.shape_cast %49 : vector<8x32xf32> to vector<1x8x32xf32>
    %58 = vector.shape_cast %50 : vector<8x32xf32> to vector<1x8x32xf32>
    %59 = tpu.concatenate %51, %52, %53, %54, %55, %56, %57, %58 in 0 : vector<1x8x32xf32>, vector<1x8x32xf32>, vector<1x8x32xf32>, vector<1x8x32xf32>, vector<1x8x32xf32>, vector<1x8x32xf32>, vector<1x8x32xf32>, vector<1x8x32xf32> -> vector<8x8x32xf32>
    %60 = arith.truncf %59 : vector<8x8x32xf32> to vector<8x8x32xbf16>
    %61 = vector.extract_strided_slice %18 {offsets = [0, 0], sizes = [8, 128], strides = [1, 1]} : vector<16x128xf32> to vector<8x128xf32>
    %62 = vector.extract_strided_slice %61 {offsets = [0, 0], sizes = [8, 32], strides = [1, 1]} : vector<8x128xf32> to vector<8x32xf32>
    %63 = vector.extract_strided_slice %61 {offsets = [0, 32], sizes = [8, 32], strides = [1, 1]} : vector<8x128xf32> to vector<8x32xf32>
    %64 = vector.extract_strided_slice %61 {offsets = [0, 64], sizes = [8, 32], strides = [1, 1]} : vector<8x128xf32> to vector<8x32xf32>
    %65 = vector.extract_strided_slice %61 {offsets = [0, 96], sizes = [8, 32], strides = [1, 1]} : vector<8x128xf32> to vector<8x32xf32>
    %66 = vector.extract_strided_slice %18 {offsets = [8, 0], sizes = [8, 128], strides = [1, 1]} : vector<16x128xf32> to vector<8x128xf32>
    %67 = vector.extract_strided_slice %66 {offsets = [0, 0], sizes = [8, 32], strides = [1, 1]} : vector<8x128xf32> to vector<8x32xf32>
    %68 = vector.extract_strided_slice %66 {offsets = [0, 32], sizes = [8, 32], strides = [1, 1]} : vector<8x128xf32> to vector<8x32xf32>
    %69 = vector.extract_strided_slice %66 {offsets = [0, 64], sizes = [8, 32], strides = [1, 1]} : vector<8x128xf32> to vector<8x32xf32>
    %70 = vector.extract_strided_slice %66 {offsets = [0, 96], sizes = [8, 32], strides = [1, 1]} : vector<8x128xf32> to vector<8x32xf32>
    %71 = vector.shape_cast %62 : vector<8x32xf32> to vector<1x8x32xf32>
    %72 = vector.shape_cast %63 : vector<8x32xf32> to vector<1x8x32xf32>
    %73 = vector.shape_cast %64 : vector<8x32xf32> to vector<1x8x32xf32>
    %74 = vector.shape_cast %65 : vector<8x32xf32> to vector<1x8x32xf32>
    %75 = vector.shape_cast %67 : vector<8x32xf32> to vector<1x8x32xf32>
    %76 = vector.shape_cast %68 : vector<8x32xf32> to vector<1x8x32xf32>
    %77 = vector.shape_cast %69 : vector<8x32xf32> to vector<1x8x32xf32>
    %78 = vector.shape_cast %70 : vector<8x32xf32> to vector<1x8x32xf32>
    %79 = tpu.concatenate %71, %72, %73, %74, %75, %76, %77, %78 in 0 : vector<1x8x32xf32>, vector<1x8x32xf32>, vector<1x8x32xf32>, vector<1x8x32xf32>, vector<1x8x32xf32>, vector<1x8x32xf32>, vector<1x8x32xf32>, vector<1x8x32xf32> -> vector<8x8x32xf32>
    %80 = arith.truncf %79 : vector<8x8x32xf32> to vector<8x8x32xbf16>
    %cst_10 = arith.constant dense<0.000000e+00> : vector<8x8x8xf32>
    %81 = tpu.matmul %40, %60, %cst_10 {dimension_numbers = #tpu.dot_dimension_numbers<[2], [2], [1], [1], [0, 0, 0, 1, 1, 1], [0], [0]>} : vector<8x8x32xbf16>, vector<8x8x32xbf16>, vector<8x8x8xf32> -> vector<8x8x8xf32>
    %cst_11 = arith.constant dense<0xFF800000> : vector<8x8xf32>
    %82 = vector.multi_reduction <maximumf>, %81, %cst_11 [2] : vector<8x8x8xf32> to vector<8x8xf32>
    %83 = vector.shape_cast %82 : vector<8x8xf32> to vector<8x8x1xf32>
    %84 = vector.broadcast %83 : vector<8x8x1xf32> to vector<8x8x8xf32>
    %85 = arith.subf %81, %84 : vector<8x8x8xf32>
    %86 = math.exp %85 : vector<8x8x8xf32>
    %cst_12 = arith.constant dense<0.000000e+00> : vector<8x8xf32>
    %87 = vector.multi_reduction <add>, %86, %cst_12 [2] : vector<8x8x8xf32> to vector<8x8xf32>
    %88 = vector.shape_cast %87 : vector<8x8xf32> to vector<8x8x1xf32>
    %89 = tpu.reciprocal %88 {approx = true} : vector<8x8x1xf32> -> vector<8x8x1xf32>
    %90 = vector.broadcast %89 : vector<8x8x1xf32> to vector<8x8x8xf32>
    %91 = arith.mulf %86, %90 : vector<8x8x8xf32>
    %92 = arith.truncf %91 : vector<8x8x8xf32> to vector<8x8x8xbf16>
    %cst_13 = arith.constant dense<0.000000e+00> : vector<8x8x32xf32>
    %93 = tpu.matmul %92, %80, %cst_13 {dimension_numbers = #tpu.dot_dimension_numbers<[2], [1], [1], [2], [0, 0, 0, 1, 1, 2], [0], [0]>} : vector<8x8x8xbf16>, vector<8x8x32xbf16>, vector<8x8x32xf32> -> vector<8x8x32xf32>
    %94 = vector.extract_strided_slice %93 {offsets = [0, 0, 0], sizes = [1, 8, 32], strides = [1, 1, 1]} : vector<8x8x32xf32> to vector<1x8x32xf32>
    %95 = vector.shape_cast %94 : vector<1x8x32xf32> to vector<8x32xf32>
    %96 = vector.extract_strided_slice %93 {offsets = [1, 0, 0], sizes = [1, 8, 32], strides = [1, 1, 1]} : vector<8x8x32xf32> to vector<1x8x32xf32>
    %97 = vector.shape_cast %96 : vector<1x8x32xf32> to vector<8x32xf32>
    %98 = vector.extract_strided_slice %93 {offsets = [2, 0, 0], sizes = [1, 8, 32], strides = [1, 1, 1]} : vector<8x8x32xf32> to vector<1x8x32xf32>
    %99 = vector.shape_cast %98 : vector<1x8x32xf32> to vector<8x32xf32>
    %100 = vector.extract_strided_slice %93 {offsets = [3, 0, 0], sizes = [1, 8, 32], strides = [1, 1, 1]} : vector<8x8x32xf32> to vector<1x8x32xf32>
    %101 = vector.shape_cast %100 : vector<1x8x32xf32> to vector<8x32xf32>
    %102 = tpu.concatenate %95, %97, %99, %101 in 1 : vector<8x32xf32>, vector<8x32xf32>, vector<8x32xf32>, vector<8x32xf32> -> vector<8x128xf32>
    %103 = vector.extract_strided_slice %93 {offsets = [4, 0, 0], sizes = [1, 8, 32], strides = [1, 1, 1]} : vector<8x8x32xf32> to vector<1x8x32xf32>
    %104 = vector.shape_cast %103 : vector<1x8x32xf32> to vector<8x32xf32>
    %105 = vector.extract_strided_slice %93 {offsets = [5, 0, 0], sizes = [1, 8, 32], strides = [1, 1, 1]} : vector<8x8x32xf32> to vector<1x8x32xf32>
    %106 = vector.shape_cast %105 : vector<1x8x32xf32> to vector<8x32xf32>
    %107 = vector.extract_strided_slice %93 {offsets = [6, 0, 0], sizes = [1, 8, 32], strides = [1, 1, 1]} : vector<8x8x32xf32> to vector<1x8x32xf32>
    %108 = vector.shape_cast %107 : vector<1x8x32xf32> to vector<8x32xf32>
    %109 = vector.extract_strided_slice %93 {offsets = [7, 0, 0], sizes = [1, 8, 32], strides = [1, 1, 1]} : vector<8x8x32xf32> to vector<1x8x32xf32>
    %110 = vector.shape_cast %109 : vector<1x8x32xf32> to vector<8x32xf32>
    %111 = tpu.concatenate %104, %106, %108, %110 in 1 : vector<8x32xf32>, vector<8x32xf32>, vector<8x32xf32>, vector<8x32xf32> -> vector<8x128xf32>
    %112 = tpu.concatenate %102, %111 in 0 : vector<8x128xf32>, vector<8x128xf32> -> vector<16x128xf32>
    %113 = arith.truncf %112 : vector<16x128xf32> to vector<16x128xbf16>
    %c0_14 = arith.constant 0 : index
    %c0_15 = arith.constant 0 : index
    %114 = vector.load %arg4[%c0_14, %c0_15] : memref<128x128xbf16, #tpu.memory_space<vmem>>, vector<128x128xbf16>
    %cst_16 = arith.constant dense<0.000000e+00> : vector<16x128xf32>
    %115 = tpu.matmul %113, %114, %cst_16 {dimension_numbers = #tpu.dot_dimension_numbers<[1], [0], [0], [1], [0, 0, 1, 1], [], []>} : vector<16x128xbf16>, vector<128x128xbf16>, vector<16x128xf32> -> vector<16x128xf32>
    %116 = vector.extract_strided_slice %1 {offsets = [8, 0], sizes = [1, 128], strides = [1, 1]} : vector<16x128xf32> to vector<1x128xf32>
    %117 = vector.broadcast %116 : vector<1x128xf32> to vector<16x128xf32>
    %118 = arith.addf %115, %117 : vector<16x128xf32>
    %119 = arith.addf %0, %118 : vector<16x128xf32>
    %120 = vector.extract_strided_slice %1 {offsets = [0, 0], sizes = [1, 128], strides = [1, 1]} : vector<16x128xf32> to vector<1x128xf32>
    %121 = vector.extract_strided_slice %1 {offsets = [1, 0], sizes = [1, 128], strides = [1, 1]} : vector<16x128xf32> to vector<1x128xf32>
    %cst_17 = arith.constant dense<0.000000e+00> : vector<16xf32>
    %122 = vector.multi_reduction <add>, %119, %cst_17 [1] : vector<16x128xf32> to vector<16xf32>
    %123 = vector.shape_cast %122 : vector<16xf32> to vector<16x1xf32>
    %cst_18 = arith.constant 1.280000e+02 : f32
    %124 = vector.broadcast %cst_18 : f32 to vector<16x1xf32>
    %125 = arith.divf %123, %124 : vector<16x1xf32>
    %126 = vector.broadcast %125 : vector<16x1xf32> to vector<16x128xf32>
    %127 = arith.subf %119, %126 : vector<16x128xf32>
    %128 = arith.mulf %127, %127 : vector<16x128xf32>
    %cst_19 = arith.constant dense<0.000000e+00> : vector<16xf32>
    %129 = vector.multi_reduction <add>, %128, %cst_19 [1] : vector<16x128xf32> to vector<16xf32>
    %130 = vector.shape_cast %129 : vector<16xf32> to vector<16x1xf32>
    %cst_20 = arith.constant 1.280000e+02 : f32
    %131 = vector.broadcast %cst_20 : f32 to vector<16x1xf32>
    %132 = arith.divf %130, %131 : vector<16x1xf32>
    %133 = vector.broadcast %125 : vector<16x1xf32> to vector<16x128xf32>
    %134 = arith.subf %119, %133 : vector<16x128xf32>
    %cst_21 = arith.constant 9.99999974E-6 : f32
    %135 = vector.broadcast %cst_21 : f32 to vector<16x1xf32>
    %136 = arith.addf %132, %135 : vector<16x1xf32>
    %137 = math.rsqrt %136 : vector<16x1xf32>
    %138 = vector.broadcast %137 : vector<16x1xf32> to vector<16x128xf32>
    %139 = arith.mulf %134, %138 : vector<16x128xf32>
    %140 = vector.broadcast %120 : vector<1x128xf32> to vector<16x128xf32>
    %141 = arith.mulf %139, %140 : vector<16x128xf32>
    %142 = vector.broadcast %121 : vector<1x128xf32> to vector<16x128xf32>
    %143 = arith.addf %141, %142 : vector<16x128xf32>
    %c0_22 = arith.constant 0 : index
    %c0_23 = arith.constant 0 : index
    %144 = vector.load %arg5[%c0_22, %c0_23] : memref<128x256xbf16, #tpu.memory_space<vmem>>, vector<128x256xbf16>
    %145 = arith.truncf %143 : vector<16x128xf32> to vector<16x128xbf16>
    %146 = vector.extract_strided_slice %144 {offsets = [0, 0], sizes = [128, 128], strides = [1, 1]} : vector<128x256xbf16> to vector<128x128xbf16>
    %cst_24 = arith.constant dense<0.000000e+00> : vector<16x128xf32>
    %147 = tpu.matmul %145, %146, %cst_24 {dimension_numbers = #tpu.dot_dimension_numbers<[1], [0], [0], [1], [0, 0, 1, 1], [], []>} : vector<16x128xbf16>, vector<128x128xbf16>, vector<16x128xf32> -> vector<16x128xf32>
    %148 = vector.extract_strided_slice %2 {offsets = [0, 0], sizes = [1, 128], strides = [1, 1]} : vector<3x128xf32> to vector<1x128xf32>
    %149 = vector.broadcast %148 : vector<1x128xf32> to vector<16x128xf32>
    %150 = arith.addf %147, %149 : vector<16x128xf32>
    %c0_25 = arith.constant 0 : index
    %c0_26 = arith.constant 0 : index
    %151 = vector.load %arg1[%c0_25, %c0_26] : memref<16x128xf32, #tpu.memory_space<vmem>>, vector<16x128xf32>
    %152 = arith.truncf %151 : vector<16x128xf32> to vector<16x128xbf16>
    %c0_27 = arith.constant 0 : index
    %c0_28 = arith.constant 0 : index
    %153 = vector.load %arg6[%c0_27, %c0_28] : memref<128x256xbf16, #tpu.memory_space<vmem>>, vector<128x256xbf16>
    %cst_29 = arith.constant dense<0.000000e+00> : vector<16x256xf32>
    %154 = tpu.matmul %152, %153, %cst_29 {dimension_numbers = #tpu.dot_dimension_numbers<[1], [0], [0], [1], [0, 0, 1, 1], [], []>} : vector<16x128xbf16>, vector<128x256xbf16>, vector<16x256xf32> -> vector<16x256xf32>
    %155 = vector.extract_strided_slice %154 {offsets = [0, 0], sizes = [16, 128], strides = [1, 1]} : vector<16x256xf32> to vector<16x128xf32>
    %156 = vector.extract_strided_slice %2 {offsets = [1, 0], sizes = [1, 128], strides = [1, 1]} : vector<3x128xf32> to vector<1x128xf32>
    %157 = vector.broadcast %156 : vector<1x128xf32> to vector<16x128xf32>
    %158 = arith.addf %155, %157 : vector<16x128xf32>
    %159 = vector.extract_strided_slice %154 {offsets = [0, 128], sizes = [16, 128], strides = [1, 1]} : vector<16x256xf32> to vector<16x128xf32>
    %160 = vector.extract_strided_slice %2 {offsets = [2, 0], sizes = [1, 128], strides = [1, 1]} : vector<3x128xf32> to vector<1x128xf32>
    %161 = vector.broadcast %160 : vector<1x128xf32> to vector<16x128xf32>
    %162 = arith.addf %159, %161 : vector<16x128xf32>
    %cst_30 = arith.constant 0.176776692 : f32
    %163 = vector.broadcast %cst_30 : f32 to vector<16x128xf32>
    %164 = arith.mulf %150, %163 : vector<16x128xf32>
    %165 = vector.extract_strided_slice %164 {offsets = [0, 0], sizes = [8, 128], strides = [1, 1]} : vector<16x128xf32> to vector<8x128xf32>
    %166 = vector.extract_strided_slice %165 {offsets = [0, 0], sizes = [8, 32], strides = [1, 1]} : vector<8x128xf32> to vector<8x32xf32>
    %167 = vector.extract_strided_slice %165 {offsets = [0, 32], sizes = [8, 32], strides = [1, 1]} : vector<8x128xf32> to vector<8x32xf32>
    %168 = vector.extract_strided_slice %165 {offsets = [0, 64], sizes = [8, 32], strides = [1, 1]} : vector<8x128xf32> to vector<8x32xf32>
    %169 = vector.extract_strided_slice %165 {offsets = [0, 96], sizes = [8, 32], strides = [1, 1]} : vector<8x128xf32> to vector<8x32xf32>
    %170 = vector.extract_strided_slice %164 {offsets = [8, 0], sizes = [8, 128], strides = [1, 1]} : vector<16x128xf32> to vector<8x128xf32>
    %171 = vector.extract_strided_slice %170 {offsets = [0, 0], sizes = [8, 32], strides = [1, 1]} : vector<8x128xf32> to vector<8x32xf32>
    %172 = vector.extract_strided_slice %170 {offsets = [0, 32], sizes = [8, 32], strides = [1, 1]} : vector<8x128xf32> to vector<8x32xf32>
    %173 = vector.extract_strided_slice %170 {offsets = [0, 64], sizes = [8, 32], strides = [1, 1]} : vector<8x128xf32> to vector<8x32xf32>
    %174 = vector.extract_strided_slice %170 {offsets = [0, 96], sizes = [8, 32], strides = [1, 1]} : vector<8x128xf32> to vector<8x32xf32>
    %175 = vector.shape_cast %166 : vector<8x32xf32> to vector<1x8x32xf32>
    %176 = vector.shape_cast %167 : vector<8x32xf32> to vector<1x8x32xf32>
    %177 = vector.shape_cast %168 : vector<8x32xf32> to vector<1x8x32xf32>
    %178 = vector.shape_cast %169 : vector<8x32xf32> to vector<1x8x32xf32>
    %179 = vector.shape_cast %171 : vector<8x32xf32> to vector<1x8x32xf32>
    %180 = vector.shape_cast %172 : vector<8x32xf32> to vector<1x8x32xf32>
    %181 = vector.shape_cast %173 : vector<8x32xf32> to vector<1x8x32xf32>
    %182 = vector.shape_cast %174 : vector<8x32xf32> to vector<1x8x32xf32>
    %183 = tpu.concatenate %175, %176, %177, %178, %179, %180, %181, %182 in 0 : vector<1x8x32xf32>, vector<1x8x32xf32>, vector<1x8x32xf32>, vector<1x8x32xf32>, vector<1x8x32xf32>, vector<1x8x32xf32>, vector<1x8x32xf32>, vector<1x8x32xf32> -> vector<8x8x32xf32>
    %184 = arith.truncf %183 : vector<8x8x32xf32> to vector<8x8x32xbf16>
    %185 = vector.extract_strided_slice %158 {offsets = [0, 0], sizes = [8, 128], strides = [1, 1]} : vector<16x128xf32> to vector<8x128xf32>
    %186 = vector.extract_strided_slice %185 {offsets = [0, 0], sizes = [8, 32], strides = [1, 1]} : vector<8x128xf32> to vector<8x32xf32>
    %187 = vector.extract_strided_slice %185 {offsets = [0, 32], sizes = [8, 32], strides = [1, 1]} : vector<8x128xf32> to vector<8x32xf32>
    %188 = vector.extract_strided_slice %185 {offsets = [0, 64], sizes = [8, 32], strides = [1, 1]} : vector<8x128xf32> to vector<8x32xf32>
    %189 = vector.extract_strided_slice %185 {offsets = [0, 96], sizes = [8, 32], strides = [1, 1]} : vector<8x128xf32> to vector<8x32xf32>
    %190 = vector.extract_strided_slice %158 {offsets = [8, 0], sizes = [8, 128], strides = [1, 1]} : vector<16x128xf32> to vector<8x128xf32>
    %191 = vector.extract_strided_slice %190 {offsets = [0, 0], sizes = [8, 32], strides = [1, 1]} : vector<8x128xf32> to vector<8x32xf32>
    %192 = vector.extract_strided_slice %190 {offsets = [0, 32], sizes = [8, 32], strides = [1, 1]} : vector<8x128xf32> to vector<8x32xf32>
    %193 = vector.extract_strided_slice %190 {offsets = [0, 64], sizes = [8, 32], strides = [1, 1]} : vector<8x128xf32> to vector<8x32xf32>
    %194 = vector.extract_strided_slice %190 {offsets = [0, 96], sizes = [8, 32], strides = [1, 1]} : vector<8x128xf32> to vector<8x32xf32>
    %195 = vector.shape_cast %186 : vector<8x32xf32> to vector<1x8x32xf32>
    %196 = vector.shape_cast %187 : vector<8x32xf32> to vector<1x8x32xf32>
    %197 = vector.shape_cast %188 : vector<8x32xf32> to vector<1x8x32xf32>
    %198 = vector.shape_cast %189 : vector<8x32xf32> to vector<1x8x32xf32>
    %199 = vector.shape_cast %191 : vector<8x32xf32> to vector<1x8x32xf32>
    %200 = vector.shape_cast %192 : vector<8x32xf32> to vector<1x8x32xf32>
    %201 = vector.shape_cast %193 : vector<8x32xf32> to vector<1x8x32xf32>
    %202 = vector.shape_cast %194 : vector<8x32xf32> to vector<1x8x32xf32>
    %203 = tpu.concatenate %195, %196, %197, %198, %199, %200, %201, %202 in 0 : vector<1x8x32xf32>, vector<1x8x32xf32>, vector<1x8x32xf32>, vector<1x8x32xf32>, vector<1x8x32xf32>, vector<1x8x32xf32>, vector<1x8x32xf32>, vector<1x8x32xf32> -> vector<8x8x32xf32>
    %204 = arith.truncf %203 : vector<8x8x32xf32> to vector<8x8x32xbf16>
    %205 = vector.extract_strided_slice %162 {offsets = [0, 0], sizes = [8, 128], strides = [1, 1]} : vector<16x128xf32> to vector<8x128xf32>
    %206 = vector.extract_strided_slice %205 {offsets = [0, 0], sizes = [8, 32], strides = [1, 1]} : vector<8x128xf32> to vector<8x32xf32>
    %207 = vector.extract_strided_slice %205 {offsets = [0, 32], sizes = [8, 32], strides = [1, 1]} : vector<8x128xf32> to vector<8x32xf32>
    %208 = vector.extract_strided_slice %205 {offsets = [0, 64], sizes = [8, 32], strides = [1, 1]} : vector<8x128xf32> to vector<8x32xf32>
    %209 = vector.extract_strided_slice %205 {offsets = [0, 96], sizes = [8, 32], strides = [1, 1]} : vector<8x128xf32> to vector<8x32xf32>
    %210 = vector.extract_strided_slice %162 {offsets = [8, 0], sizes = [8, 128], strides = [1, 1]} : vector<16x128xf32> to vector<8x128xf32>
    %211 = vector.extract_strided_slice %210 {offsets = [0, 0], sizes = [8, 32], strides = [1, 1]} : vector<8x128xf32> to vector<8x32xf32>
    %212 = vector.extract_strided_slice %210 {offsets = [0, 32], sizes = [8, 32], strides = [1, 1]} : vector<8x128xf32> to vector<8x32xf32>
    %213 = vector.extract_strided_slice %210 {offsets = [0, 64], sizes = [8, 32], strides = [1, 1]} : vector<8x128xf32> to vector<8x32xf32>
    %214 = vector.extract_strided_slice %210 {offsets = [0, 96], sizes = [8, 32], strides = [1, 1]} : vector<8x128xf32> to vector<8x32xf32>
    %215 = vector.shape_cast %206 : vector<8x32xf32> to vector<1x8x32xf32>
    %216 = vector.shape_cast %207 : vector<8x32xf32> to vector<1x8x32xf32>
    %217 = vector.shape_cast %208 : vector<8x32xf32> to vector<1x8x32xf32>
    %218 = vector.shape_cast %209 : vector<8x32xf32> to vector<1x8x32xf32>
    %219 = vector.shape_cast %211 : vector<8x32xf32> to vector<1x8x32xf32>
    %220 = vector.shape_cast %212 : vector<8x32xf32> to vector<1x8x32xf32>
    %221 = vector.shape_cast %213 : vector<8x32xf32> to vector<1x8x32xf32>
    %222 = vector.shape_cast %214 : vector<8x32xf32> to vector<1x8x32xf32>
    %223 = tpu.concatenate %215, %216, %217, %218, %219, %220, %221, %222 in 0 : vector<1x8x32xf32>, vector<1x8x32xf32>, vector<1x8x32xf32>, vector<1x8x32xf32>, vector<1x8x32xf32>, vector<1x8x32xf32>, vector<1x8x32xf32>, vector<1x8x32xf32> -> vector<8x8x32xf32>
    %224 = arith.truncf %223 : vector<8x8x32xf32> to vector<8x8x32xbf16>
    %cst_31 = arith.constant dense<0.000000e+00> : vector<8x8x8xf32>
    %225 = tpu.matmul %184, %204, %cst_31 {dimension_numbers = #tpu.dot_dimension_numbers<[2], [2], [1], [1], [0, 0, 0, 1, 1, 1], [0], [0]>} : vector<8x8x32xbf16>, vector<8x8x32xbf16>, vector<8x8x8xf32> -> vector<8x8x8xf32>
    %cst_32 = arith.constant dense<0xFF800000> : vector<8x8xf32>
    %226 = vector.multi_reduction <maximumf>, %225, %cst_32 [2] : vector<8x8x8xf32> to vector<8x8xf32>
    %227 = vector.shape_cast %226 : vector<8x8xf32> to vector<8x8x1xf32>
    %228 = vector.broadcast %227 : vector<8x8x1xf32> to vector<8x8x8xf32>
    %229 = arith.subf %225, %228 : vector<8x8x8xf32>
    %230 = math.exp %229 : vector<8x8x8xf32>
    %cst_33 = arith.constant dense<0.000000e+00> : vector<8x8xf32>
    %231 = vector.multi_reduction <add>, %230, %cst_33 [2] : vector<8x8x8xf32> to vector<8x8xf32>
    %232 = vector.shape_cast %231 : vector<8x8xf32> to vector<8x8x1xf32>
    %233 = tpu.reciprocal %232 {approx = true} : vector<8x8x1xf32> -> vector<8x8x1xf32>
    %234 = vector.broadcast %233 : vector<8x8x1xf32> to vector<8x8x8xf32>
    %235 = arith.mulf %230, %234 : vector<8x8x8xf32>
    %236 = arith.truncf %235 : vector<8x8x8xf32> to vector<8x8x8xbf16>
    %cst_34 = arith.constant dense<0.000000e+00> : vector<8x8x32xf32>
    %237 = tpu.matmul %236, %224, %cst_34 {dimension_numbers = #tpu.dot_dimension_numbers<[2], [1], [1], [2], [0, 0, 0, 1, 1, 2], [0], [0]>} : vector<8x8x8xbf16>, vector<8x8x32xbf16>, vector<8x8x32xf32> -> vector<8x8x32xf32>
    %238 = vector.extract_strided_slice %237 {offsets = [0, 0, 0], sizes = [1, 8, 32], strides = [1, 1, 1]} : vector<8x8x32xf32> to vector<1x8x32xf32>
    %239 = vector.shape_cast %238 : vector<1x8x32xf32> to vector<8x32xf32>
    %240 = vector.extract_strided_slice %237 {offsets = [1, 0, 0], sizes = [1, 8, 32], strides = [1, 1, 1]} : vector<8x8x32xf32> to vector<1x8x32xf32>
    %241 = vector.shape_cast %240 : vector<1x8x32xf32> to vector<8x32xf32>
    %242 = vector.extract_strided_slice %237 {offsets = [2, 0, 0], sizes = [1, 8, 32], strides = [1, 1, 1]} : vector<8x8x32xf32> to vector<1x8x32xf32>
    %243 = vector.shape_cast %242 : vector<1x8x32xf32> to vector<8x32xf32>
    %244 = vector.extract_strided_slice %237 {offsets = [3, 0, 0], sizes = [1, 8, 32], strides = [1, 1, 1]} : vector<8x8x32xf32> to vector<1x8x32xf32>
    %245 = vector.shape_cast %244 : vector<1x8x32xf32> to vector<8x32xf32>
    %246 = tpu.concatenate %239, %241, %243, %245 in 1 : vector<8x32xf32>, vector<8x32xf32>, vector<8x32xf32>, vector<8x32xf32> -> vector<8x128xf32>
    %247 = vector.extract_strided_slice %237 {offsets = [4, 0, 0], sizes = [1, 8, 32], strides = [1, 1, 1]} : vector<8x8x32xf32> to vector<1x8x32xf32>
    %248 = vector.shape_cast %247 : vector<1x8x32xf32> to vector<8x32xf32>
    %249 = vector.extract_strided_slice %237 {offsets = [5, 0, 0], sizes = [1, 8, 32], strides = [1, 1, 1]} : vector<8x8x32xf32> to vector<1x8x32xf32>
    %250 = vector.shape_cast %249 : vector<1x8x32xf32> to vector<8x32xf32>
    %251 = vector.extract_strided_slice %237 {offsets = [6, 0, 0], sizes = [1, 8, 32], strides = [1, 1, 1]} : vector<8x8x32xf32> to vector<1x8x32xf32>
    %252 = vector.shape_cast %251 : vector<1x8x32xf32> to vector<8x32xf32>
    %253 = vector.extract_strided_slice %237 {offsets = [7, 0, 0], sizes = [1, 8, 32], strides = [1, 1, 1]} : vector<8x8x32xf32> to vector<1x8x32xf32>
    %254 = vector.shape_cast %253 : vector<1x8x32xf32> to vector<8x32xf32>
    %255 = tpu.concatenate %248, %250, %252, %254 in 1 : vector<8x32xf32>, vector<8x32xf32>, vector<8x32xf32>, vector<8x32xf32> -> vector<8x128xf32>
    %256 = tpu.concatenate %246, %255 in 0 : vector<8x128xf32>, vector<8x128xf32> -> vector<16x128xf32>
    %257 = arith.truncf %256 : vector<16x128xf32> to vector<16x128xbf16>
    %c0_35 = arith.constant 0 : index
    %c0_36 = arith.constant 0 : index
    %258 = vector.load %arg7[%c0_35, %c0_36] : memref<128x128xbf16, #tpu.memory_space<vmem>>, vector<128x128xbf16>
    %cst_37 = arith.constant dense<0.000000e+00> : vector<16x128xf32>
    %259 = tpu.matmul %257, %258, %cst_37 {dimension_numbers = #tpu.dot_dimension_numbers<[1], [0], [0], [1], [0, 0, 1, 1], [], []>} : vector<16x128xbf16>, vector<128x128xbf16>, vector<16x128xf32> -> vector<16x128xf32>
    %260 = vector.extract_strided_slice %1 {offsets = [9, 0], sizes = [1, 128], strides = [1, 1]} : vector<16x128xf32> to vector<1x128xf32>
    %261 = vector.broadcast %260 : vector<1x128xf32> to vector<16x128xf32>
    %262 = arith.addf %259, %261 : vector<16x128xf32>
    %263 = arith.addf %143, %262 : vector<16x128xf32>
    %264 = vector.extract_strided_slice %1 {offsets = [2, 0], sizes = [1, 128], strides = [1, 1]} : vector<16x128xf32> to vector<1x128xf32>
    %265 = vector.extract_strided_slice %1 {offsets = [3, 0], sizes = [1, 128], strides = [1, 1]} : vector<16x128xf32> to vector<1x128xf32>
    %cst_38 = arith.constant dense<0.000000e+00> : vector<16xf32>
    %266 = vector.multi_reduction <add>, %263, %cst_38 [1] : vector<16x128xf32> to vector<16xf32>
    %267 = vector.shape_cast %266 : vector<16xf32> to vector<16x1xf32>
    %cst_39 = arith.constant 1.280000e+02 : f32
    %268 = vector.broadcast %cst_39 : f32 to vector<16x1xf32>
    %269 = arith.divf %267, %268 : vector<16x1xf32>
    %270 = vector.broadcast %269 : vector<16x1xf32> to vector<16x128xf32>
    %271 = arith.subf %263, %270 : vector<16x128xf32>
    %272 = arith.mulf %271, %271 : vector<16x128xf32>
    %cst_40 = arith.constant dense<0.000000e+00> : vector<16xf32>
    %273 = vector.multi_reduction <add>, %272, %cst_40 [1] : vector<16x128xf32> to vector<16xf32>
    %274 = vector.shape_cast %273 : vector<16xf32> to vector<16x1xf32>
    %cst_41 = arith.constant 1.280000e+02 : f32
    %275 = vector.broadcast %cst_41 : f32 to vector<16x1xf32>
    %276 = arith.divf %274, %275 : vector<16x1xf32>
    %277 = vector.broadcast %269 : vector<16x1xf32> to vector<16x128xf32>
    %278 = arith.subf %263, %277 : vector<16x128xf32>
    %cst_42 = arith.constant 9.99999974E-6 : f32
    %279 = vector.broadcast %cst_42 : f32 to vector<16x1xf32>
    %280 = arith.addf %276, %279 : vector<16x1xf32>
    %281 = math.rsqrt %280 : vector<16x1xf32>
    %282 = vector.broadcast %281 : vector<16x1xf32> to vector<16x128xf32>
    %283 = arith.mulf %278, %282 : vector<16x128xf32>
    %284 = vector.broadcast %264 : vector<1x128xf32> to vector<16x128xf32>
    %285 = arith.mulf %283, %284 : vector<16x128xf32>
    %286 = vector.broadcast %265 : vector<1x128xf32> to vector<16x128xf32>
    %287 = arith.addf %285, %286 : vector<16x128xf32>
    %288 = arith.truncf %287 : vector<16x128xf32> to vector<16x128xbf16>
    %289 = vector.extract_strided_slice %144 {offsets = [0, 128], sizes = [128, 128], strides = [1, 1]} : vector<128x256xbf16> to vector<128x128xbf16>
    %cst_43 = arith.constant dense<0.000000e+00> : vector<16x128xf32>
    %290 = tpu.matmul %288, %289, %cst_43 {dimension_numbers = #tpu.dot_dimension_numbers<[1], [0], [0], [1], [0, 0, 1, 1], [], []>} : vector<16x128xbf16>, vector<128x128xbf16>, vector<16x128xf32> -> vector<16x128xf32>
    %291 = vector.extract_strided_slice %3 {offsets = [0, 0], sizes = [1, 128], strides = [1, 1]} : vector<3x128xf32> to vector<1x128xf32>
    %292 = vector.broadcast %291 : vector<1x128xf32> to vector<16x128xf32>
    %293 = arith.addf %290, %292 : vector<16x128xf32>
    %c0_44 = arith.constant 0 : index
    %c0_45 = arith.constant 0 : index
    %294 = vector.load %arg2[%c0_44, %c0_45] : memref<16x128xf32, #tpu.memory_space<vmem>>, vector<16x128xf32>
    %295 = arith.truncf %294 : vector<16x128xf32> to vector<16x128xbf16>
    %c0_46 = arith.constant 0 : index
    %c0_47 = arith.constant 0 : index
    %296 = vector.load %arg8[%c0_46, %c0_47] : memref<128x256xbf16, #tpu.memory_space<vmem>>, vector<128x256xbf16>
    %cst_48 = arith.constant dense<0.000000e+00> : vector<16x256xf32>
    %297 = tpu.matmul %295, %296, %cst_48 {dimension_numbers = #tpu.dot_dimension_numbers<[1], [0], [0], [1], [0, 0, 1, 1], [], []>} : vector<16x128xbf16>, vector<128x256xbf16>, vector<16x256xf32> -> vector<16x256xf32>
    %298 = vector.extract_strided_slice %297 {offsets = [0, 0], sizes = [16, 128], strides = [1, 1]} : vector<16x256xf32> to vector<16x128xf32>
    %299 = vector.extract_strided_slice %3 {offsets = [1, 0], sizes = [1, 128], strides = [1, 1]} : vector<3x128xf32> to vector<1x128xf32>
    %300 = vector.broadcast %299 : vector<1x128xf32> to vector<16x128xf32>
    %301 = arith.addf %298, %300 : vector<16x128xf32>
    %302 = vector.extract_strided_slice %297 {offsets = [0, 128], sizes = [16, 128], strides = [1, 1]} : vector<16x256xf32> to vector<16x128xf32>
    %303 = vector.extract_strided_slice %3 {offsets = [2, 0], sizes = [1, 128], strides = [1, 1]} : vector<3x128xf32> to vector<1x128xf32>
    %304 = vector.broadcast %303 : vector<1x128xf32> to vector<16x128xf32>
    %305 = arith.addf %302, %304 : vector<16x128xf32>
    %cst_49 = arith.constant 0.176776692 : f32
    %306 = vector.broadcast %cst_49 : f32 to vector<16x128xf32>
    %307 = arith.mulf %293, %306 : vector<16x128xf32>
    %308 = vector.extract_strided_slice %307 {offsets = [0, 0], sizes = [8, 128], strides = [1, 1]} : vector<16x128xf32> to vector<8x128xf32>
    %309 = vector.extract_strided_slice %308 {offsets = [0, 0], sizes = [8, 32], strides = [1, 1]} : vector<8x128xf32> to vector<8x32xf32>
    %310 = vector.extract_strided_slice %308 {offsets = [0, 32], sizes = [8, 32], strides = [1, 1]} : vector<8x128xf32> to vector<8x32xf32>
    %311 = vector.extract_strided_slice %308 {offsets = [0, 64], sizes = [8, 32], strides = [1, 1]} : vector<8x128xf32> to vector<8x32xf32>
    %312 = vector.extract_strided_slice %308 {offsets = [0, 96], sizes = [8, 32], strides = [1, 1]} : vector<8x128xf32> to vector<8x32xf32>
    %313 = vector.extract_strided_slice %307 {offsets = [8, 0], sizes = [8, 128], strides = [1, 1]} : vector<16x128xf32> to vector<8x128xf32>
    %314 = vector.extract_strided_slice %313 {offsets = [0, 0], sizes = [8, 32], strides = [1, 1]} : vector<8x128xf32> to vector<8x32xf32>
    %315 = vector.extract_strided_slice %313 {offsets = [0, 32], sizes = [8, 32], strides = [1, 1]} : vector<8x128xf32> to vector<8x32xf32>
    %316 = vector.extract_strided_slice %313 {offsets = [0, 64], sizes = [8, 32], strides = [1, 1]} : vector<8x128xf32> to vector<8x32xf32>
    %317 = vector.extract_strided_slice %313 {offsets = [0, 96], sizes = [8, 32], strides = [1, 1]} : vector<8x128xf32> to vector<8x32xf32>
    %318 = vector.shape_cast %309 : vector<8x32xf32> to vector<1x8x32xf32>
    %319 = vector.shape_cast %310 : vector<8x32xf32> to vector<1x8x32xf32>
    %320 = vector.shape_cast %311 : vector<8x32xf32> to vector<1x8x32xf32>
    %321 = vector.shape_cast %312 : vector<8x32xf32> to vector<1x8x32xf32>
    %322 = vector.shape_cast %314 : vector<8x32xf32> to vector<1x8x32xf32>
    %323 = vector.shape_cast %315 : vector<8x32xf32> to vector<1x8x32xf32>
    %324 = vector.shape_cast %316 : vector<8x32xf32> to vector<1x8x32xf32>
    %325 = vector.shape_cast %317 : vector<8x32xf32> to vector<1x8x32xf32>
    %326 = tpu.concatenate %318, %319, %320, %321, %322, %323, %324, %325 in 0 : vector<1x8x32xf32>, vector<1x8x32xf32>, vector<1x8x32xf32>, vector<1x8x32xf32>, vector<1x8x32xf32>, vector<1x8x32xf32>, vector<1x8x32xf32>, vector<1x8x32xf32> -> vector<8x8x32xf32>
    %327 = arith.truncf %326 : vector<8x8x32xf32> to vector<8x8x32xbf16>
    %328 = vector.extract_strided_slice %301 {offsets = [0, 0], sizes = [8, 128], strides = [1, 1]} : vector<16x128xf32> to vector<8x128xf32>
    %329 = vector.extract_strided_slice %328 {offsets = [0, 0], sizes = [8, 32], strides = [1, 1]} : vector<8x128xf32> to vector<8x32xf32>
    %330 = vector.extract_strided_slice %328 {offsets = [0, 32], sizes = [8, 32], strides = [1, 1]} : vector<8x128xf32> to vector<8x32xf32>
    %331 = vector.extract_strided_slice %328 {offsets = [0, 64], sizes = [8, 32], strides = [1, 1]} : vector<8x128xf32> to vector<8x32xf32>
    %332 = vector.extract_strided_slice %328 {offsets = [0, 96], sizes = [8, 32], strides = [1, 1]} : vector<8x128xf32> to vector<8x32xf32>
    %333 = vector.extract_strided_slice %301 {offsets = [8, 0], sizes = [8, 128], strides = [1, 1]} : vector<16x128xf32> to vector<8x128xf32>
    %334 = vector.extract_strided_slice %333 {offsets = [0, 0], sizes = [8, 32], strides = [1, 1]} : vector<8x128xf32> to vector<8x32xf32>
    %335 = vector.extract_strided_slice %333 {offsets = [0, 32], sizes = [8, 32], strides = [1, 1]} : vector<8x128xf32> to vector<8x32xf32>
    %336 = vector.extract_strided_slice %333 {offsets = [0, 64], sizes = [8, 32], strides = [1, 1]} : vector<8x128xf32> to vector<8x32xf32>
    %337 = vector.extract_strided_slice %333 {offsets = [0, 96], sizes = [8, 32], strides = [1, 1]} : vector<8x128xf32> to vector<8x32xf32>
    %338 = vector.shape_cast %329 : vector<8x32xf32> to vector<1x8x32xf32>
    %339 = vector.shape_cast %330 : vector<8x32xf32> to vector<1x8x32xf32>
    %340 = vector.shape_cast %331 : vector<8x32xf32> to vector<1x8x32xf32>
    %341 = vector.shape_cast %332 : vector<8x32xf32> to vector<1x8x32xf32>
    %342 = vector.shape_cast %334 : vector<8x32xf32> to vector<1x8x32xf32>
    %343 = vector.shape_cast %335 : vector<8x32xf32> to vector<1x8x32xf32>
    %344 = vector.shape_cast %336 : vector<8x32xf32> to vector<1x8x32xf32>
    %345 = vector.shape_cast %337 : vector<8x32xf32> to vector<1x8x32xf32>
    %346 = tpu.concatenate %338, %339, %340, %341, %342, %343, %344, %345 in 0 : vector<1x8x32xf32>, vector<1x8x32xf32>, vector<1x8x32xf32>, vector<1x8x32xf32>, vector<1x8x32xf32>, vector<1x8x32xf32>, vector<1x8x32xf32>, vector<1x8x32xf32> -> vector<8x8x32xf32>
    %347 = arith.truncf %346 : vector<8x8x32xf32> to vector<8x8x32xbf16>
    %348 = vector.extract_strided_slice %305 {offsets = [0, 0], sizes = [8, 128], strides = [1, 1]} : vector<16x128xf32> to vector<8x128xf32>
    %349 = vector.extract_strided_slice %348 {offsets = [0, 0], sizes = [8, 32], strides = [1, 1]} : vector<8x128xf32> to vector<8x32xf32>
    %350 = vector.extract_strided_slice %348 {offsets = [0, 32], sizes = [8, 32], strides = [1, 1]} : vector<8x128xf32> to vector<8x32xf32>
    %351 = vector.extract_strided_slice %348 {offsets = [0, 64], sizes = [8, 32], strides = [1, 1]} : vector<8x128xf32> to vector<8x32xf32>
    %352 = vector.extract_strided_slice %348 {offsets = [0, 96], sizes = [8, 32], strides = [1, 1]} : vector<8x128xf32> to vector<8x32xf32>
    %353 = vector.extract_strided_slice %305 {offsets = [8, 0], sizes = [8, 128], strides = [1, 1]} : vector<16x128xf32> to vector<8x128xf32>
    %354 = vector.extract_strided_slice %353 {offsets = [0, 0], sizes = [8, 32], strides = [1, 1]} : vector<8x128xf32> to vector<8x32xf32>
    %355 = vector.extract_strided_slice %353 {offsets = [0, 32], sizes = [8, 32], strides = [1, 1]} : vector<8x128xf32> to vector<8x32xf32>
    %356 = vector.extract_strided_slice %353 {offsets = [0, 64], sizes = [8, 32], strides = [1, 1]} : vector<8x128xf32> to vector<8x32xf32>
    %357 = vector.extract_strided_slice %353 {offsets = [0, 96], sizes = [8, 32], strides = [1, 1]} : vector<8x128xf32> to vector<8x32xf32>
    %358 = vector.shape_cast %349 : vector<8x32xf32> to vector<1x8x32xf32>
    %359 = vector.shape_cast %350 : vector<8x32xf32> to vector<1x8x32xf32>
    %360 = vector.shape_cast %351 : vector<8x32xf32> to vector<1x8x32xf32>
    %361 = vector.shape_cast %352 : vector<8x32xf32> to vector<1x8x32xf32>
    %362 = vector.shape_cast %354 : vector<8x32xf32> to vector<1x8x32xf32>
    %363 = vector.shape_cast %355 : vector<8x32xf32> to vector<1x8x32xf32>
    %364 = vector.shape_cast %356 : vector<8x32xf32> to vector<1x8x32xf32>
    %365 = vector.shape_cast %357 : vector<8x32xf32> to vector<1x8x32xf32>
    %366 = tpu.concatenate %358, %359, %360, %361, %362, %363, %364, %365 in 0 : vector<1x8x32xf32>, vector<1x8x32xf32>, vector<1x8x32xf32>, vector<1x8x32xf32>, vector<1x8x32xf32>, vector<1x8x32xf32>, vector<1x8x32xf32>, vector<1x8x32xf32> -> vector<8x8x32xf32>
    %367 = arith.truncf %366 : vector<8x8x32xf32> to vector<8x8x32xbf16>
    %cst_50 = arith.constant dense<0.000000e+00> : vector<8x8x8xf32>
    %368 = tpu.matmul %327, %347, %cst_50 {dimension_numbers = #tpu.dot_dimension_numbers<[2], [2], [1], [1], [0, 0, 0, 1, 1, 1], [0], [0]>} : vector<8x8x32xbf16>, vector<8x8x32xbf16>, vector<8x8x8xf32> -> vector<8x8x8xf32>
    %cst_51 = arith.constant dense<0xFF800000> : vector<8x8xf32>
    %369 = vector.multi_reduction <maximumf>, %368, %cst_51 [2] : vector<8x8x8xf32> to vector<8x8xf32>
    %370 = vector.shape_cast %369 : vector<8x8xf32> to vector<8x8x1xf32>
    %371 = vector.broadcast %370 : vector<8x8x1xf32> to vector<8x8x8xf32>
    %372 = arith.subf %368, %371 : vector<8x8x8xf32>
    %373 = math.exp %372 : vector<8x8x8xf32>
    %cst_52 = arith.constant dense<0.000000e+00> : vector<8x8xf32>
    %374 = vector.multi_reduction <add>, %373, %cst_52 [2] : vector<8x8x8xf32> to vector<8x8xf32>
    %375 = vector.shape_cast %374 : vector<8x8xf32> to vector<8x8x1xf32>
    %376 = tpu.reciprocal %375 {approx = true} : vector<8x8x1xf32> -> vector<8x8x1xf32>
    %377 = vector.broadcast %376 : vector<8x8x1xf32> to vector<8x8x8xf32>
    %378 = arith.mulf %373, %377 : vector<8x8x8xf32>
    %379 = arith.truncf %378 : vector<8x8x8xf32> to vector<8x8x8xbf16>
    %cst_53 = arith.constant dense<0.000000e+00> : vector<8x8x32xf32>
    %380 = tpu.matmul %379, %367, %cst_53 {dimension_numbers = #tpu.dot_dimension_numbers<[2], [1], [1], [2], [0, 0, 0, 1, 1, 2], [0], [0]>} : vector<8x8x8xbf16>, vector<8x8x32xbf16>, vector<8x8x32xf32> -> vector<8x8x32xf32>
    %381 = vector.extract_strided_slice %380 {offsets = [0, 0, 0], sizes = [1, 8, 32], strides = [1, 1, 1]} : vector<8x8x32xf32> to vector<1x8x32xf32>
    %382 = vector.shape_cast %381 : vector<1x8x32xf32> to vector<8x32xf32>
    %383 = vector.extract_strided_slice %380 {offsets = [1, 0, 0], sizes = [1, 8, 32], strides = [1, 1, 1]} : vector<8x8x32xf32> to vector<1x8x32xf32>
    %384 = vector.shape_cast %383 : vector<1x8x32xf32> to vector<8x32xf32>
    %385 = vector.extract_strided_slice %380 {offsets = [2, 0, 0], sizes = [1, 8, 32], strides = [1, 1, 1]} : vector<8x8x32xf32> to vector<1x8x32xf32>
    %386 = vector.shape_cast %385 : vector<1x8x32xf32> to vector<8x32xf32>
    %387 = vector.extract_strided_slice %380 {offsets = [3, 0, 0], sizes = [1, 8, 32], strides = [1, 1, 1]} : vector<8x8x32xf32> to vector<1x8x32xf32>
    %388 = vector.shape_cast %387 : vector<1x8x32xf32> to vector<8x32xf32>
    %389 = tpu.concatenate %382, %384, %386, %388 in 1 : vector<8x32xf32>, vector<8x32xf32>, vector<8x32xf32>, vector<8x32xf32> -> vector<8x128xf32>
    %390 = vector.extract_strided_slice %380 {offsets = [4, 0, 0], sizes = [1, 8, 32], strides = [1, 1, 1]} : vector<8x8x32xf32> to vector<1x8x32xf32>
    %391 = vector.shape_cast %390 : vector<1x8x32xf32> to vector<8x32xf32>
    %392 = vector.extract_strided_slice %380 {offsets = [5, 0, 0], sizes = [1, 8, 32], strides = [1, 1, 1]} : vector<8x8x32xf32> to vector<1x8x32xf32>
    %393 = vector.shape_cast %392 : vector<1x8x32xf32> to vector<8x32xf32>
    %394 = vector.extract_strided_slice %380 {offsets = [6, 0, 0], sizes = [1, 8, 32], strides = [1, 1, 1]} : vector<8x8x32xf32> to vector<1x8x32xf32>
    %395 = vector.shape_cast %394 : vector<1x8x32xf32> to vector<8x32xf32>
    %396 = vector.extract_strided_slice %380 {offsets = [7, 0, 0], sizes = [1, 8, 32], strides = [1, 1, 1]} : vector<8x8x32xf32> to vector<1x8x32xf32>
    %397 = vector.shape_cast %396 : vector<1x8x32xf32> to vector<8x32xf32>
    %398 = tpu.concatenate %391, %393, %395, %397 in 1 : vector<8x32xf32>, vector<8x32xf32>, vector<8x32xf32>, vector<8x32xf32> -> vector<8x128xf32>
    %399 = tpu.concatenate %389, %398 in 0 : vector<8x128xf32>, vector<8x128xf32> -> vector<16x128xf32>
    %400 = arith.truncf %399 : vector<16x128xf32> to vector<16x128xbf16>
    %c0_54 = arith.constant 0 : index
    %c0_55 = arith.constant 0 : index
    %401 = vector.load %arg9[%c0_54, %c0_55] : memref<128x128xbf16, #tpu.memory_space<vmem>>, vector<128x128xbf16>
    %cst_56 = arith.constant dense<0.000000e+00> : vector<16x128xf32>
    %402 = tpu.matmul %400, %401, %cst_56 {dimension_numbers = #tpu.dot_dimension_numbers<[1], [0], [0], [1], [0, 0, 1, 1], [], []>} : vector<16x128xbf16>, vector<128x128xbf16>, vector<16x128xf32> -> vector<16x128xf32>
    %403 = vector.extract_strided_slice %1 {offsets = [10, 0], sizes = [1, 128], strides = [1, 1]} : vector<16x128xf32> to vector<1x128xf32>
    %404 = vector.broadcast %403 : vector<1x128xf32> to vector<16x128xf32>
    %405 = arith.addf %402, %404 : vector<16x128xf32>
    %406 = arith.addf %287, %405 : vector<16x128xf32>
    %407 = vector.extract_strided_slice %1 {offsets = [4, 0], sizes = [1, 128], strides = [1, 1]} : vector<16x128xf32> to vector<1x128xf32>
    %408 = vector.extract_strided_slice %1 {offsets = [5, 0], sizes = [1, 128], strides = [1, 1]} : vector<16x128xf32> to vector<1x128xf32>
    %cst_57 = arith.constant dense<0.000000e+00> : vector<16xf32>
    %409 = vector.multi_reduction <add>, %406, %cst_57 [1] : vector<16x128xf32> to vector<16xf32>
    %410 = vector.shape_cast %409 : vector<16xf32> to vector<16x1xf32>
    %cst_58 = arith.constant 1.280000e+02 : f32
    %411 = vector.broadcast %cst_58 : f32 to vector<16x1xf32>
    %412 = arith.divf %410, %411 : vector<16x1xf32>
    %413 = vector.broadcast %412 : vector<16x1xf32> to vector<16x128xf32>
    %414 = arith.subf %406, %413 : vector<16x128xf32>
    %415 = arith.mulf %414, %414 : vector<16x128xf32>
    %cst_59 = arith.constant dense<0.000000e+00> : vector<16xf32>
    %416 = vector.multi_reduction <add>, %415, %cst_59 [1] : vector<16x128xf32> to vector<16xf32>
    %417 = vector.shape_cast %416 : vector<16xf32> to vector<16x1xf32>
    %cst_60 = arith.constant 1.280000e+02 : f32
    %418 = vector.broadcast %cst_60 : f32 to vector<16x1xf32>
    %419 = arith.divf %417, %418 : vector<16x1xf32>
    %420 = vector.broadcast %412 : vector<16x1xf32> to vector<16x128xf32>
    %421 = arith.subf %406, %420 : vector<16x128xf32>
    %cst_61 = arith.constant 9.99999974E-6 : f32
    %422 = vector.broadcast %cst_61 : f32 to vector<16x1xf32>
    %423 = arith.addf %419, %422 : vector<16x1xf32>
    %424 = math.rsqrt %423 : vector<16x1xf32>
    %425 = vector.broadcast %424 : vector<16x1xf32> to vector<16x128xf32>
    %426 = arith.mulf %421, %425 : vector<16x128xf32>
    %427 = vector.broadcast %407 : vector<1x128xf32> to vector<16x128xf32>
    %428 = arith.mulf %426, %427 : vector<16x128xf32>
    %429 = vector.broadcast %408 : vector<1x128xf32> to vector<16x128xf32>
    %430 = arith.addf %428, %429 : vector<16x128xf32>
    %431 = arith.truncf %430 : vector<16x128xf32> to vector<16x128xbf16>
    %c0_62 = arith.constant 0 : index
    %c0_63 = arith.constant 0 : index
    %432 = vector.load %arg10[%c0_62, %c0_63] : memref<128x256xbf16, #tpu.memory_space<vmem>>, vector<128x256xbf16>
    %cst_64 = arith.constant dense<0.000000e+00> : vector<16x256xf32>
    %433 = tpu.matmul %431, %432, %cst_64 {dimension_numbers = #tpu.dot_dimension_numbers<[1], [0], [0], [1], [0, 0, 1, 1], [], []>} : vector<16x128xbf16>, vector<128x256xbf16>, vector<16x256xf32> -> vector<16x256xf32>
    %c0_65 = arith.constant 0 : index
    %c0_66 = arith.constant 0 : index
    %434 = vector.load %arg15[%c0_65, %c0_66] : memref<1x256xf32, #tpu.memory_space<vmem>>, vector<1x256xf32>
    %435 = vector.broadcast %434 : vector<1x256xf32> to vector<16x256xf32>
    %436 = arith.addf %433, %435 : vector<16x256xf32>
    %cst_67 = arith.constant 0.000000e+00 : f32
    %437 = vector.broadcast %cst_67 : f32 to vector<16x256xf32>
    %438 = arith.maximumf %436, %437 : vector<16x256xf32>
    %439 = arith.truncf %438 : vector<16x256xf32> to vector<16x256xbf16>
    %c0_68 = arith.constant 0 : index
    %c0_69 = arith.constant 0 : index
    %440 = vector.load %arg11[%c0_68, %c0_69] : memref<256x128xbf16, #tpu.memory_space<vmem>>, vector<256x128xbf16>
    %cst_70 = arith.constant dense<0.000000e+00> : vector<16x128xf32>
    %441 = tpu.matmul %439, %440, %cst_70 {dimension_numbers = #tpu.dot_dimension_numbers<[1], [0], [0], [1], [0, 0, 1, 1], [], []>} : vector<16x256xbf16>, vector<256x128xbf16>, vector<16x128xf32> -> vector<16x128xf32>
    %442 = vector.extract_strided_slice %1 {offsets = [11, 0], sizes = [1, 128], strides = [1, 1]} : vector<16x128xf32> to vector<1x128xf32>
    %443 = vector.broadcast %442 : vector<1x128xf32> to vector<16x128xf32>
    %444 = arith.addf %441, %443 : vector<16x128xf32>
    %445 = arith.addf %430, %444 : vector<16x128xf32>
    %446 = vector.extract_strided_slice %1 {offsets = [6, 0], sizes = [1, 128], strides = [1, 1]} : vector<16x128xf32> to vector<1x128xf32>
    %447 = vector.extract_strided_slice %1 {offsets = [7, 0], sizes = [1, 128], strides = [1, 1]} : vector<16x128xf32> to vector<1x128xf32>
    %cst_71 = arith.constant dense<0.000000e+00> : vector<16xf32>
    %448 = vector.multi_reduction <add>, %445, %cst_71 [1] : vector<16x128xf32> to vector<16xf32>
    %449 = vector.shape_cast %448 : vector<16xf32> to vector<16x1xf32>
    %cst_72 = arith.constant 1.280000e+02 : f32
    %450 = vector.broadcast %cst_72 : f32 to vector<16x1xf32>
    %451 = arith.divf %449, %450 : vector<16x1xf32>
    %452 = vector.broadcast %451 : vector<16x1xf32> to vector<16x128xf32>
    %453 = arith.subf %445, %452 : vector<16x128xf32>
    %454 = arith.mulf %453, %453 : vector<16x128xf32>
    %cst_73 = arith.constant dense<0.000000e+00> : vector<16xf32>
    %455 = vector.multi_reduction <add>, %454, %cst_73 [1] : vector<16x128xf32> to vector<16xf32>
    %456 = vector.shape_cast %455 : vector<16xf32> to vector<16x1xf32>
    %cst_74 = arith.constant 1.280000e+02 : f32
    %457 = vector.broadcast %cst_74 : f32 to vector<16x1xf32>
    %458 = arith.divf %456, %457 : vector<16x1xf32>
    %459 = vector.broadcast %451 : vector<16x1xf32> to vector<16x128xf32>
    %460 = arith.subf %445, %459 : vector<16x128xf32>
    %cst_75 = arith.constant 9.99999974E-6 : f32
    %461 = vector.broadcast %cst_75 : f32 to vector<16x1xf32>
    %462 = arith.addf %458, %461 : vector<16x1xf32>
    %463 = math.rsqrt %462 : vector<16x1xf32>
    %464 = vector.broadcast %463 : vector<16x1xf32> to vector<16x128xf32>
    %465 = arith.mulf %460, %464 : vector<16x128xf32>
    %466 = vector.broadcast %446 : vector<1x128xf32> to vector<16x128xf32>
    %467 = arith.mulf %465, %466 : vector<16x128xf32>
    %468 = vector.broadcast %447 : vector<1x128xf32> to vector<16x128xf32>
    %469 = arith.addf %467, %468 : vector<16x128xf32>
    %c0_76 = arith.constant 0 : index
    %c0_77 = arith.constant 0 : index
    %470 = vector.load %arg16[%c0_76, %c0_77] : memref<16x128xf32, #tpu.memory_space<vmem>>, vector<16x128xf32>
    tpu.vector_store %arg16[%c0_76, %c0_77], %469 {strides = array<i32>} : memref<16x128xf32, #tpu.memory_space<vmem>>, vector<16x128xf32>,
    return
  }
}

</mosaic_0001>

<bundles_post_ra>
// kernel: decoder_layer_forward.1
= control target key start
LH: loop header
LB: loop body
LE: loop exit
PB: predicated region body
PF: predicated region fallthrough
CT: control target
= control target key end

     0   :  { %s6837_s0 = inlined_call_operand.vmem [shape: f32[16,128], index: 0, kind: input, shape index: {}]   ;;  %s6838_s1 = inlined_call_operand.vmem [shape: f32[16,128], index: 1, kind: input, shape index: {}]   ;;  %s6839_s2 = inlined_call_operand.vmem [shape: f32[16,128], index: 2, kind: input, shape index: {}]   ;;  %s6840_s3 = inlined_call_operand.vmem [shape: bf16[128,384], index: 3, kind: input, shape index: {}]   ;;  %s6841_s4 = inlined_call_operand.vmem [shape: bf16[128,128], index: 4, kind: input, shape index: {}]   ;;  %s6842_s5 = inlined_call_operand.vmem [shape: bf16[128,256], index: 5, kind: input, shape index: {}]   ;;  %s6843_s6 = inlined_call_operand.vmem [shape: bf16[128,256], index: 6, kind: input, shape index: {}]   ;;  %s6844_s7 = inlined_call_operand.vmem [shape: bf16[128,128], index: 7, kind: input, shape index: {}]   ;;  %s6845_s8 = inlined_call_operand.vmem [shape: bf16[128,256], index: 8, kind: input, shape index: {}]   ;;  %s6846_s9 = inlined_call_operand.vmem [shape: bf16[128,128], index: 9, kind: input, shape index: {}]   ;;  %s6847_s10 = inlined_call_operand.vmem [shape: bf16[128,256], index: 10, kind: input, shape index: {}]   ;;  %s6848_s11 = inlined_call_operand.vmem [shape: bf16[256,128], index: 11, kind: input, shape index: {}]   ;;  %s6849_s12 = inlined_call_operand.vmem [shape: f32[16,128], index: 12, kind: input, shape index: {}]   ;;  %s6850_s13 = inlined_call_operand.vmem [shape: f32[3,128], index: 13, kind: input, shape index: {}]   ;;  %s6851_s14 = inlined_call_operand.vmem [shape: f32[3,128], index: 14, kind: input, shape index: {}]   ;;  %s6852_s15 = inlined_call_operand.vmem [shape: f32[1,256], index: 15, kind: input, shape index: {}]   ;;  %s6853_s16 = inlined_call_operand.hbm [shape: f32[16,128], index: 16, kind: output, shape index: {}]  }
   0x1   :  { %6855 = sst [smem:[#allocation5_spill]] %s6837_s0 }
   0x2   :  { %v5303_v0 = vld [vmem:[%s6840_s3 + $0xac] ss:$12 sps:$4 sm:$0xff]   ;;  %v5305_v1 = vld [vmem:[%s6840_s3 + $0xa8] ss:$12 sps:$4 sm:$0xff]   ;;  %v5610_v2 = vmov 0   ;;  %v5611_v3 = vmov 0.0  }
   0x3   :  { %254 = vmatprep.mubr.bf16.mxu0 %v5610_v2  ;;  %4841 = vmatprep.subr.bf16.mxu1 %v5611_v3  ;;  %v5306_v4 = vld [vmem:[%s6840_s3 + $0x94] ss:$12 sps:$4 sm:$0xff]   ;;  %v5308_v5 = vld [vmem:[%s6840_s3 + $0x90] ss:$12 sps:$4 sm:$0xff]   ;;  %v5311_v7 = vld [vmem:[%s6840_s3 + $0x78] ss:$12 sps:$4 sm:$0xff]  }
   0x4   :  { %222 = vmatprep.subr.bf16.mxu0 %v5303_v0  ;;  %v5309_v6 = vld [vmem:[%s6840_s3 + $0x7c] ss:$12 sps:$4 sm:$0xff]   ;;  %v5312_v8 = vld [vmem:[%s6840_s3 + $0x64] ss:$12 sps:$4 sm:$0xff]   ;;  %v5314_v9 = vld [vmem:[%s6840_s3 + $0x60] ss:$12 sps:$4 sm:$0xff]  }
   0x5   :  { %223 = vmatpush1.bf16.msra.mxu0 %v5305_v1  ;;  %v5315_v10 = vld [vmem:[%s6840_s3 + $0x4c] ss:$12 sps:$4 sm:$0xff]   ;;  %v5327_v11 = vld [vmem:[%s6840_s3 + $0xb0] ss:$12 sps:$4 sm:$0xff]   ;;  %v5317_v13 = vld [vmem:[%s6840_s3 + $0x48] ss:$12 sps:$4 sm:$0xff]  }
   0x6   :  { %224 = vmatprep.subr.bf16.mxu0 %v5306_v4  ;;  %4842 = vmatpush3.bf16.msra.mxu1 %v5327_v11  ;;  %v5328_v12 = vld [vmem:[%s6840_s3 + $0x98] ss:$12 sps:$4 sm:$0xff]   ;;  %v5318_v14 = vld [vmem:[%s6840_s3 + $0x34] ss:$12 sps:$4 sm:$0xff]   ;;  %v5320_v15 = vld [vmem:[%s6840_s3 + $0x30] ss:$12 sps:$4 sm:$0xff]  }
   0x7   :  { %4843 = vmatprep.subr.bf16.mxu1 %v5611_v3  ;;  %v5329_v16 = vld [vmem:[%s6840_s3 + $0x80] ss:$12 sps:$4 sm:$0xff]   ;;  %v5321_v17 = vld [vmem:[%s6840_s3 + $0x1c] ss:$12 sps:$4 sm:$0xff]   ;;  %v5323_v19 = vld [vmem:[%s6840_s3 + $0x18] ss:$12 sps:$4 sm:$0xff]  }
   0x8   :  { %v5330_v18 = vld [vmem:[%s6840_s3 + $0x68] ss:$12 sps:$4 sm:$0xff]   ;;  %v5324_v20 = vld [vmem:[%s6840_s3 + $0x4] ss:$12 sps:$4 sm:$0xff]   ;;  %v5326_v22 = vld [vmem:[%s6840_s3] ss:$12 sps:$4 sm:$0xff]  }
   0x9   :  { %225 = vmatpush1.bf16.msra.mxu0 %v5308_v5  ;;  %v5331_v21 = vld [vmem:[%s6840_s3 + $0x50] ss:$12 sps:$4 sm:$0xff]   ;;  %s6856_s20 = sld [smem:[#allocation5_spill]]  ;;  %v5332_v25 = vld [vmem:[%s6840_s3 + $0x38] ss:$12 sps:$4 sm:$0xff]  }
   0xa   :  { %226 = vmatprep.subr.bf16.mxu0 %v5309_v6  ;;  %4844 = vmatpush3.bf16.msra.mxu1 %v5328_v12 }
   0xb   :  { %4845 = vmatprep.subr.bf16.mxu1 %v5611_v3 }
   0xd   :  { %227 = vmatpush1.bf16.msra.mxu0 %v5311_v7 }
   0xe   :  { %228 = vmatprep.subr.bf16.mxu0 %v5312_v8  ;;  %4846 = vmatpush3.bf16.msra.mxu1 %v5329_v16 }
   0xf   :  { %4847 = vmatprep.subr.bf16.mxu1 %v5611_v3  ;;  %v55_v23 = vld [vmem:[%s6856_s20] sm:$0xff]  ;;  %v56_v24 = vld [vmem:[%s6856_s20 + $0x8] sm:$0xff] }
  0x10   :  { %v61_v26 = vpack.c.bf16 %v56_v24, %v55_v23 }
  0x11   :  { %229 = vmatpush1.bf16.msra.mxu0 %v5314_v9 }
  0x12   :  { %230 = vmatprep.subr.bf16.mxu0 %v5315_v10  ;;  %4848 = vmatpush3.bf16.msra.mxu1 %v5330_v18 }
  0x13   :  { %4849 = vmatprep.subr.bf16.mxu1 %v5611_v3 }
  0x15   :  { %231 = vmatpush1.bf16.msra.mxu0 %v5317_v13 }
  0x16   :  { %232 = vmatprep.subr.bf16.mxu0 %v5318_v14  ;;  %4850 = vmatpush3.bf16.msra.mxu1 %v5331_v21 }
  0x17   :  { %4851 = vmatprep.subr.bf16.mxu1 %v5611_v3 }
  0x19   :  { %233 = vmatpush1.bf16.msra.mxu0 %v5320_v15 }
  0x1a   :  { %234 = vmatprep.subr.bf16.mxu0 %v5321_v17  ;;  %4852 = vmatpush3.bf16.msra.mxu1 %v5332_v25 }
  0x1b   :  { %4853 = vmatprep.subr.bf16.mxu1 %v5611_v3 }
  0x1d   :  { %235 = vmatpush1.bf16.msra.mxu0 %v5323_v19 }
  0x1e   :  { %236 = vmatprep.subr.bf16.mxu0 %v5324_v20 }
  0x21   :  { %237 = vmatpush1.bf16.msra.mxu0 %v5326_v22 }
  0x22   :  { %4885 = vmatprep.subr.bf16.mxu0 %v5611_v3 }
  0x24   :  { %255 = vmatmul.mubr.bf16.vlgmr.msra.gmra.mxu0 %v61_v26 }
  0x25   :  { %21 = vsyncpa [#allocation3], 0  ;;  %v5333_v27 = vld [vmem:[%s6840_s3 + $0x20] ss:$12 sps:$4 sm:$0xff]   ;;  %v5334_v28 = vld [vmem:[%s6840_s3 + $0x8] ss:$12 sps:$4 sm:$0xff]   ;;  %v306_v29 = vlaneseq }
  0x26   :  { %4854 = vmatpush3.bf16.msra.mxu1 %v5333_v27  ;;  %vm5612_vm0 = vmmov 0   ;;  %v5806_v33 = vld [vmem:[%s6849_s12 + $0x8] sm:$0xff]  ;;  %vm410_vm1 = vcmask 261120   ;;  %s5613_s30 = smov 64   ;;  %s5614_s0 = smov 96   ;;  %vm879_vm2 = vcmask 1043456  }
  0x27   :  { %4855 = vmatprep.subr.bf16.mxu1 %v5611_v3  ;;  %4857 = vmatprep.mubr.msk.bf16.mxu1 %vm5612_vm0, %v5611_v3  ;;  %v5799_v30 = vshrl.u32 %v306_v29, 7  ;;  %s5615_s17 = smov 32   ;;  %vm779_vm3 = vcmask 64512   ;;  %vm1258_vm4 = vcmask 523264   ;;  %vm1260_vm5 = vcmask 785408  }
  0x28   :  { %4887 = vmatprep.mubr.msk.bf16.mxu0 %vm5612_vm0, %v5611_v3 }
  0x29   :  { %v308_v31 = vsub.s32 4, %v5799_v30  ;;  %v314_v32 = vsub.s32 5, %v5799_v30  ;;  %v320_v52 = vsub.s32 6, %v5799_v30 }
  0x2a   :  { %4856 = vmatpush3.bf16.msra.mxu1 %v5334_v28 }
  0x2b   :  { %4861 = vmatprep.subr.bf16.mxu1 %v5611_v3  ;;  %v309_v34 = vrot.slane %v5806_v33, %v308_v31  ;;  %v315_v35 = vrot.slane %v5806_v33, %v314_v32  ;;  %v321_v54 = vrot.slane %v5806_v33, %v320_v52 }
  0x2d   :  { %4858 = vmatmul.mubr.bf16.vlgmr.msra.gmra.mxu1 %v61_v26 }
  0x2e   :  { %4863 = vmatprep.mubr.msk.bf16.mxu1 %vm5612_vm0, %v5611_v3 }
  0xe4   :  { %v256_v36 = vpop.f32.mrf.mxu0 }
  0xe5   :  { %v310_v38 = vadd.f32 %v309_v34, %v256_v36 }
  0xe6   :  { %v258_v37 = vpop.f32.mrf.mxu0 }
  0xe7   :  { %v316_v39 = vadd.f32 %v315_v35, %v258_v37  ;;  %v324_v43 = vmul.f32 0.17677669, %v310_v38 }
  0xe8   :  { %v260_v40 = vpop.f32.mrf.mxu0 }
  0xe9   :  { %358 = vrot.lane.b32.xlu1 %v316_v39, %s5613_s30  ;;  %355 = vrot.lane.b32.xlu0 %v316_v39, %s5614_s0  ;;  %v374_v41 = vpack.c.bf16 %v316_v39, %v316_v39  ;;  %v311_v46 = vadd.f32 %v309_v34, %v260_v40  ;;  %v346_v49 = vpack.c.bf16 %v324_v43, %v324_v43 }
  0xea   :  { %v262_v42 = vpop.f32.mrf.mxu0 }
  0xeb   :  { %v317_v44 = vadd.f32 %v315_v35, %v262_v42  ;;  %v415_v45 = vsel %vm410_vm1, %v374_v41, 0  ;;  %v325_v50 = vmul.f32 0.17677669, %v311_v46 }
  0xec   :  { %4862 = vmatpush3.bf16.xpose.msra.mxu1 %v415_v45 }
  0xed   :  { %330 = vrot.lane.b32.xlu1 %v324_v43, %s5613_s30  ;;  %327 = vrot.lane.b32.xlu0 %v324_v43, %s5614_s0  ;;  %v378_v47 = vpack.c.bf16 %v317_v44, %v317_v44  ;;  %v350_v51 = vpack.c.bf16 %v325_v50, %v325_v50  ;;  %v299_v53 = vpop.f32.mrf.mxu1 }
  0xee   :  { %4867 = vmatprep.subr.bf16.mxu1 %v5611_v3  ;;  %v5849_v11 = vadd.f32 %v321_v54, %v299_v53 }
  0xef   :  { %v599_v48 = vsel %vm410_vm1, %v378_v47, 0  ;;  %v4859_v55 = vpop.f32.mrf.mxu1 }
  0xf0   :  { %4886 = vmatpush3.bf16.xpose.msra.mxu0 %v599_v48  ;;  %v402_v16 = vpack.c.bf16 %v5849_v11, %v5849_v11 }
  0xf1   :  { %333 = vrot.lane.b32.xlu1 %v324_v43, %s5615_s17  ;;  %361 = vrot.lane.b32.xlu0 %v316_v39, %s5615_s17  ;;  %v302_v56 = vpop.f32.mrf.mxu1 }
  0xf2   :  { %4897 = vmatprep.subr.bf16.mxu0 %v5611_v3  ;;  %v5840_v57 = vadd.f32 %v321_v54, %v302_v56  ;;  %v881_v20 = vsel %vm879_vm2, %v402_v16, 0 }
  0xf3   :  { %4864 = vmatmul.mubr.msk.bf16.vlgmr.msra.gmra.mxu1 %vm410_vm1, %v346_v49  ;;  %v4860_v58 = vpop.f32.mrf.mxu1 }
  0xf4   :  { %4869 = vmatprep.mubr.msk.bf16.mxu1 %vm5612_vm0, %v5611_v3 }
  0xf5   :  { %368 = vrot.lane.b32.xlu1 %v317_v44, %s5613_s30  ;;  %365 = vrot.lane.b32.xlu0 %v317_v44, %s5614_s0 }
  0xf7   :  { %4888 = vmatmul.mubr.msk.bf16.vlgmr.msra.gmra.mxu0 %vm410_vm1, %v350_v51 }
  0xf8   :  { %4899 = vmatprep.mubr.msk.bf16.mxu0 %vm5612_vm0, %v5611_v3 }
  0xf9   :  { %371 = vrot.lane.b32.xlu1 %v317_v44, %s5615_s17  ;;  %337 = vrot.lane.b32.xlu0 %v325_v50, %s5614_s0 }
  0xfd   :  { %343 = vrot.lane.b32.xlu1 %v325_v50, %s5615_s17  ;;  %340 = vrot.lane.b32.xlu0 %v325_v50, %s5613_s30 }
 0x15b   :  { %v359_v59 = vpop.permute.xlu1 %358  ;;  %v356_v60 = vpop.permute.xlu0 %355 }
 0x15c   :  { %v375_v61 = vpack.c.bf16 %v356_v60, %v356_v60  ;;  %v376_v1 = vpack.c.bf16 %v359_v59, %v359_v59 }
 0x15e   :  { %v461_v62 = vsel %vm410_vm1, %v375_v61, 0  ;;  %v507_v7 = vsel %vm410_vm1, %v376_v1, 0 }
 0x15f   :  { %v331_v63 = vpop.permute.xlu1 %330  ;;  %v328_v0 = vpop.permute.xlu0 %327  ;;  %4868 = vmatpush3.bf16.xpose.msra.mxu1 %v461_v62 }
 0x160   :  { %4873 = vmatprep.subr.bf16.mxu1 %v5611_v3  ;;  %v347_v6 = vpack.c.bf16 %v328_v0, %v328_v0  ;;  %v348_v15 = vpack.c.bf16 %v331_v63, %v331_v63 }
 0x163   :  { %v334_v4 = vpop.permute.xlu1 %333  ;;  %v362_v5 = vpop.permute.xlu0 %361 }
 0x164   :  { %v377_v12 = vpack.c.bf16 %v362_v5, %v362_v5  ;;  %v349_v22 = vpack.c.bf16 %v334_v4, %v334_v4 }
 0x166   :  { %4870 = vmatmul.mubr.msk.bf16.vlgmr.msra.gmra.mxu1 %vm410_vm1, %v347_v6  ;;  %v553_v17 = vsel %vm410_vm1, %v377_v12, 0 }
 0x167   :  { %4874 = vmatpush3.bf16.xpose.msra.mxu1 %v507_v7  ;;  %v369_v8 = vpop.permute.xlu1 %368  ;;  %v366_v9 = vpop.permute.xlu0 %365  ;;  %4875 = vmatprep.mubr.msk.bf16.mxu1 %vm5612_vm0, %v5611_v3 }
 0x168   :  { %v380_v10 = vpack.c.bf16 %v369_v8, %v369_v8  ;;  %4879 = vmatprep.subr.bf16.mxu1 %v5611_v3  ;;  %v379_v21 = vpack.c.bf16 %v366_v9, %v366_v9 }
 0x16a   :  { %v691_v13 = vsel %vm410_vm1, %v380_v10, 0  ;;  %v645_v23 = vsel %vm410_vm1, %v379_v21, 0 }
 0x16b   :  { %v338_v14 = vpop.permute.xlu0 %337  ;;  %4898 = vmatpush3.bf16.xpose.msra.mxu0 %v691_v13  ;;  %v372_v24 = vpop.permute.xlu1 %371 }
 0x16c   :  { %4909 = vmatprep.subr.bf16.mxu0 %v5611_v3  ;;  %v381_v25 = vpack.c.bf16 %v372_v24, %v372_v24  ;;  %v351_v26 = vpack.c.bf16 %v338_v14, %v338_v14 }
 0x16e   :  { %4876 = vmatmul.mubr.msk.bf16.vlgmr.msra.gmra.mxu1 %vm410_vm1, %v348_v15  ;;  %v737_v27 = vsel %vm410_vm1, %v381_v25, 0 }
 0x16f   :  { %4880 = vmatpush3.bf16.xpose.msra.mxu1 %v553_v17  ;;  %v341_v18 = vpop.permute.xlu0 %340  ;;  %4881 = vmatprep.mubr.msk.bf16.mxu1 %vm5612_vm0, %v5611_v3  ;;  %v344_v28 = vpop.permute.xlu1 %343 }
 0x170   :  { %v352_v19 = vpack.c.bf16 %v341_v18, %v341_v18  ;;  %4891 = vmatprep.subr.bf16.mxu1 %v5611_v3  ;;  %v353_v29 = vpack.c.bf16 %v344_v28, %v344_v28 }
 0x172   :  { %4900 = vmatmul.mubr.msk.bf16.vlgmr.msra.gmra.mxu0 %vm410_vm1, %v352_v19 }
 0x173   :  { %4910 = vmatpush3.bf16.msra.mxu0 %v881_v20  ;;  %4911 = vmatprep.mubr.msk.bf16.mxu0 %vm5612_vm0, %v5611_v3 }
 0x174   :  { %4921 = vmatprep.subr.bf16.mxu0 %v5611_v3 }
 0x176   :  { %4882 = vmatmul.mubr.msk.bf16.vlgmr.msra.gmra.mxu1 %vm410_vm1, %v349_v22 }
 0x177   :  { %4892 = vmatpush3.bf16.xpose.msra.mxu1 %v645_v23  ;;  %4893 = vmatprep.mubr.msk.bf16.mxu1 %vm5612_vm0, %v5611_v3 }
 0x178   :  { %4903 = vmatprep.subr.bf16.mxu1 %v5611_v3 }
 0x17e   :  { %4894 = vmatmul.mubr.msk.bf16.vlgmr.msra.gmra.mxu1 %vm410_vm1, %v351_v26 }
 0x17f   :  { %4904 = vmatpush3.bf16.xpose.msra.mxu1 %v737_v27  ;;  %4905 = vmatprep.mubr.msk.bf16.mxu1 %vm5612_vm0, %v5611_v3 }
 0x180   :  { %4915 = vmatprep.subr.bf16.mxu1 %v5611_v3 }
 0x186   :  { %4906 = vmatmul.mubr.msk.bf16.vlgmr.msra.gmra.mxu1 %vm410_vm1, %v353_v29 }
 0x187   :  { %4917 = vmatprep.mubr.msk.bf16.mxu1 %vm5612_vm0, %v5611_v3 }
 0x1b3   :  { %v451_v34 = vpop.f32.mrf.mxu1 }
 0x1b4   :  { %v780_v35 = vsel %vm779_vm3, %v451_v34, -inf }
 0x1b5   :  { %v4865_v36 = vpop.f32.mrf.mxu1  ;;  %781 = vmax.xlane.f32.xlu0 %v780_v35 }
 0x1b7   :  { %v454_v37 = vpop.f32.mrf.mxu1  ;;  %v635_v38 = vpop.f32.mrf.mxu0 }
 0x1b8   :  { %v792_v39 = vsel %vm779_vm3, %v635_v38, -inf }
 0x1b9   :  { %v4866_v40 = vpop.f32.mrf.mxu1  ;;  %793 = vmax.xlane.f32.xlu1 %v792_v39  ;;  %v4889_v41 = vpop.f32.mrf.mxu0 }
 0x1bb   :  { %v638_v42 = vpop.f32.mrf.mxu0 }
 0x1bd   :  { %v4890_v43 = vpop.f32.mrf.mxu0 }
 0x226   :  { %v497_v44 = vpop.f32.mrf.mxu1 }
 0x227   :  { %v783_v45 = vsel %vm779_vm3, %v497_v44, -inf }
 0x228   :  { %v4871_v46 = vpop.f32.mrf.mxu1  ;;  %784 = vmax.xlane.f32.xlu1 %v783_v45 }
 0x22a   :  { %v500_v47 = vpop.f32.mrf.mxu1 }
 0x22c   :  { %v4872_v48 = vpop.f32.mrf.mxu1 }
 0x22e   :  { %v543_v49 = vpop.f32.mrf.mxu1 }
 0x22f   :  { %v786_v50 = vsel %vm779_vm3, %v543_v49, -inf }
 0x230   :  { %v4877_v51 = vpop.f32.mrf.mxu1  ;;  %787 = vmax.xlane.f32.xlu0 %v786_v50 }
 0x232   :  { %v546_v53 = vpop.f32.mrf.mxu1  ;;  %v727_v54 = vpop.f32.mrf.mxu0 }
 0x233   :  { %v798_v55 = vsel %vm779_vm3, %v727_v54, -inf }
 0x234   :  { %v4878_v56 = vpop.f32.mrf.mxu1  ;;  %799 = vmax.xlane.f32.xlu1 %v798_v55  ;;  %v4901_v58 = vpop.f32.mrf.mxu0 }
 0x236   :  { %v589_v59 = vpop.f32.mrf.mxu1  ;;  %v730_v60 = vpop.f32.mrf.mxu0 }
 0x237   :  { %v789_v61 = vsel %vm779_vm3, %v589_v59, -inf }
 0x238   :  { %v4883_v62 = vpop.f32.mrf.mxu1  ;;  %790 = vmax.xlane.f32.xlu0 %v789_v61  ;;  %v4902_v63 = vpop.f32.mrf.mxu0 }
 0x23a   :  { %v592_v0 = vpop.f32.mrf.mxu1 }
 0x23c   :  { %v4884_v1 = vpop.f32.mrf.mxu1 }
 0x23e   :  { %v5884_v4 = vpop.f32.mrf.mxu1  ;;  %v782_v15 = vpop.xlane.xlu0 %781 }
 0x23f   :  { %v795_v5 = vsel %vm779_vm3, %v5884_v4, -inf  ;;  %v804_v16 = vsub.f32 %v451_v34, %v782_v15 }
 0x240   :  { %796 = vmax.xlane.f32.xlu0 %v795_v5  ;;  %v4895_v6 = vpop.f32.mrf.mxu1 }
 0x241   :  { %v812_v18 = vmul.f32 1.442695, %v804_v16 }
 0x242   :  { %v684_v7 = vpop.f32.mrf.mxu1  ;;  %v794_v17 = vpop.xlane.xlu1 %793 }
 0x243   :  { %v808_v19 = vsub.f32 %v635_v38, %v794_v17  ;;  %5471 = vpow2.f32 %v812_v18 }
 0x244   :  { %v4896_v8 = vpop.f32.mrf.mxu1 }
 0x245   :  { %386 = vrot.lane.b32.xlu1 %v5849_v11, %s5613_s30  ;;  %v820_v20 = vmul.f32 1.442695, %v808_v19 }
 0x246   :  { %v5890_v9 = vpop.f32.mrf.mxu1 }
 0x247   :  { %v801_v10 = vsel %vm779_vm3, %v5890_v9, -inf  ;;  %5473 = vpow2.f32 %v820_v20 }
 0x248   :  { %802 = vmax.xlane.f32.xlu0 %v801_v10  ;;  %v4907_v12 = vpop.f32.mrf.mxu1 }
 0x24a   :  { %v776_v13 = vpop.f32.mrf.mxu1 }
 0x24c   :  { %v4908_v14 = vpop.f32.mrf.mxu1 }
 0x250   :  { %v5472_v21 = vpop.eup %5471 }
 0x251   :  { %v828_v22 = vsel %vm779_vm3, %v5472_v21, 0.0 }
 0x254   :  { %v5897_v23 = vpop.eup %5473 }
 0x255   :  { %v840_v24 = vsel %vm779_vm3, %v5897_v23, 0.0 }
 0x25e   :  { %383 = vrot.lane.b32.xlu0 %v5849_v11, %s5614_s0 }
 0x269   :  { %829 = vadd.xlane.f32.xlu1 %v828_v22 }
 0x26d   :  { %841 = vadd.xlane.f32.xlu1 %v840_v24 }
 0x2b1   :  { %v785_v25 = vpop.xlane.xlu1 %784 }
 0x2b2   :  { %v805_v26 = vsub.f32 %v497_v44, %v785_v25 }
 0x2b4   :  { %v814_v27 = vmul.f32 1.442695, %v805_v26 }
 0x2b6   :  { %5475 = vpow2.f32 %v814_v27  ;;  %v406_v27 = vpack.c.bf16 %v5840_v57, %v5840_v57 }
 0x2b9   :  { %v788_v28 = vpop.xlane.xlu0 %787 }
 0x2ba   :  { %v806_v29 = vsub.f32 %v543_v49, %v788_v28 }
 0x2bc   :  { %v816_v36 = vmul.f32 1.442695, %v806_v29 }
 0x2bd   :  { %v800_v34 = vpop.xlane.xlu1 %799 }
 0x2be   :  { %v810_v35 = vsub.f32 %v727_v54, %v800_v34 }
 0x2c0   :  { %v824_v37 = vmul.f32 1.442695, %v810_v35 }
 0x2c1   :  { %v791_v38 = vpop.xlane.xlu0 %790  ;;  %v387_v55 = vpop.permute.xlu1 %386 }
 0x2c2   :  { %5477 = vpow2.f32 %v824_v37  ;;  %v807_v39 = vsub.f32 %v589_v59, %v791_v38  ;;  %v404_v63 = vpack.c.bf16 %v387_v55, %v387_v55 }
 0x2c3   :  { %v5476_v40 = vpop.eup %5475  ;;  %5479 = vpow2.f32 %v816_v36  ;;  %v1065_v36 = vsel %vm879_vm2, %v406_v27, 0 }
 0x2c4   :  { %v818_v41 = vmul.f32 1.442695, %v807_v39  ;;  %v831_v42 = vsel %vm779_vm3, %v5476_v40, 0.0 }
 0x2c5   :  { %832 = vadd.xlane.f32.xlu0 %v831_v42 }
 0x2c6   :  { %5481 = vpow2.f32 %v818_v41 }
 0x2c9   :  { %v797_v43 = vpop.xlane.xlu0 %796 }
 0x2ca   :  { %v809_v56 = vsub.f32 %v5884_v4, %v797_v43 }
 0x2cc   :  { %v822_v60 = vmul.f32 1.442695, %v809_v56 }
 0x2cf   :  { %v5902_v44 = vpop.eup %5477 }
 0x2d0   :  { %v846_v45 = vsel %vm779_vm3, %v5902_v44, 0.0  ;;  %v5906_v46 = vpop.eup %5479 }
 0x2d1   :  { %v803_v47 = vpop.xlane.xlu0 %802  ;;  %847 = vadd.xlane.f32.xlu1 %v846_v45  ;;  %v834_v50 = vsel %vm779_vm3, %v5906_v46, 0.0 }
 0x2d2   :  { %v811_v58 = vsub.f32 %v5890_v9, %v803_v47 }
 0x2d3   :  { %v5482_v48 = vpop.eup %5481 }
 0x2d4   :  { %v837_v49 = vsel %vm779_vm3, %v5482_v48, 0.0  ;;  %v826_v61 = vmul.f32 1.442695, %v811_v58 }
 0x2d5   :  { %v384_v51 = vpop.permute.xlu0 %383  ;;  %838 = vadd.xlane.f32.xlu0 %v837_v49  ;;  %835 = vadd.xlane.f32.xlu1 %v834_v50 }
 0x2d6   :  { %v403_v53 = vpack.c.bf16 %v384_v51, %v384_v51 }
 0x2d8   :  { %v927_v54 = vsel %vm879_vm2, %v403_v53, 0 }
 0x2d9   :  { %4916 = vmatpush3.bf16.msra.mxu1 %v927_v54 }
 0x2da   :  { %4927 = vmatprep.subr.bf16.mxu1 %v5611_v3 }
 0x2e6   :  { %393 = vrot.lane.b32.xlu1 %v5840_v57, %s5614_s0 }
 0x2eb   :  { %389 = vrot.lane.b32.xlu0 %v5849_v11, %s5615_s17  ;;  %v973_v11 = vsel %vm879_vm2, %v404_v63, 0 }
 0x2f2   :  { %v830_v59 = vpop.xlane.xlu1 %829 }
 0x2f3   :  { %5483 = vrcp.f32 %v830_v59 }
 0x2f4   :  { %5485 = vpow2.f32 %v822_v60  ;;  %v5335_v60 = vld [vmem:[%s6841_s4 + $0x38] sm:$0xff]  }
 0x2f5   :  { %5487 = vpow2.f32 %v826_v61  ;;  %v5336_v61 = vld [vmem:[%s6841_s4 + $0x30] sm:$0xff]  }
 0x2f6   :  { %v842_v9 = vpop.xlane.xlu1 %841 }
 0x300   :  { %v5484_v62 = vpop.eup %5483 }
 0x301   :  { %v860_v0 = vmul.f32 %v5484_v62, %v5472_v21  ;;  %v5919_v5 = vpop.eup %5485  ;;  %v5337_v62 = vld [vmem:[%s6841_s4 + $0x28] sm:$0xff]  }
 0x302   :  { %v5923_v6 = vpop.eup %5487  ;;  %v843_v4 = vsel %vm779_vm3, %v5919_v5, 0.0 }
 0x303   :  { %v868_v1 = vpack.c.bf16 %v860_v0, %v860_v0  ;;  %v849_v7 = vsel %vm779_vm3, %v5923_v6, 0.0 }
 0x305   :  { %4912 = vmatmul.mubr.msk.bf16.vlgmr.msra.gmra.mxu0 %vm779_vm3, %v868_v1 }
 0x306   :  { %4922 = vmatpush3.bf16.msra.mxu0 %v973_v11  ;;  %4923 = vmatprep.mubr.msk.bf16.mxu0 %vm5612_vm0, %v5611_v3 }
 0x307   :  { %4933 = vmatprep.subr.bf16.mxu0 %v5611_v3 }
 0x30a   :  { %844 = vadd.xlane.f32.xlu0 %v843_v4  ;;  %850 = vadd.xlane.f32.xlu1 %v849_v7 }
 0x31b   :  { %399 = vrot.lane.b32.xlu1 %v5840_v57, %s5615_s17 }
 0x320   :  { %396 = vrot.lane.b32.xlu0 %v5840_v57, %s5613_s30 }
 0x34e   :  { %v833_v8 = vpop.xlane.xlu0 %832 }
 0x34f   :  { %5489 = vrcp.f32 %v833_v8 }
 0x35a   :  { %v848_v10 = vpop.xlane.xlu1 %847 }
 0x35c   :  { %v5490_v12 = vpop.eup %5489 }
 0x35d   :  { %v861_v13 = vmul.f32 %v5490_v12, %v5476_v40 }
 0x35e   :  { %v839_v14 = vpop.xlane.xlu0 %838  ;;  %v836_v15 = vpop.xlane.xlu1 %835 }
 0x35f   :  { %5491 = vrcp.f32 %v839_v14  ;;  %v869_v16 = vpack.c.bf16 %v861_v13, %v861_v13 }
 0x360   :  { %5493 = vrcp.f32 %v836_v15 }
 0x361   :  { %4918 = vmatmul.mubr.msk.bf16.vlgmr.msra.gmra.mxu1 %vm779_vm3, %v869_v16  ;;  %5495 = vrcp.f32 %v842_v9 }
 0x362   :  { %v390_v17 = vpop.permute.xlu0 %389  ;;  %4929 = vmatprep.mubr.msk.bf16.mxu1 %vm5612_vm0, %v5611_v3  ;;  %v394_v20 = vpop.permute.xlu1 %393  ;;  %5497 = vrcp.f32 %v848_v10 }
 0x363   :  { %v405_v18 = vpack.c.bf16 %v390_v17, %v390_v17  ;;  %v407_v24 = vpack.c.bf16 %v394_v20, %v394_v20  ;;  %v5338_v17 = vld [vmem:[%s6841_s4 + $0x20] sm:$0xff]   ;;  %v5340_v20 = vld [vmem:[%s6841_s4 + $0x10] sm:$0xff]  }
 0x365   :  { %v1019_v19 = vsel %vm879_vm2, %v405_v18, 0  ;;  %v1111_v35 = vsel %vm879_vm2, %v407_v24, 0  ;;  %v5339_v18 = vld [vmem:[%s6841_s4 + $0x18] sm:$0xff]   ;;  %v5341_v24 = vld [vmem:[%s6841_s4 + $0x8] sm:$0xff]  }
 0x366   :  { %4928 = vmatpush3.bf16.msra.mxu1 %v1019_v19 }
 0x367   :  { %4939 = vmatprep.subr.bf16.mxu1 %v5611_v3 }
 0x36c   :  { %v5492_v21 = vpop.eup %5491 }
 0x36d   :  { %v5494_v22 = vpop.eup %5493  ;;  %v863_v25 = vmul.f32 %v5492_v21, %v5482_v48 }
 0x36e   :  { %v862_v26 = vmul.f32 %v5494_v22, %v5906_v46  ;;  %v5496_v34 = vpop.eup %5495 }
 0x36f   :  { %v871_v28 = vpack.c.bf16 %v863_v25, %v863_v25  ;;  %v864_v37 = vmul.f32 %v5496_v34, %v5897_v23  ;;  %v5498_v39 = vpop.eup %5497 }
 0x370   :  { %v870_v29 = vpack.c.bf16 %v862_v26, %v862_v26  ;;  %v866_v42 = vmul.f32 %v5498_v39, %v5902_v44 }
 0x371   :  { %4930 = vmatmul.mubr.msk.bf16.vlgmr.msra.gmra.mxu1 %vm779_vm3, %v871_v28  ;;  %v872_v57 = vpack.c.bf16 %v864_v37, %v864_v37  ;;  %v5342_v28 = vld [vmem:[%s6841_s4] sm:$0xff]  }
 0x372   :  { %4924 = vmatmul.mubr.msk.bf16.vlgmr.msra.gmra.mxu0 %vm779_vm3, %v870_v29  ;;  %4940 = vmatpush3.bf16.msra.mxu1 %v1111_v35  ;;  %v874_v45 = vpack.c.bf16 %v866_v42, %v866_v42 }
 0x373   :  { %4934 = vmatpush3.bf16.msra.mxu0 %v1065_v36  ;;  %4935 = vmatprep.mubr.msk.bf16.mxu0 %vm5612_vm0, %v5611_v3 }
 0x374   :  { %4945 = vmatprep.subr.bf16.mxu0 %v5611_v3  ;;  %4941 = vmatprep.mubr.msk.bf16.mxu1 %vm5612_vm0, %v5611_v3 }
 0x375   :  { %4951 = vmatprep.subr.bf16.mxu1 %v5611_v3 }
 0x37a   :  { %4936 = vmatmul.mubr.msk.bf16.vlgmr.msra.gmra.mxu0 %vm779_vm3, %v872_v57 }
 0x37b   :  { %4947 = vmatprep.mubr.msk.bf16.mxu0 %vm5612_vm0, %v5611_v3 }
 0x393   :  { %v845_v38 = vpop.xlane.xlu0 %844  ;;  %v851_v40 = vpop.xlane.xlu1 %850 }
 0x394   :  { %5499 = vrcp.f32 %v845_v38 }
 0x395   :  { %5501 = vrcp.f32 %v851_v40 }
 0x397   :  { %v397_v41 = vpop.permute.xlu0 %396  ;;  %v400_v46 = vpop.permute.xlu1 %399 }
 0x398   :  { %v408_v23 = vpack.c.bf16 %v397_v41, %v397_v41  ;;  %v409_v48 = vpack.c.bf16 %v400_v46, %v400_v46 }
 0x39a   :  { %v1157_v43 = vsel %vm879_vm2, %v408_v23, 0  ;;  %v1203_v44 = vsel %vm879_vm2, %v409_v48, 0 }
 0x39b   :  { %4946 = vmatpush3.bf16.msra.mxu0 %v1157_v43 }
 0x39c   :  { %4957 = vmatprep.subr.bf16.mxu0 %v5611_v3 }
 0x39e   :  { %4948 = vmatmul.mubr.msk.bf16.vlgmr.msra.gmra.mxu0 %vm779_vm3, %v874_v45 }
 0x39f   :  { %4973 = vmatprep.mubr.msk.bf16.mxu0 %vm5612_vm0, %v5611_v3  ;;  %4958 = vmatpush3.bf16.msra.mxu0 %v5335_v60 }
 0x3a0   :  { %4959 = vmatprep.subr.bf16.mxu0 %v5611_v3 }
 0x3a1   :  { %v5500_v47 = vpop.eup %5499 }
 0x3a2   :  { %v865_v49 = vmul.f32 %v5500_v47, %v5919_v5  ;;  %v5502_v51 = vpop.eup %5501 }
 0x3a3   :  { %v867_v53 = vmul.f32 %v5502_v51, %v5923_v6  ;;  %4960 = vmatpush3.bf16.msra.mxu0 %v5336_v61 }
 0x3a4   :  { %v873_v50 = vpack.c.bf16 %v865_v49, %v865_v49  ;;  %4961 = vmatprep.subr.bf16.mxu0 %v5611_v3 }
 0x3a5   :  { %v875_v54 = vpack.c.bf16 %v867_v53, %v867_v53 }
 0x3a6   :  { %4942 = vmatmul.mubr.msk.bf16.vlgmr.msra.gmra.mxu1 %vm779_vm3, %v873_v50 }
 0x3a7   :  { %4952 = vmatpush3.bf16.msra.mxu1 %v1203_v44  ;;  %4953 = vmatprep.mubr.msk.bf16.mxu1 %vm5612_vm0, %v5611_v3 }
 0x3a8   :  { %4977 = vmatprep.subr.bf16.mxu1 %v5611_v3  ;;  %4962 = vmatpush3.bf16.msra.mxu0 %v5337_v62 }
 0x3a9   :  { %4963 = vmatprep.subr.bf16.mxu0 %v5611_v3 }
 0x3ac   :  { %4964 = vmatpush3.bf16.msra.mxu0 %v5338_v17 }
 0x3ad   :  { %4965 = vmatprep.subr.bf16.mxu0 %v5611_v3 }
 0x3ae   :  { %4954 = vmatmul.mubr.msk.bf16.vlgmr.msra.gmra.mxu1 %vm779_vm3, %v875_v54 }
 0x3af   :  { %4993 = vmatprep.mubr.msk.bf16.mxu1 %vm5612_vm0, %v5611_v3 }
 0x3b0   :  { %4966 = vmatpush3.bf16.msra.mxu0 %v5339_v18 }
 0x3b1   :  { %4967 = vmatprep.subr.bf16.mxu0 %v5611_v3 }
 0x3b4   :  { %4968 = vmatpush3.bf16.msra.mxu0 %v5340_v20 }
 0x3b5   :  { %4969 = vmatprep.subr.bf16.mxu0 %v5611_v3 }
 0x3b8   :  { %4970 = vmatpush3.bf16.msra.mxu0 %v5341_v24  ;;  %v5354_v24 = vld [vmem:[%s6843_s6 + $0x40] ss:$8 sps:$4 sm:$0xff]  }
 0x3b9   :  { %4971 = vmatprep.subr.bf16.mxu0 %v5611_v3 }
 0x3bc   :  { %4972 = vmatpush3.bf16.msra.mxu0 %v5342_v28  ;;  %v5362_v28 = vld [vmem:[%s6842_s5 + $0x50] ss:$8 sps:$4 sm:$0xff]  }
 0x3c5   :  { %v5974_v55 = vpop.f32.mrf.mxu0 }
 0x3c7   :  { %v4913_v56 = vpop.f32.mrf.mxu0 }
 0x3c9   :  { %v920_v58 = vpop.f32.mrf.mxu0 }
 0x3cb   :  { %v4914_v59 = vpop.f32.mrf.mxu0 }
 0x421   :  { %v963_v63 = vpop.f32.mrf.mxu1 }
 0x423   :  { %v4919_v0 = vpop.f32.mrf.mxu1 }
 0x425   :  { %v966_v1 = vpop.f32.mrf.mxu1 }
 0x427   :  { %v4920_v5 = vpop.f32.mrf.mxu1 }
 0x431   :  { %v1055_v11 = vpop.f32.mrf.mxu1 }
 0x432   :  { %v1009_v6 = vpop.f32.mrf.mxu0 }
 0x433   :  { %v4931_v4 = vpop.f32.mrf.mxu1 }
 0x434   :  { %v4925_v7 = vpop.f32.mrf.mxu0 }
 0x435   :  { %v1058_v8 = vpop.f32.mrf.mxu1  ;;  %v5345_v7 = vld [vmem:[%s6843_s6 + $0x74] ss:$8 sps:$4 sm:$0xff]  }
 0x436   :  { %v1012_v9 = vpop.f32.mrf.mxu0  ;;  %v5348_v8 = vld [vmem:[%s6843_s6 + $0x64] ss:$8 sps:$4 sm:$0xff]   ;;  %1633 = vmatprep.subr.bf16.mxu0 %v5345_v7 }
 0x437   :  { %v4932_v10 = vpop.f32.mrf.mxu1  ;;  %v5352_v9 = vld [vmem:[%s6842_s5 + $0x70] ss:$8 sps:$4 sm:$0xff]  }
 0x438   :  { %v4926_v12 = vpop.f32.mrf.mxu0  ;;  %v5346_v10 = vld [vmem:[%s6843_s6 + $0x60] ss:$8 sps:$4 sm:$0xff]   ;;  %4978 = vmatpush3.bf16.msra.mxu1 %v5352_v9 }
 0x439   :  { %v5351_v12 = vld [vmem:[%s6843_s6 + $0x54] ss:$8 sps:$4 sm:$0xff]   ;;  %4979 = vmatprep.subr.bf16.mxu1 %v5611_v3 }
 0x43a   :  { %v1101_v13 = vpop.f32.mrf.mxu0 }
 0x43c   :  { %v4937_v14 = vpop.f32.mrf.mxu0 }
 0x43e   :  { %v1104_v15 = vpop.f32.mrf.mxu0 }
 0x440   :  { %v4938_v16 = vpop.f32.mrf.mxu0 }
 0x45e   :  { %v1193_v19 = vpop.f32.mrf.mxu0 }
 0x45f   :  { %v5263_v21 = vpack.i.bf16 %v1193_v19, %v1009_v6  ;;  %v5584_v6 = vld [vmem:[%s6856_s20 + $0x8] sm:$0xff] }
 0x460   :  { %v4949_v22 = vpop.f32.mrf.mxu0 }
 0x461   :  { %5264 = vrot.lane.b32.xlu1 %v5263_v21, %s5613_s30  ;;  %v5356_v22 = vld [vmem:[%s6843_s6 + $0x44] ss:$8 sps:$4 sm:$0xff]  }
 0x462   :  { %v1196_v25 = vpop.f32.mrf.mxu0 }
 0x463   :  { %v5357_v25 = vld [vmem:[%s6842_s5 + $0x60] ss:$8 sps:$4 sm:$0xff]  }
 0x464   :  { %v4950_v26 = vpop.f32.mrf.mxu0  ;;  %4980 = vmatpush3.bf16.msra.mxu1 %v5357_v25 }
 0x465   :  { %4981 = vmatprep.subr.bf16.mxu1 %v5611_v3  ;;  %v5361_v26 = vld [vmem:[%s6843_s6 + $0x34] ss:$8 sps:$4 sm:$0xff]  }
 0x466   :  { %v1147_v27 = vpop.f32.mrf.mxu1 }
 0x467   :  { %v5258_v29 = vpack.i.bf16 %v1147_v27, %v963_v63  ;;  %v5583_v63 = vld [vmem:[%s6856_s20] sm:$0xff]  ;;  %v5359_v27 = vld [vmem:[%s6843_s6 + $0x30] ss:$8 sps:$4 sm:$0xff]  }
 0x468   :  { %v4943_v34 = vpop.f32.mrf.mxu1  ;;  %4982 = vmatpush3.bf16.msra.mxu1 %v5362_v28 }
 0x469   :  { %5259 = vrot.lane.b32.xlu0 %v5258_v29, %s5615_s17  ;;  %v5366_v29 = vld [vmem:[%s6843_s6 + $0x24] ss:$8 sps:$4 sm:$0xff]   ;;  %v5364_v34 = vld [vmem:[%s6843_s6 + $0x20] ss:$8 sps:$4 sm:$0xff]   ;;  %4983 = vmatprep.subr.bf16.mxu1 %v5611_v3 }
 0x46a   :  { %v1150_v35 = vpop.f32.mrf.mxu1 }
 0x46b   :  { %v5367_v35 = vld [vmem:[%s6842_s5 + $0x40] ss:$8 sps:$4 sm:$0xff]  }
 0x46c   :  { %v4944_v36 = vpop.f32.mrf.mxu1  ;;  %4984 = vmatpush3.bf16.msra.mxu1 %v5367_v35 }
 0x46d   :  { %v5371_v36 = vld [vmem:[%s6843_s6 + $0x14] ss:$8 sps:$4 sm:$0xff]   ;;  %4985 = vmatprep.subr.bf16.mxu1 %v5611_v3 }
 0x46e   :  { %v1239_v37 = vpop.f32.mrf.mxu1 }
 0x46f   :  { %v5268_v57 = vpack.i.bf16 %v1239_v37, %v1055_v11  ;;  %v5369_v37 = vld [vmem:[%s6843_s6 + $0x10] ss:$8 sps:$4 sm:$0xff]  }
 0x470   :  { %v4955_v38 = vpop.f32.mrf.mxu1 }
 0x471   :  { %5269 = vrot.lane.b32.xlu0 %v5268_v57, %s5614_s0  ;;  %v5372_v57 = vld [vmem:[%s6842_s5 + $0x30] ss:$8 sps:$4 sm:$0xff]   ;;  %v5376_v38 = vld [vmem:[%s6843_s6 + $0x4] ss:$8 sps:$4 sm:$0xff]  }
 0x472   :  { %v1242_v39 = vpop.f32.mrf.mxu1  ;;  %4986 = vmatpush3.bf16.msra.mxu1 %v5372_v57 }
 0x473   :  { %v5374_v39 = vld [vmem:[%s6843_s6] ss:$8 sps:$4 sm:$0xff]   ;;  %4987 = vmatprep.subr.bf16.mxu1 %v5611_v3 }
 0x474   :  { %v4956_v40 = vpop.f32.mrf.mxu1 }
 0x475   :  { %v5377_v40 = vld [vmem:[%s6842_s5 + $0x20] ss:$8 sps:$4 sm:$0xff]  }
 0x476   :  { %4988 = vmatpush3.bf16.msra.mxu1 %v5377_v40 }
 0x477   :  { %4989 = vmatprep.subr.bf16.mxu1 %v5611_v3 }
 0x4d3   :  { %v5265_v43 = vpop.permute.xlu1 %5264 }
 0x4d4   :  { %v5267_v47 = vunpack.i.h.bf16 %v5265_v43  ;;  %v5266_v48 = vunpack.i.l.bf16 %v5265_v43  ;;  %v5379_v43 = vld [vmem:[%s6842_s5 + $0x10] ss:$8 sps:$4 sm:$0xff]  }
 0x4d5   :  { %4990 = vmatpush3.bf16.msra.mxu1 %v5379_v43 }
 0x4d6   :  { %4991 = vmatprep.subr.bf16.mxu1 %v5611_v3 }
 0x4db   :  { %v5260_v41 = vpop.permute.xlu0 %5259 }
 0x4dc   :  { %v5262_v23 = vunpack.i.h.bf16 %v5260_v41  ;;  %v5261_v42 = vunpack.i.l.bf16 %v5260_v41  ;;  %v1534_v41 = vld [vmem:[%s6838_s1] sm:$0xff] }
 0x4de   :  { %v1257_v45 = vsel %vm410_vm1, %v5974_v55, %v5261_v42  ;;  %v1274_v46 = vsel %vm410_vm1, %v1101_v13, %v5262_v23  ;;  %v6019_v55 = vsub.s32 0, %v5799_v30  ;;  %v5349_v13 = vld [vmem:[%s6843_s6 + $0x50] ss:$8 sps:$4 sm:$0xff]   ;;  %v1535_v23 = vld [vmem:[%s6838_s1 + $0x8] sm:$0xff] }
 0x4df   :  { %v1259_v44 = vsel %vm1258_vm4, %v1257_v45, %v5266_v48  ;;  %v1275_v53 = vsel %vm1258_vm4, %v1274_v46, %v5267_v47  ;;  %v1536_v42 = vpack.c.bf16 %v1535_v23, %v1534_v41  ;;  %v5381_v45 = vld [vmem:[%s6842_s5] ss:$8 sps:$4 sm:$0xff]  }
 0x4e0   :  { %v1297_v59 = vrot.slane %v5806_v33, %v6019_v55  ;;  %v5343_v33 = vld [vmem:[%s6843_s6 + $0x70] ss:$8 sps:$4 sm:$0xff]   ;;  %4992 = vmatpush3.bf16.msra.mxu1 %v5381_v45 }
 0x4e1   :  { %4997 = vmatprep.subr.bf16.mxu1 %v5611_v3 }
 0x4e3   :  { %v5270_v49 = vpop.permute.xlu0 %5269 }
 0x4e4   :  { %v5272_v50 = vunpack.i.h.bf16 %v5270_v49  ;;  %v5271_v51 = vunpack.i.l.bf16 %v5270_v49 }
 0x4e6   :  { %v1261_v54 = vsel %vm1260_vm5, %v1259_v44, %v5271_v51  ;;  %v1276_v56 = vsel %vm1260_vm5, %v1275_v53, %v5272_v50  ;;  %v6129_v44 = vld [vmem:[%s6849_s12] sm:$0xff] }
 0x4e7   :  { %v1277_v58 = vpack.c.bf16 %v1276_v56, %v1261_v54  ;;  %v1415_v56 = vrot.slane %v6129_v44, %v6019_v55 }
 0x4e9   :  { %4974 = vmatmul.mubr.bf16.vlgmr.msra.gmra.mxu0 %v1277_v58  ;;  %v6135_v58 = vsub.s32 1, %v5799_v30 }
 0x4ea   :  { %1665 = vmatprep.mubr.bf16.mxu0 %v5610_v2  ;;  %1634 = vmatpush1.bf16.msra.mxu0 %v5343_v33 }
 0x4eb   :  { %1635 = vmatprep.subr.bf16.mxu0 %v5348_v8 }
 0x4ee   :  { %1636 = vmatpush1.bf16.msra.mxu0 %v5346_v10 }
 0x4ef   :  { %1637 = vmatprep.subr.bf16.mxu0 %v5351_v12 }
 0x4f2   :  { %1638 = vmatpush1.bf16.msra.mxu0 %v5349_v13 }
 0x4f3   :  { %1639 = vmatprep.subr.bf16.mxu0 %v5356_v22 }
 0x4f6   :  { %1640 = vmatpush1.bf16.msra.mxu0 %v5354_v24 }
 0x4f7   :  { %1641 = vmatprep.subr.bf16.mxu0 %v5361_v26 }
 0x4fa   :  { %1642 = vmatpush1.bf16.msra.mxu0 %v5359_v27 }
 0x4fb   :  { %1643 = vmatprep.subr.bf16.mxu0 %v5366_v29 }
 0x4fe   :  { %1644 = vmatpush1.bf16.msra.mxu0 %v5364_v34 }
 0x4ff   :  { %1645 = vmatprep.subr.bf16.mxu0 %v5371_v36 }
 0x502   :  { %1646 = vmatpush1.bf16.msra.mxu0 %v5369_v37 }
 0x503   :  { %1647 = vmatprep.subr.bf16.mxu0 %v5376_v38 }
 0x506   :  { %1648 = vmatpush1.bf16.msra.mxu0 %v5374_v39 }
 0x507   :  { %5021 = vmatprep.subr.bf16.mxu0 %v5611_v3 }
 0x509   :  { %1666 = vmatmul.mubr.bf16.vlgmr.msra.gmra.mxu0 %v1536_v42 }
 0x50a   :  { %5023 = vmatprep.mubr.msk.bf16.mxu0 %vm5612_vm0, %v5611_v3 }
 0x5a9   :  { %v1380_v60 = vpop.f32.mrf.mxu0 }
 0x5aa   :  { %v1381_v61 = vadd.f32 %v1380_v60, %v1297_v59 }
 0x5ab   :  { %v4975_v62 = vpop.f32.mrf.mxu0 }
 0x5ac   :  { %v1387_v0 = vadd.f32 %v5583_v63, %v1381_v61  ;;  %v1421_v62 = vrot.slane %v6129_v44, %v6135_v58 }
 0x5ad   :  { %v1383_v1 = vpop.f32.mrf.mxu0 }
 0x5ae   :  { %v1384_v5 = vadd.f32 %v1383_v1, %v1297_v59  ;;  %1389 = vadd.xlane.f32.xlu1 %v1387_v0 }
 0x5af   :  { %v4976_v11 = vpop.f32.mrf.mxu0 }
 0x5b0   :  { %v1388_v4 = vadd.f32 %v5584_v6, %v1384_v5  ;;  %v59_v11 = vld [vmem:[%s6850_s13] sm:$0x7]  ;;  %v6152_v6 = vsub.s32 2, %v5799_v30 }
 0x5b2   :  { %1391 = vadd.xlane.f32.xlu0 %v1388_v4  ;;  %v6156_v33 = vrot.slane %v59_v11, %v6152_v6 }
 0x5c9   :  { %v1667_v7 = vpop.f32.mrf.mxu0 }
 0x5cb   :  { %v1669_v9 = vpop.f32.mrf.mxu0 }
 0x5cc   :  { %v6159_v10 = vadd.f32 %v6156_v33, %v1669_v9 }
 0x5cd   :  { %v1671_v12 = vpop.f32.mrf.mxu0 }
 0x637   :  { %v1390_v14 = vpop.xlane.xlu1 %1389 }
 0x638   :  { %v1394_v15 = vmul.f32 0.0078125, %v1390_v14 }
 0x63a   :  { %v6051_v16 = vsub.f32 %v1387_v0, %v1394_v15 }
 0x63b   :  { %v1392_v17 = vpop.xlane.xlu0 %1391 }
 0x63c   :  { %v1395_v18 = vmul.f32 0.0078125, %v1392_v17  ;;  %v1398_v19 = vmul.f32 %v6051_v16, %v6051_v16 }
 0x63e   :  { %v6055_v20 = vsub.f32 %v1388_v4, %v1395_v18  ;;  %1400 = vadd.xlane.f32.xlu0 %v1398_v19  ;;  %v1679_v4 = vrot.slane %v59_v11, %v6135_v58  ;;  %v1444_v18 = vrot.slane %v59_v11, %v6019_v55 }
 0x640   :  { %v1399_v21 = vmul.f32 %v6055_v20, %v6055_v20  ;;  %v1680_v8 = vadd.f32 %v1679_v4, %v1667_v7  ;;  %v1681_v13 = vadd.f32 %v1679_v4, %v1671_v12 }
 0x642   :  { %1402 = vadd.xlane.f32.xlu1 %v1399_v21  ;;  %v1738_v14 = vpack.c.bf16 %v1680_v8, %v1680_v8 }
 0x644   :  { %v1778_v15 = vsel %vm410_vm1, %v1738_v14, 0 }
 0x654   :  { %1719 = vrot.lane.b32.xlu0 %v1680_v8, %s5614_s0 }
 0x6c7   :  { %v1401_v46 = vpop.xlane.xlu0 %1400 }
 0x6c8   :  { %v1404_v47 = vmul.f32 0.0078125, %v1401_v46 }
 0x6ca   :  { %v1406_v48 = vadd.f32 1e-05, %v1404_v47 }
 0x6cb   :  { %v1403_v49 = vpop.xlane.xlu1 %1402  ;;  %v1720_v19 = vpop.permute.xlu0 %1719 }
 0x6cc   :  { %5503 = vrsqrt.f32 %v1406_v48  ;;  %v1405_v50 = vmul.f32 0.0078125, %v1403_v49  ;;  %v1739_v22 = vpack.c.bf16 %v1720_v19, %v1720_v19 }
 0x6ce   :  { %v1407_v51 = vadd.f32 1e-05, %v1405_v50  ;;  %v1824_v29 = vsel %vm410_vm1, %v1739_v22, 0 }
 0x6d0   :  { %5505 = vrsqrt.f32 %v1407_v51 }
 0x6d9   :  { %v5504_v53 = vpop.eup %5503 }
 0x6da   :  { %v1410_v54 = vmul.f32 %v5504_v53, %v6051_v16  ;;  %v1742_v16 = vpack.c.bf16 %v1681_v13, %v1681_v13 }
 0x6dc   :  { %v1416_v61 = vmul.f32 %v1415_v56, %v1410_v54  ;;  %v1962_v17 = vsel %vm410_vm1, %v1742_v16, 0  ;;  %v1766_v54 = vpack.c.bf16 %v6159_v10, %v6159_v10 }
 0x6dd   :  { %v5506_v59 = vpop.eup %5505  ;;  %5022 = vmatpush3.bf16.xpose.msra.mxu0 %v1962_v17 }
 0x6de   :  { %v1411_v60 = vmul.f32 %v5506_v59, %v6055_v20  ;;  %v6140_v0 = vadd.f32 %v1421_v62, %v1416_v61  ;;  %5033 = vmatprep.subr.bf16.mxu0 %v5611_v3 }
 0x6e0   :  { %v1417_v63 = vmul.f32 %v1415_v56, %v1411_v60 }
 0x6e2   :  { %v6142_v1 = vadd.f32 %v1421_v62, %v1417_v63  ;;  %v2242_v62 = vsel %vm879_vm2, %v1766_v54, 0 }
 0x6e4   :  { %v1440_v5 = vpack.c.bf16 %v6142_v1, %v6140_v0 }
 0x6e6   :  { %4994 = vmatmul.mubr.bf16.vlgmr.msra.gmra.mxu1 %v1440_v5 }
 0x6e7   :  { %4999 = vmatprep.mubr.msk.bf16.mxu1 %vm5612_vm0, %v5611_v3  ;;  %4998 = vmatpush3.bf16.xpose.msra.mxu1 %v1778_v15 }
 0x6e8   :  { %5003 = vmatprep.subr.bf16.mxu1 %v5611_v3 }
 0x7a6   :  { %v1527_v20 = vpop.f32.mrf.mxu1 }
 0x7a7   :  { %v1528_v21 = vadd.f32 %v1527_v20, %v1444_v18 }
 0x7a8   :  { %v4995_v24 = vpop.f32.mrf.mxu1 }
 0x7a9   :  { %v1688_v25 = vmul.f32 0.17677669, %v1528_v21 }
 0x7aa   :  { %v1530_v26 = vpop.f32.mrf.mxu1 }
 0x7ab   :  { %v1710_v27 = vpack.c.bf16 %v1688_v25, %v1688_v25  ;;  %v1531_v28 = vadd.f32 %v1530_v26, %v1444_v18  ;;  %1691 = vrot.lane.b32.xlu1 %v1688_v25, %s5614_s0  ;;  %1694 = vrot.lane.b32.xlu0 %v1688_v25, %s5613_s30 }
 0x7ac   :  { %v4996_v34 = vpop.f32.mrf.mxu1 }
 0x7ad   :  { %v1689_v35 = vmul.f32 0.17677669, %v1531_v28  ;;  %5000 = vmatmul.mubr.msk.bf16.vlgmr.msra.gmra.mxu1 %vm410_vm1, %v1710_v27 }
 0x7ae   :  { %5004 = vmatpush3.bf16.xpose.msra.mxu1 %v1824_v29  ;;  %5005 = vmatprep.mubr.msk.bf16.mxu1 %vm5612_vm0, %v5611_v3 }
 0x7af   :  { %v1714_v36 = vpack.c.bf16 %v1689_v35, %v1689_v35  ;;  %1722 = vrot.lane.b32.xlu1 %v1680_v8, %s5613_s30  ;;  %1697 = vrot.lane.b32.xlu0 %v1688_v25, %s5615_s17 }
 0x7b0   :  { %5009 = vmatprep.subr.bf16.mxu1 %v5611_v3 }
 0x7b1   :  { %5024 = vmatmul.mubr.msk.bf16.vlgmr.msra.gmra.mxu0 %vm410_vm1, %v1714_v36 }
 0x7b2   :  { %5035 = vmatprep.mubr.msk.bf16.mxu0 %vm5612_vm0, %v5611_v3 }
 0x7b3   :  { %1725 = vrot.lane.b32.xlu1 %v1680_v8, %s5615_s17  ;;  %1732 = vrot.lane.b32.xlu0 %v1681_v13, %s5613_s30 }
 0x7b7   :  { %1735 = vrot.lane.b32.xlu0 %v1681_v13, %s5615_s17  ;;  %1729 = vrot.lane.b32.xlu1 %v1681_v13, %s5614_s0  ;;  %v6219_v13 = vpop.f32.mrf.mxu0 }
 0x7bb   :  { %1707 = vrot.lane.b32.xlu0 %v1689_v35, %s5615_s17  ;;  %1701 = vrot.lane.b32.xlu1 %v1689_v35, %s5614_s0 }
 0x7bf   :  { %1704 = vrot.lane.b32.xlu1 %v1689_v35, %s5613_s30 }
 0x81d   :  { %v1692_v37 = vpop.permute.xlu1 %1691  ;;  %v1695_v57 = vpop.permute.xlu0 %1694 }
 0x81e   :  { %v1711_v38 = vpack.c.bf16 %v1692_v37, %v1692_v37  ;;  %v1712_v49 = vpack.c.bf16 %v1695_v57, %v1695_v57 }
 0x820   :  { %5006 = vmatmul.mubr.msk.bf16.vlgmr.msra.gmra.mxu1 %vm410_vm1, %v1711_v38 }
 0x821   :  { %v1723_v39 = vpop.permute.xlu1 %1722  ;;  %v1698_v40 = vpop.permute.xlu0 %1697  ;;  %5011 = vmatprep.mubr.msk.bf16.mxu1 %vm5612_vm0, %v5611_v3 }
 0x822   :  { %v1740_v41 = vpack.c.bf16 %v1723_v39, %v1723_v39  ;;  %v1713_v59 = vpack.c.bf16 %v1698_v40, %v1698_v40 }
 0x824   :  { %v1870_v23 = vsel %vm410_vm1, %v1740_v41, 0 }
 0x825   :  { %v1726_v42 = vpop.permute.xlu1 %1725  ;;  %5010 = vmatpush3.bf16.xpose.msra.mxu1 %v1870_v23  ;;  %v1733_v43 = vpop.permute.xlu0 %1732 }
 0x826   :  { %v1744_v45 = vpack.c.bf16 %v1733_v43, %v1733_v43  ;;  %5015 = vmatprep.subr.bf16.mxu1 %v5611_v3  ;;  %v1741_v46 = vpack.c.bf16 %v1726_v42, %v1726_v42 }
 0x828   :  { %v2054_v47 = vsel %vm410_vm1, %v1744_v45, 0  ;;  %v1916_v50 = vsel %vm410_vm1, %v1741_v46, 0 }
 0x829   :  { %v1730_v48 = vpop.permute.xlu1 %1729  ;;  %5034 = vmatpush3.bf16.xpose.msra.mxu0 %v2054_v47  ;;  %v1736_v63 = vpop.permute.xlu0 %1735 }
 0x82a   :  { %5045 = vmatprep.subr.bf16.mxu0 %v5611_v3  ;;  %v1743_v53 = vpack.c.bf16 %v1730_v48, %v1730_v48  ;;  %v1745_v5 = vpack.c.bf16 %v1736_v63, %v1736_v63 }
 0x82c   :  { %5012 = vmatmul.mubr.msk.bf16.vlgmr.msra.gmra.mxu1 %vm410_vm1, %v1712_v49  ;;  %v2008_v61 = vsel %vm410_vm1, %v1743_v53, 0  ;;  %v2100_v4 = vsel %vm410_vm1, %v1745_v5, 0 }
 0x82d   :  { %5016 = vmatpush3.bf16.xpose.msra.mxu1 %v1916_v50  ;;  %v1702_v51 = vpop.permute.xlu1 %1701  ;;  %5017 = vmatprep.mubr.msk.bf16.mxu1 %vm5612_vm0, %v5611_v3  ;;  %v1708_v7 = vpop.permute.xlu0 %1707 }
 0x82e   :  { %5027 = vmatprep.subr.bf16.mxu1 %v5611_v3  ;;  %v1715_v11 = vpack.c.bf16 %v1702_v51, %v1702_v51  ;;  %v1717_v8 = vpack.c.bf16 %v1708_v7, %v1708_v7 }
 0x831   :  { %v1705_v56 = vpop.permute.xlu1 %1704 }
 0x832   :  { %v1716_v60 = vpack.c.bf16 %v1705_v56, %v1705_v56 }
 0x834   :  { %5018 = vmatmul.mubr.msk.bf16.vlgmr.msra.gmra.mxu1 %vm410_vm1, %v1713_v59  ;;  %5036 = vmatmul.mubr.msk.bf16.vlgmr.msra.gmra.mxu0 %vm410_vm1, %v1716_v60 }
 0x835   :  { %5046 = vmatpush3.bf16.msra.mxu0 %v2242_v62  ;;  %5028 = vmatpush3.bf16.xpose.msra.mxu1 %v2008_v61 }
 0x836   :  { %5029 = vmatprep.mubr.msk.bf16.mxu1 %vm5612_vm0, %v5611_v3  ;;  %5039 = vmatprep.subr.bf16.mxu1 %v5611_v3 }
 0x837   :  { %5047 = vmatprep.mubr.msk.bf16.mxu0 %vm5612_vm0, %v5611_v3  ;;  %5057 = vmatprep.subr.bf16.mxu0 %v5611_v3 }
 0x83c   :  { %5030 = vmatmul.mubr.msk.bf16.vlgmr.msra.gmra.mxu1 %vm410_vm1, %v1715_v11 }
 0x83d   :  { %5040 = vmatpush3.bf16.xpose.msra.mxu1 %v2100_v4  ;;  %5041 = vmatprep.mubr.msk.bf16.mxu1 %vm5612_vm0, %v5611_v3 }
 0x83e   :  { %5051 = vmatprep.subr.bf16.mxu1 %v5611_v3 }
 0x844   :  { %5042 = vmatmul.mubr.msk.bf16.vlgmr.msra.gmra.mxu1 %vm410_vm1, %v1717_v8 }
 0x845   :  { %5053 = vmatprep.mubr.msk.bf16.mxu1 %vm5612_vm0, %v5611_v3 }
 0x86d   :  { %v1814_v9 = vpop.f32.mrf.mxu1 }
 0x86e   :  { %v2142_v12 = vsel %vm779_vm3, %v1814_v9, -inf }
 0x86f   :  { %v5001_v14 = vpop.f32.mrf.mxu1  ;;  %2143 = vmax.xlane.f32.xlu1 %v2142_v12 }
 0x871   :  { %v1817_v15 = vpop.f32.mrf.mxu1  ;;  %v1998_v16 = vpop.f32.mrf.mxu0 }
 0x872   :  { %v2154_v35 = vsel %vm779_vm3, %v1998_v16, -inf }
 0x873   :  { %v5002_v17 = vpop.f32.mrf.mxu1  ;;  %v5025_v18 = vpop.f32.mrf.mxu0 }
 0x875   :  { %v2001_v19 = vpop.f32.mrf.mxu0 }
 0x877   :  { %v5026_v20 = vpop.f32.mrf.mxu0 }
 0x8e0   :  { %v1860_v21 = vpop.f32.mrf.mxu1 }
 0x8e1   :  { %v2145_v22 = vsel %vm779_vm3, %v1860_v21, -inf }
 0x8e2   :  { %v5007_v24 = vpop.f32.mrf.mxu1  ;;  %2146 = vmax.xlane.f32.xlu0 %v2145_v22 }
 0x8e4   :  { %v1863_v25 = vpop.f32.mrf.mxu1 }
 0x8e6   :  { %v5008_v26 = vpop.f32.mrf.mxu1 }
 0x8ec   :  { %v1906_v27 = vpop.f32.mrf.mxu1 }
 0x8ed   :  { %v2148_v28 = vsel %vm779_vm3, %v1906_v27, -inf }
 0x8ee   :  { %v5013_v29 = vpop.f32.mrf.mxu1  ;;  %2149 = vmax.xlane.f32.xlu0 %v2148_v28 }
 0x8ef   :  { %v6254_v29 = vadd.f32 %v6156_v33, %v6219_v13 }
 0x8f0   :  { %v1909_v34 = vpop.f32.mrf.mxu1 }
 0x8f2   :  { %v5014_v36 = vpop.f32.mrf.mxu1  ;;  %2155 = vmax.xlane.f32.xlu0 %v2154_v35 }
 0x8f4   :  { %v6224_v37 = vpop.f32.mrf.mxu1  ;;  %v2090_v57 = vpop.f32.mrf.mxu0 }
 0x8f5   :  { %v2151_v38 = vsel %vm779_vm3, %v6224_v37, -inf  ;;  %v2160_v39 = vsel %vm779_vm3, %v2090_v57, -inf }
 0x8f6   :  { %v5019_v40 = vpop.f32.mrf.mxu1  ;;  %2152 = vmax.xlane.f32.xlu1 %v2151_v38  ;;  %2161 = vmax.xlane.f32.xlu0 %v2160_v39  ;;  %v5037_v41 = vpop.f32.mrf.mxu0 }
 0x8f8   :  { %v1955_v23 = vpop.f32.mrf.mxu1  ;;  %v2144_v42 = vpop.xlane.xlu1 %2143 }
 0x8f9   :  { %v2166_v43 = vsub.f32 %v1814_v9, %v2144_v42  ;;  %v2093_v45 = vpop.f32.mrf.mxu0 }
 0x8fa   :  { %v5020_v46 = vpop.f32.mrf.mxu1 }
 0x8fb   :  { %v2174_v47 = vmul.f32 1.442695, %v2166_v43  ;;  %v5038_v48 = vpop.f32.mrf.mxu0 }
 0x8fc   :  { %v6229_v49 = vpop.f32.mrf.mxu1 }
 0x8fd   :  { %5507 = vpow2.f32 %v2174_v47  ;;  %v2157_v50 = vsel %vm779_vm3, %v6229_v49, -inf }
 0x8fe   :  { %2158 = vmax.xlane.f32.xlu1 %v2157_v50  ;;  %v5031_v51 = vpop.f32.mrf.mxu1 }
 0x900   :  { %v2047_v53 = vpop.f32.mrf.mxu1 }
 0x902   :  { %v5032_v54 = vpop.f32.mrf.mxu1 }
 0x904   :  { %v6233_v56 = vpop.f32.mrf.mxu1 }
 0x905   :  { %v2163_v59 = vsel %vm779_vm3, %v6233_v56, -inf }
 0x906   :  { %2164 = vmax.xlane.f32.xlu1 %v2163_v59  ;;  %v5043_v60 = vpop.f32.mrf.mxu1 }
 0x908   :  { %v2139_v61 = vpop.f32.mrf.mxu1 }
 0x90a   :  { %v5508_v62 = vpop.eup %5507  ;;  %v5044_v63 = vpop.f32.mrf.mxu1 }
 0x90b   :  { %v2190_v5 = vsel %vm779_vm3, %v5508_v62, 0.0 }
 0x90c   :  { %2191 = vadd.xlane.f32.xlu0 %v2190_v5 }
 0x917   :  { %1747 = vrot.lane.b32.xlu1 %v6159_v10, %s5614_s0 }
 0x96b   :  { %v2147_v11 = vpop.xlane.xlu0 %2146 }
 0x96c   :  { %v2167_v4 = vsub.f32 %v1860_v21, %v2147_v11 }
 0x96e   :  { %v2176_v7 = vmul.f32 1.442695, %v2167_v4 }
 0x970   :  { %5509 = vpow2.f32 %v2176_v7 }
 0x977   :  { %v2150_v8 = vpop.xlane.xlu0 %2149 }
 0x978   :  { %v2168_v18 = vsub.f32 %v1906_v27, %v2150_v8 }
 0x97a   :  { %v2178_v24 = vmul.f32 1.442695, %v2168_v18 }
 0x97b   :  { %v2156_v9 = vpop.xlane.xlu0 %2155 }
 0x97c   :  { %v2170_v12 = vsub.f32 %v1998_v16, %v2156_v9 }
 0x97d   :  { %v6240_v14 = vpop.eup %5509 }
 0x97e   :  { %v2182_v15 = vmul.f32 1.442695, %v2170_v12  ;;  %v2193_v17 = vsel %vm779_vm3, %v6240_v14, 0.0 }
 0x97f   :  { %2194 = vadd.xlane.f32.xlu1 %v2193_v17  ;;  %v2162_v19 = vpop.xlane.xlu0 %2161  ;;  %v2153_v21 = vpop.xlane.xlu1 %2152 }
 0x980   :  { %5511 = vpow2.f32 %v2182_v15  ;;  %v2172_v20 = vsub.f32 %v2090_v57, %v2162_v19  ;;  %v2169_v33 = vsub.f32 %v6224_v37, %v2153_v21 }
 0x982   :  { %v2186_v22 = vmul.f32 1.442695, %v2172_v20  ;;  %v2180_v41 = vmul.f32 1.442695, %v2169_v33 }
 0x984   :  { %5513 = vpow2.f32 %v2186_v22 }
 0x985   :  { %5515 = vpow2.f32 %v2178_v24 }
 0x987   :  { %v2159_v25 = vpop.xlane.xlu1 %2158 }
 0x988   :  { %v2171_v23 = vsub.f32 %v6229_v49, %v2159_v25 }
 0x98a   :  { %v2184_v45 = vmul.f32 1.442695, %v2171_v23 }
 0x98d   :  { %v6244_v26 = vpop.eup %5511 }
 0x98e   :  { %v2202_v16 = vsel %vm779_vm3, %v6244_v26, 0.0 }
 0x98f   :  { %v2165_v28 = vpop.xlane.xlu1 %2164  ;;  %2203 = vadd.xlane.f32.xlu0 %v2202_v16 }
 0x990   :  { %1753 = vrot.lane.b32.xlu1 %v6159_v10, %s5615_s17  ;;  %v2173_v37 = vsub.f32 %v6233_v56, %v2165_v28 }
 0x991   :  { %v6250_v27 = vpop.eup %5513 }
 0x992   :  { %v2208_v35 = vsel %vm779_vm3, %v6250_v27, 0.0  ;;  %v5516_v36 = vpop.eup %5515  ;;  %v2188_v49 = vmul.f32 1.442695, %v2173_v37 }
 0x993   :  { %v1748_v34 = vpop.permute.xlu1 %1747  ;;  %2209 = vadd.xlane.f32.xlu0 %v2208_v35  ;;  %v2196_v40 = vsel %vm779_vm3, %v5516_v36, 0.0 }
 0x994   :  { %v1767_v57 = vpack.c.bf16 %v1748_v34, %v1748_v34  ;;  %1757 = vrot.lane.b32.xlu1 %v6254_v29, %s5614_s0 }
 0x995   :  { %v2192_v38 = vpop.xlane.xlu0 %2191 }
 0x996   :  { %v2288_v39 = vsel %vm879_vm2, %v1767_v57, 0  ;;  %5517 = vrcp.f32 %v2192_v38 }
 0x997   :  { %5052 = vmatpush3.bf16.msra.mxu1 %v2288_v39  ;;  %2197 = vadd.xlane.f32.xlu0 %v2196_v40  ;;  %5519 = vpow2.f32 %v2180_v41 }
 0x998   :  { %5063 = vmatprep.subr.bf16.mxu1 %v5611_v3  ;;  %5521 = vpow2.f32 %v2184_v45 }
 0x999   :  { %5523 = vpow2.f32 %v2188_v49 }
 0x9a3   :  { %v5518_v13 = vpop.eup %5517 }
 0x9a4   :  { %v2222_v42 = vmul.f32 %v5518_v13, %v5508_v62  ;;  %v6270_v46 = vpop.eup %5519 }
 0x9a5   :  { %v2199_v47 = vsel %vm779_vm3, %v6270_v46, 0.0  ;;  %v6275_v48 = vpop.eup %5521 }
 0x9a6   :  { %v2230_v43 = vpack.c.bf16 %v2222_v42, %v2222_v42  ;;  %v2205_v50 = vsel %vm779_vm3, %v6275_v48, 0.0  ;;  %v6279_v51 = vpop.eup %5523 }
 0x9a8   :  { %5048 = vmatmul.mubr.msk.bf16.vlgmr.msra.gmra.mxu0 %vm779_vm3, %v2230_v43 }
 0x9a9   :  { %5059 = vmatprep.mubr.msk.bf16.mxu0 %vm5612_vm0, %v5611_v3 }
 0x9ad   :  { %1750 = vrot.lane.b32.xlu0 %v6159_v10, %s5613_s30  ;;  %v2211_v10 = vsel %vm779_vm3, %v6279_v51, 0.0 }
 0x9b8   :  { %2200 = vadd.xlane.f32.xlu1 %v2199_v47 }
 0x9bc   :  { %2206 = vadd.xlane.f32.xlu1 %v2205_v50  ;;  %v5383_v50 = vld [vmem:[%s6844_s7 + $0x38] sm:$0xff]  }
 0x9cc   :  { %2212 = vadd.xlane.f32.xlu0 %v2211_v10 }
 0x9cd   :  { %1760 = vrot.lane.b32.xlu1 %v6254_v29, %s5613_s30 }
 0x9e2   :  { %1763 = vrot.lane.b32.xlu0 %v6254_v29, %s5615_s17 }
 0xa08   :  { %v2195_v53 = vpop.xlane.xlu1 %2194 }
 0xa09   :  { %5525 = vrcp.f32 %v2195_v53 }
 0xa0c   :  { %v1754_v54 = vpop.permute.xlu1 %1753 }
 0xa0d   :  { %v1769_v59 = vpack.c.bf16 %v1754_v54, %v1754_v54 }
 0xa0f   :  { %v2380_v63 = vsel %vm879_vm2, %v1769_v59, 0 }
 0xa10   :  { %v1758_v22 = vpop.permute.xlu1 %1757 }
 0xa16   :  { %v5526_v56 = vpop.eup %5525 }
 0xa17   :  { %v2223_v60 = vmul.f32 %v5526_v56, %v6240_v14  ;;  %v1770_v14 = vpack.c.bf16 %v6254_v29, %v6254_v29 }
 0xa18   :  { %v2204_v61 = vpop.xlane.xlu0 %2203 }
 0xa19   :  { %v2231_v62 = vpack.c.bf16 %v2223_v60, %v2223_v60  ;;  %v2426_v18 = vsel %vm879_vm2, %v1770_v14, 0 }
 0xa1b   :  { %5054 = vmatmul.mubr.msk.bf16.vlgmr.msra.gmra.mxu1 %vm779_vm3, %v2231_v62 }
 0xa1c   :  { %5064 = vmatpush3.bf16.msra.mxu1 %v2380_v63  ;;  %5065 = vmatprep.mubr.msk.bf16.mxu1 %vm5612_vm0, %v5611_v3  ;;  %v2210_v5 = vpop.xlane.xlu0 %2209 }
 0xa1d   :  { %5075 = vmatprep.subr.bf16.mxu1 %v5611_v3 }
 0xa20   :  { %v2198_v11 = vpop.xlane.xlu0 %2197 }
 0xa21   :  { %5527 = vrcp.f32 %v2198_v11 }
 0xa22   :  { %5529 = vrcp.f32 %v2204_v61 }
 0xa23   :  { %5531 = vrcp.f32 %v2210_v5 }
 0xa24   :  { %v1751_v4 = vpop.permute.xlu0 %1750 }
 0xa25   :  { %v1768_v7 = vpack.c.bf16 %v1751_v4, %v1751_v4  ;;  %v5384_v4 = vld [vmem:[%s6844_s7 + $0x30] sm:$0xff]  }
 0xa27   :  { %v2334_v8 = vsel %vm879_vm2, %v1768_v7, 0  ;;  %v5385_v7 = vld [vmem:[%s6844_s7 + $0x28] sm:$0xff]  }
 0xa28   :  { %5058 = vmatpush3.bf16.msra.mxu0 %v2334_v8  ;;  %v5386_v8 = vld [vmem:[%s6844_s7 + $0x20] sm:$0xff]  }
 0xa29   :  { %5069 = vmatprep.subr.bf16.mxu0 %v5611_v3 }
 0xa2e   :  { %v5528_v9 = vpop.eup %5527 }
 0xa2f   :  { %v2224_v12 = vmul.f32 %v5528_v9, %v5516_v36  ;;  %v5530_v17 = vpop.eup %5529  ;;  %v1771_v36 = vpack.c.bf16 %v1758_v22, %v1758_v22  ;;  %v5388_v22 = vld [vmem:[%s6844_s7 + $0x10] sm:$0xff]  }
 0xa30   :  { %v2226_v19 = vmul.f32 %v5530_v17, %v6244_v26  ;;  %v5532_v25 = vpop.eup %5531 }
 0xa31   :  { %v2232_v15 = vpack.c.bf16 %v2224_v12, %v2224_v12  ;;  %v2228_v29 = vmul.f32 %v5532_v25, %v6250_v27  ;;  %v2472_v40 = vsel %vm879_vm2, %v1771_v36, 0  ;;  %v5389_v25 = vld [vmem:[%s6844_s7 + $0x8] sm:$0xff]  }
 0xa32   :  { %v2234_v20 = vpack.c.bf16 %v2226_v19, %v2226_v19 }
 0xa33   :  { %5060 = vmatmul.mubr.msk.bf16.vlgmr.msra.gmra.mxu0 %vm779_vm3, %v2232_v15  ;;  %v2236_v34 = vpack.c.bf16 %v2228_v29, %v2228_v29 }
 0xa34   :  { %5070 = vmatpush3.bf16.msra.mxu0 %v2426_v18  ;;  %5071 = vmatprep.mubr.msk.bf16.mxu0 %vm5612_vm0, %v5611_v3  ;;  %v5387_v18 = vld [vmem:[%s6844_s7 + $0x18] sm:$0xff]  }
 0xa35   :  { %5081 = vmatprep.subr.bf16.mxu0 %v5611_v3 }
 0xa3b   :  { %5072 = vmatmul.mubr.msk.bf16.vlgmr.msra.gmra.mxu0 %vm779_vm3, %v2234_v20 }
 0xa3c   :  { %5083 = vmatprep.mubr.msk.bf16.mxu0 %vm5612_vm0, %v5611_v3 }
 0xa41   :  { %v2201_v24 = vpop.xlane.xlu1 %2200 }
 0xa42   :  { %5533 = vrcp.f32 %v2201_v24 }
 0xa45   :  { %v2207_v21 = vpop.xlane.xlu1 %2206 }
 0xa46   :  { %5535 = vrcp.f32 %v2207_v21 }
 0xa49   :  { %v1761_v16 = vpop.permute.xlu1 %1760 }
 0xa4a   :  { %v1772_v28 = vpack.c.bf16 %v1761_v16, %v1761_v16 }
 0xa4c   :  { %v2518_v26 = vsel %vm879_vm2, %v1772_v28, 0 }
 0xa4d   :  { %5082 = vmatpush3.bf16.msra.mxu0 %v2518_v26 }
 0xa4e   :  { %5093 = vmatprep.subr.bf16.mxu0 %v5611_v3 }
 0xa4f   :  { %v5534_v35 = vpop.eup %5533 }
 0xa50   :  { %5084 = vmatmul.mubr.msk.bf16.vlgmr.msra.gmra.mxu0 %vm779_vm3, %v2236_v34  ;;  %v2225_v57 = vmul.f32 %v5534_v35, %v6270_v46  ;;  %v5390_v34 = vld [vmem:[%s6844_s7] sm:$0xff]  }
 0xa51   :  { %5109 = vmatprep.mubr.msk.bf16.mxu0 %vm5612_vm0, %v5611_v3  ;;  %5094 = vmatpush3.bf16.msra.mxu0 %v5383_v50 }
 0xa52   :  { %v2233_v38 = vpack.c.bf16 %v2225_v57, %v2225_v57  ;;  %5095 = vmatprep.subr.bf16.mxu0 %v5611_v3 }
 0xa53   :  { %v5536_v39 = vpop.eup %5535 }
 0xa54   :  { %5066 = vmatmul.mubr.msk.bf16.vlgmr.msra.gmra.mxu1 %vm779_vm3, %v2233_v38  ;;  %v2227_v33 = vmul.f32 %v5536_v39, %v6275_v48 }
 0xa55   :  { %5076 = vmatpush3.bf16.msra.mxu1 %v2472_v40  ;;  %5077 = vmatprep.mubr.msk.bf16.mxu1 %vm5612_vm0, %v5611_v3  ;;  %v2213_v27 = vpop.xlane.xlu0 %2212 }
 0xa56   :  { %5087 = vmatprep.subr.bf16.mxu1 %v5611_v3  ;;  %5537 = vrcp.f32 %v2213_v27  ;;  %v2235_v41 = vpack.c.bf16 %v2227_v33, %v2227_v33  ;;  %5096 = vmatpush3.bf16.msra.mxu0 %v5384_v4  ;;  %v5391_v4 = vld [vmem:[%s6845_s8 + $0x70] ss:$8 sps:$4 sm:$0xff]  }
 0xa57   :  { %5097 = vmatprep.subr.bf16.mxu0 %v5611_v3 }
 0xa59   :  { %v1764_v13 = vpop.permute.xlu0 %1763 }
 0xa5a   :  { %v1773_v23 = vpack.c.bf16 %v1764_v13, %v1764_v13  ;;  %5098 = vmatpush3.bf16.msra.mxu0 %v5385_v7  ;;  %v5393_v7 = vld [vmem:[%s6845_s8 + $0x74] ss:$8 sps:$4 sm:$0xff]  }
 0xa5b   :  { %5099 = vmatprep.subr.bf16.mxu0 %v5611_v3 }
 0xa5c   :  { %5078 = vmatmul.mubr.msk.bf16.vlgmr.msra.gmra.mxu1 %vm779_vm3, %v2235_v41  ;;  %v2564_v42 = vsel %vm879_vm2, %v1773_v23, 0 }
 0xa5d   :  { %5089 = vmatprep.mubr.msk.bf16.mxu1 %vm5612_vm0, %v5611_v3  ;;  %5088 = vmatpush3.bf16.msra.mxu1 %v2564_v42 }
 0xa5e   :  { %5113 = vmatprep.subr.bf16.mxu1 %v5611_v3  ;;  %5100 = vmatpush3.bf16.msra.mxu0 %v5386_v8  ;;  %v5396_v8 = vld [vmem:[%s6845_s8 + $0x64] ss:$8 sps:$4 sm:$0xff]  }
 0xa5f   :  { %5101 = vmatprep.subr.bf16.mxu0 %v5611_v3 }
 0xa62   :  { %5102 = vmatpush3.bf16.msra.mxu0 %v5387_v18 }
 0xa63   :  { %v5538_v43 = vpop.eup %5537  ;;  %5103 = vmatprep.subr.bf16.mxu0 %v5611_v3 }
 0xa64   :  { %v2229_v45 = vmul.f32 %v5538_v43, %v6279_v51 }
 0xa66   :  { %v2237_v46 = vpack.c.bf16 %v2229_v45, %v2229_v45  ;;  %5104 = vmatpush3.bf16.msra.mxu0 %v5388_v22 }
 0xa67   :  { %5105 = vmatprep.subr.bf16.mxu0 %v5611_v3 }
 0xa68   :  { %v6325_v37 = vpop.f32.mrf.mxu0  ;;  %5090 = vmatmul.mubr.msk.bf16.vlgmr.msra.gmra.mxu1 %vm779_vm3, %v2237_v46 }
 0xa69   :  { %5129 = vmatprep.mubr.msk.bf16.mxu1 %vm5612_vm0, %v5611_v3 }
 0xa6a   :  { %v5049_v47 = vpop.f32.mrf.mxu0  ;;  %5106 = vmatpush3.bf16.msra.mxu0 %v5389_v25 }
 0xa6b   :  { %5107 = vmatprep.subr.bf16.mxu0 %v5611_v3 }
 0xa6c   :  { %v2281_v48 = vpop.f32.mrf.mxu0 }
 0xa6e   :  { %v5050_v49 = vpop.f32.mrf.mxu0  ;;  %5108 = vmatpush3.bf16.msra.mxu0 %v5390_v34  ;;  %v5408_v34 = vld [vmem:[%s6845_s8 + $0x20] ss:$8 sps:$4 sm:$0xff]  }
 0xa6f   :  { %2959 = vmatprep.subr.bf16.mxu0 %v5393_v7 }
 0xadb   :  { %v2324_v10 = vpop.f32.mrf.mxu1 }
 0xadd   :  { %v5055_v51 = vpop.f32.mrf.mxu1 }
 0xadf   :  { %v2327_v53 = vpop.f32.mrf.mxu1 }
 0xae1   :  { %v5056_v54 = vpop.f32.mrf.mxu1 }
 0xaf3   :  { %v2370_v56 = vpop.f32.mrf.mxu0 }
 0xaf5   :  { %v5061_v59 = vpop.f32.mrf.mxu0 }
 0xaf7   :  { %v2373_v60 = vpop.f32.mrf.mxu0 }
 0xaf9   :  { %v5062_v61 = vpop.f32.mrf.mxu0 }
 0xafb   :  { %v2462_v62 = vpop.f32.mrf.mxu0 }
 0xafd   :  { %v5073_v63 = vpop.f32.mrf.mxu0 }
 0xaff   :  { %v2465_v5 = vpop.f32.mrf.mxu0 }
 0xb01   :  { %v5074_v11 = vpop.f32.mrf.mxu0 }
 0xb10   :  { %v2554_v9 = vpop.f32.mrf.mxu0 }
 0xb11   :  { %v5278_v12 = vpack.i.bf16 %v2554_v9, %v2370_v56  ;;  %v5399_v9 = vld [vmem:[%s6845_s8 + $0x54] ss:$8 sps:$4 sm:$0xff]  }
 0xb12   :  { %v5085_v14 = vpop.f32.mrf.mxu0 }
 0xb13   :  { %5279 = vrot.lane.b32.xlu0 %v5278_v12, %s5613_s30  ;;  %v5397_v12 = vld [vmem:[%s6845_s8 + $0x50] ss:$8 sps:$4 sm:$0xff]   ;;  %v5402_v14 = vld [vmem:[%s6845_s8 + $0x44] ss:$8 sps:$4 sm:$0xff]  }
 0xb14   :  { %v2416_v15 = vpop.f32.mrf.mxu1  ;;  %v2557_v17 = vpop.f32.mrf.mxu0 }
 0xb16   :  { %v5067_v19 = vpop.f32.mrf.mxu1  ;;  %v5086_v20 = vpop.f32.mrf.mxu0 }
 0xb18   :  { %v2419_v24 = vpop.f32.mrf.mxu1 }
 0xb1a   :  { %v5068_v21 = vpop.f32.mrf.mxu1 }
 0xb1c   :  { %v2508_v16 = vpop.f32.mrf.mxu1 }
 0xb1d   :  { %v5273_v28 = vpack.i.bf16 %v2508_v16, %v2324_v10  ;;  %v5406_v16 = vld [vmem:[%s6845_s8 + $0x34] ss:$8 sps:$4 sm:$0xff]  }
 0xb1e   :  { %v5079_v29 = vpop.f32.mrf.mxu1 }
 0xb1f   :  { %5274 = vrot.lane.b32.xlu1 %v5273_v28, %s5615_s17  ;;  %v5404_v28 = vld [vmem:[%s6845_s8 + $0x30] ss:$8 sps:$4 sm:$0xff]   ;;  %v5407_v29 = vld [vmem:[%s6842_s5 + $0x64] ss:$8 sps:$4 sm:$0xff]  }
 0xb20   :  { %v2511_v26 = vpop.f32.mrf.mxu1 }
 0xb21   :  { %v5410_v26 = vld [vmem:[%s6845_s8 + $0x24] ss:$8 sps:$4 sm:$0xff]  }
 0xb22   :  { %v5080_v35 = vpop.f32.mrf.mxu1 }
 0xb23   :  { %v5411_v35 = vld [vmem:[%s6842_s5 + $0x54] ss:$8 sps:$4 sm:$0xff]  }
 0xb28   :  { %v2600_v36 = vpop.f32.mrf.mxu1 }
 0xb29   :  { %v5283_v57 = vpack.i.bf16 %v2600_v36, %v2416_v15  ;;  %v5400_v15 = vld [vmem:[%s6845_s8 + $0x40] ss:$8 sps:$4 sm:$0xff]   ;;  %v5412_v36 = vld [vmem:[%s6845_s8 + $0x10] ss:$8 sps:$4 sm:$0xff]  }
 0xb2a   :  { %v5091_v38 = vpop.f32.mrf.mxu1 }
 0xb2b   :  { %5284 = vrot.lane.b32.xlu1 %v5283_v57, %s5614_s0  ;;  %v5414_v57 = vld [vmem:[%s6845_s8 + $0x14] ss:$8 sps:$4 sm:$0xff]   ;;  %v5415_v38 = vld [vmem:[%s6842_s5 + $0x44] ss:$8 sps:$4 sm:$0xff]  }
 0xb2c   :  { %v2603_v39 = vpop.f32.mrf.mxu1 }
 0xb2d   :  { %v5418_v39 = vld [vmem:[%s6845_s8 + $0x4] ss:$8 sps:$4 sm:$0xff]  }
 0xb2e   :  { %v5092_v40 = vpop.f32.mrf.mxu1 }
 0xb2f   :  { %v5416_v40 = vld [vmem:[%s6845_s8] ss:$8 sps:$4 sm:$0xff]  }
 0xb85   :  { %v5280_v41 = vpop.permute.xlu0 %5279 }
 0xb86   :  { %v5282_v43 = vunpack.i.h.bf16 %v5280_v41  ;;  %v5281_v45 = vunpack.i.l.bf16 %v5280_v41 }
 0xb91   :  { %v5275_v27 = vpop.permute.xlu1 %5274 }
 0xb92   :  { %v5277_v33 = vunpack.i.h.bf16 %v5275_v27  ;;  %v5276_v13 = vunpack.i.l.bf16 %v5275_v27  ;;  %v5419_v27 = vld [vmem:[%s6842_s5 + $0x34] ss:$8 sps:$4 sm:$0xff]  }
 0xb94   :  { %v2618_v23 = vsel %vm410_vm1, %v6325_v37, %v5276_v13  ;;  %v2633_v42 = vsel %vm410_vm1, %v2462_v62, %v5277_v33  ;;  %v6375_v37 = vld [vmem:[%s6849_s12 + $0x8] sm:$0xff]  ;;  %v2860_v33 = vld [vmem:[%s6839_s2] sm:$0xff] }
 0xb95   :  { %v2619_v49 = vsel %vm1258_vm4, %v2618_v23, %v5281_v45  ;;  %v2634_v50 = vsel %vm1258_vm4, %v2633_v42, %v5282_v43  ;;  %v2656_v54 = vrot.slane %v6375_v37, %v6135_v58  ;;  %v2861_v13 = vld [vmem:[%s6839_s2 + $0x8] sm:$0xff]  ;;  %v5421_v42 = vld [vmem:[%s6842_s5 + $0x14] ss:$8 sps:$4 sm:$0xff]  }
 0xb96   :  { %v2862_v41 = vpack.c.bf16 %v2861_v13, %v2860_v33  ;;  %v5420_v23 = vld [vmem:[%s6842_s5 + $0x24] ss:$8 sps:$4 sm:$0xff]  }
 0xb97   :  { %v5422_v43 = vld [vmem:[%s6842_s5 + $0x4] ss:$8 sps:$4 sm:$0xff]  }
 0xb9d   :  { %v5285_v46 = vpop.permute.xlu1 %5284 }
 0xb9e   :  { %v5287_v47 = vunpack.i.h.bf16 %v5285_v46  ;;  %v5286_v48 = vunpack.i.l.bf16 %v5285_v46 }
 0xba0   :  { %v2620_v10 = vsel %vm1260_vm5, %v2619_v49, %v5286_v48  ;;  %v2635_v51 = vsel %vm1260_vm5, %v2634_v50, %v5287_v47 }
 0xba1   :  { %v2636_v53 = vpack.c.bf16 %v2635_v51, %v2620_v10 }
 0xba3   :  { %5110 = vmatmul.mubr.bf16.vlgmr.msra.gmra.mxu0 %v2636_v53  ;;  %v2773_v53 = vrot.slane %v6129_v44, %v6152_v6 }
 0xba4   :  { %2991 = vmatprep.mubr.bf16.mxu0 %v5610_v2  ;;  %2960 = vmatpush1.bf16.msra.mxu0 %v5391_v4  ;;  %v60_v4 = vld [vmem:[%s6851_s14] sm:$0x7] }
 0xba5   :  { %2961 = vmatprep.subr.bf16.mxu0 %v5396_v8  ;;  %v3005_v7 = vrot.slane %v60_v4, %v6135_v58 }
 0xc63   :  { %v2739_v56 = vpop.f32.mrf.mxu0 }
 0xc64   :  { %v2740_v59 = vadd.f32 %v2739_v56, %v2656_v54 }
 0xc65   :  { %v5111_v60 = vpop.f32.mrf.mxu0 }
 0xc66   :  { %v2746_v61 = vadd.f32 %v2740_v59, %v6140_v0  ;;  %v5403_v0 = vld [vmem:[%s6842_s5 + $0x74] ss:$8 sps:$4 sm:$0xff]  }
 0xc67   :  { %v2742_v62 = vpop.f32.mrf.mxu0  ;;  %5114 = vmatpush3.bf16.msra.mxu1 %v5403_v0 }
 0xc68   :  { %v2743_v63 = vadd.f32 %v2742_v62, %v2656_v54  ;;  %2748 = vadd.xlane.f32.xlu0 %v2746_v61  ;;  %5115 = vmatprep.subr.bf16.mxu1 %v5611_v3  ;;  %v2778_v54 = vsub.s32 3, %v5799_v30 }
 0xc69   :  { %v5112_v5 = vpop.f32.mrf.mxu0 }
 0xc6a   :  { %v2747_v11 = vadd.f32 %v2743_v63, %v6142_v1  ;;  %v5394_v1 = vld [vmem:[%s6845_s8 + $0x60] ss:$8 sps:$4 sm:$0xff]  }
 0xc6b   :  { %2962 = vmatpush1.bf16.msra.mxu0 %v5394_v1  ;;  %5116 = vmatpush3.bf16.msra.mxu1 %v5407_v29 }
 0xc6c   :  { %2750 = vadd.xlane.f32.xlu1 %v2747_v11  ;;  %2963 = vmatprep.subr.bf16.mxu0 %v5399_v9 }
 0xc6d   :  { %5117 = vmatprep.subr.bf16.mxu1 %v5611_v3 }
 0xc6f   :  { %2964 = vmatpush1.bf16.msra.mxu0 %v5397_v12  ;;  %5118 = vmatpush3.bf16.msra.mxu1 %v5411_v35 }
 0xc70   :  { %2965 = vmatprep.subr.bf16.mxu0 %v5402_v14  ;;  %5119 = vmatprep.subr.bf16.mxu1 %v5611_v3 }
 0xc73   :  { %2966 = vmatpush1.bf16.msra.mxu0 %v5400_v15  ;;  %5120 = vmatpush3.bf16.msra.mxu1 %v5415_v38 }
 0xc74   :  { %2967 = vmatprep.subr.bf16.mxu0 %v5406_v16  ;;  %5121 = vmatprep.subr.bf16.mxu1 %v5611_v3 }
 0xc77   :  { %2968 = vmatpush1.bf16.msra.mxu0 %v5404_v28  ;;  %5122 = vmatpush3.bf16.msra.mxu1 %v5419_v27 }
 0xc78   :  { %2969 = vmatprep.subr.bf16.mxu0 %v5410_v26  ;;  %5123 = vmatprep.subr.bf16.mxu1 %v5611_v3 }
 0xc7b   :  { %2970 = vmatpush1.bf16.msra.mxu0 %v5408_v34  ;;  %5124 = vmatpush3.bf16.msra.mxu1 %v5420_v23 }
 0xc7c   :  { %2971 = vmatprep.subr.bf16.mxu0 %v5414_v57  ;;  %5125 = vmatprep.subr.bf16.mxu1 %v5611_v3 }
 0xc7f   :  { %2972 = vmatpush1.bf16.msra.mxu0 %v5412_v36  ;;  %5126 = vmatpush3.bf16.msra.mxu1 %v5421_v42 }
 0xc80   :  { %2973 = vmatprep.subr.bf16.mxu0 %v5418_v39  ;;  %5127 = vmatprep.subr.bf16.mxu1 %v5611_v3 }
 0xc83   :  { %2974 = vmatpush1.bf16.msra.mxu0 %v5416_v40  ;;  %5128 = vmatpush3.bf16.msra.mxu1 %v5422_v43 }
 0xc84   :  { %5157 = vmatprep.subr.bf16.mxu0 %v5611_v3  ;;  %5133 = vmatprep.subr.bf16.mxu1 %v5611_v3 }
 0xc86   :  { %2992 = vmatmul.mubr.bf16.vlgmr.msra.gmra.mxu0 %v2862_v41 }
 0xc87   :  { %5159 = vmatprep.mubr.msk.bf16.mxu0 %vm5612_vm0, %v5611_v3 }
 0xcf1   :  { %v2749_v17 = vpop.xlane.xlu0 %2748 }
 0xcf2   :  { %v2752_v18 = vmul.f32 0.0078125, %v2749_v17 }
 0xcf4   :  { %v2754_v19 = vsub.f32 %v2746_v61, %v2752_v18  ;;  %v2779_v61 = vrot.slane %v6129_v44, %v2778_v54  ;;  %v6489_v44 = vrot.slane %v60_v4, %v6152_v6 }
 0xcf5   :  { %v2751_v20 = vpop.xlane.xlu1 %2750 }
 0xcf6   :  { %v2753_v22 = vmul.f32 0.0078125, %v2751_v20  ;;  %v2756_v24 = vmul.f32 %v2754_v19, %v2754_v19  ;;  %v2786_v20 = vrot.slane %v60_v4, %v6019_v55 }
 0xcf8   :  { %v2755_v21 = vsub.f32 %v2747_v11, %v2753_v22  ;;  %2758 = vadd.xlane.f32.xlu0 %v2756_v24 }
 0xcfa   :  { %v2757_v25 = vmul.f32 %v2755_v21, %v2755_v21 }
 0xcfc   :  { %2760 = vadd.xlane.f32.xlu0 %v2757_v25 }
 0xd46   :  { %v2993_v8 = vpop.f32.mrf.mxu0 }
 0xd47   :  { %v3006_v0 = vadd.f32 %v3005_v7, %v2993_v8 }
 0xd48   :  { %v2995_v1 = vpop.f32.mrf.mxu0 }
 0xd49   :  { %v6492_v9 = vadd.f32 %v6489_v44, %v2995_v1  ;;  %3045 = vrot.lane.b32.xlu1 %v3006_v0, %s5614_s0  ;;  %v3064_v15 = vpack.c.bf16 %v3006_v0, %v3006_v0 }
 0xd4a   :  { %v2997_v12 = vpop.f32.mrf.mxu0 }
 0xd4b   :  { %v3007_v14 = vadd.f32 %v3005_v7, %v2997_v12  ;;  %v3104_v18 = vsel %vm410_vm1, %v3064_v15, 0 }
 0xd4c   :  { %v6552_v15 = vpop.f32.mrf.mxu0 }
 0xd4d   :  { %3048 = vrot.lane.b32.xlu1 %v3006_v0, %s5613_s30  ;;  %v3068_v17 = vpack.c.bf16 %v3007_v14, %v3007_v14 }
 0xd81   :  { %v2759_v45 = vpop.xlane.xlu0 %2758 }
 0xd82   :  { %v2762_v46 = vmul.f32 0.0078125, %v2759_v45 }
 0xd84   :  { %v2764_v47 = vadd.f32 1e-05, %v2762_v46 }
 0xd85   :  { %v2761_v48 = vpop.xlane.xlu0 %2760 }
 0xd86   :  { %5539 = vrsqrt.f32 %v2764_v47  ;;  %v2763_v49 = vmul.f32 0.0078125, %v2761_v48 }
 0xd88   :  { %v2765_v50 = vadd.f32 1e-05, %v2763_v49 }
 0xd8a   :  { %5541 = vrsqrt.f32 %v2765_v50 }
 0xd93   :  { %v5540_v10 = vpop.eup %5539 }
 0xd94   :  { %v2768_v51 = vmul.f32 %v5540_v10, %v2754_v19  ;;  %v3288_v19 = vsel %vm410_vm1, %v3068_v17, 0 }
 0xd95   :  { %5158 = vmatpush3.bf16.xpose.msra.mxu0 %v3288_v19 }
 0xd96   :  { %v2774_v60 = vmul.f32 %v2773_v53, %v2768_v51  ;;  %5169 = vmatprep.subr.bf16.mxu0 %v5611_v3 }
 0xd97   :  { %v5542_v56 = vpop.eup %5541 }
 0xd98   :  { %v2769_v59 = vmul.f32 %v5542_v56, %v2755_v21  ;;  %v6476_v63 = vadd.f32 %v2779_v61, %v2774_v60 }
 0xd9a   :  { %v2775_v62 = vmul.f32 %v2773_v53, %v2769_v59  ;;  %v3092_v53 = vpack.c.bf16 %v6492_v9, %v6492_v9 }
 0xd9c   :  { %v6478_v5 = vadd.f32 %v2779_v61, %v2775_v62  ;;  %v3568_v62 = vsel %vm879_vm2, %v3092_v53, 0 }
 0xd9e   :  { %v2782_v11 = vpack.c.bf16 %v6478_v5, %v6476_v63 }
 0xda0   :  { %5130 = vmatmul.mubr.bf16.vlgmr.msra.gmra.mxu1 %v2782_v11 }
 0xda1   :  { %5135 = vmatprep.mubr.msk.bf16.mxu1 %vm5612_vm0, %v5611_v3  ;;  %5134 = vmatpush3.bf16.xpose.msra.mxu1 %v3104_v18 }
 0xda2   :  { %5139 = vmatprep.subr.bf16.mxu1 %v5611_v3 }
 0xdbb   :  { %v3046_v24 = vpop.permute.xlu1 %3045 }
 0xdbc   :  { %v3065_v25 = vpack.c.bf16 %v3046_v24, %v3046_v24 }
 0xdbe   :  { %v3150_v35 = vsel %vm410_vm1, %v3065_v25, 0 }
 0xdbf   :  { %v3049_v39 = vpop.permute.xlu1 %3048 }
 0xdc0   :  { %v3066_v40 = vpack.c.bf16 %v3049_v39, %v3049_v39 }
 0xdc2   :  { %v3196_v41 = vsel %vm410_vm1, %v3066_v40, 0 }
 0xe60   :  { %v2853_v22 = vpop.f32.mrf.mxu1 }
 0xe61   :  { %v2854_v21 = vadd.f32 %v2853_v22, %v2786_v20 }
 0xe62   :  { %v5131_v16 = vpop.f32.mrf.mxu1 }
 0xe63   :  { %v3014_v28 = vmul.f32 0.17677669, %v2854_v21 }
 0xe64   :  { %v2856_v29 = vpop.f32.mrf.mxu1 }
 0xe65   :  { %v3036_v26 = vpack.c.bf16 %v3014_v28, %v3014_v28  ;;  %v2857_v34 = vadd.f32 %v2856_v29, %v2786_v20  ;;  %3017 = vrot.lane.b32.xlu0 %v3014_v28, %s5614_s0  ;;  %3020 = vrot.lane.b32.xlu1 %v3014_v28, %s5613_s30 }
 0xe66   :  { %v5132_v36 = vpop.f32.mrf.mxu1 }
 0xe67   :  { %v3015_v57 = vmul.f32 0.17677669, %v2857_v34  ;;  %5136 = vmatmul.mubr.msk.bf16.vlgmr.msra.gmra.mxu1 %vm410_vm1, %v3036_v26 }
 0xe68   :  { %5140 = vmatpush3.bf16.xpose.msra.mxu1 %v3150_v35  ;;  %5141 = vmatprep.mubr.msk.bf16.mxu1 %vm5612_vm0, %v5611_v3 }
 0xe69   :  { %v3040_v38 = vpack.c.bf16 %v3015_v57, %v3015_v57  ;;  %3051 = vrot.lane.b32.xlu0 %v3006_v0, %s5615_s17  ;;  %3023 = vrot.lane.b32.xlu1 %v3014_v28, %s5615_s17 }
 0xe6a   :  { %5145 = vmatprep.subr.bf16.mxu1 %v5611_v3 }
 0xe6b   :  { %5160 = vmatmul.mubr.msk.bf16.vlgmr.msra.gmra.mxu0 %vm410_vm1, %v3040_v38 }
 0xe6c   :  { %5171 = vmatprep.mubr.msk.bf16.mxu0 %vm5612_vm0, %v5611_v3 }
 0xe6d   :  { %3058 = vrot.lane.b32.xlu1 %v3007_v14, %s5613_s30  ;;  %3055 = vrot.lane.b32.xlu0 %v3007_v14, %s5614_s0 }
 0xe71   :  { %3061 = vrot.lane.b32.xlu1 %v3007_v14, %s5615_s17  ;;  %3027 = vrot.lane.b32.xlu0 %v3015_v57, %s5614_s0 }
 0xe75   :  { %3033 = vrot.lane.b32.xlu1 %v3015_v57, %s5615_s17  ;;  %3030 = vrot.lane.b32.xlu0 %v3015_v57, %s5613_s30 }
 0xed7   :  { %v3018_v27 = vpop.permute.xlu0 %3017  ;;  %v3021_v33 = vpop.permute.xlu1 %3020 }
 0xed8   :  { %v3037_v13 = vpack.c.bf16 %v3018_v27, %v3018_v27  ;;  %v3038_v47 = vpack.c.bf16 %v3021_v33, %v3021_v33 }
 0xeda   :  { %5142 = vmatmul.mubr.msk.bf16.vlgmr.msra.gmra.mxu1 %vm410_vm1, %v3037_v13 }
 0xedb   :  { %5146 = vmatpush3.bf16.xpose.msra.mxu1 %v3196_v41  ;;  %v3052_v23 = vpop.permute.xlu0 %3051  ;;  %v3024_v42 = vpop.permute.xlu1 %3023  ;;  %5147 = vmatprep.mubr.msk.bf16.mxu1 %vm5612_vm0, %v5611_v3 }
 0xedc   :  { %5151 = vmatprep.subr.bf16.mxu1 %v5611_v3  ;;  %v3067_v43 = vpack.c.bf16 %v3052_v23, %v3052_v23  ;;  %v3039_v59 = vpack.c.bf16 %v3024_v42, %v3024_v42 }
 0xede   :  { %v3242_v49 = vsel %vm410_vm1, %v3067_v43, 0 }
 0xedf   :  { %v3059_v45 = vpop.permute.xlu1 %3058  ;;  %v3056_v46 = vpop.permute.xlu0 %3055 }
 0xee0   :  { %v3070_v48 = vpack.c.bf16 %v3059_v45, %v3059_v45  ;;  %v3069_v51 = vpack.c.bf16 %v3056_v46, %v3056_v46 }
 0xee2   :  { %v3380_v50 = vsel %vm410_vm1, %v3070_v48, 0  ;;  %5148 = vmatmul.mubr.msk.bf16.vlgmr.msra.gmra.mxu1 %vm410_vm1, %v3038_v47  ;;  %v3334_v61 = vsel %vm410_vm1, %v3069_v51, 0 }
 0xee3   :  { %5152 = vmatpush3.bf16.xpose.msra.mxu1 %v3242_v49  ;;  %v3028_v10 = vpop.permute.xlu0 %3027  ;;  %5170 = vmatpush3.bf16.xpose.msra.mxu0 %v3380_v50  ;;  %v3062_v11 = vpop.permute.xlu1 %3061 }
 0xee4   :  { %5153 = vmatprep.mubr.msk.bf16.mxu1 %vm5612_vm0, %v5611_v3  ;;  %5163 = vmatprep.subr.bf16.mxu1 %v5611_v3  ;;  %v3071_v4 = vpack.c.bf16 %v3062_v11, %v3062_v11  ;;  %v3041_v7 = vpack.c.bf16 %v3028_v10, %v3028_v10 }
 0xee5   :  { %5181 = vmatprep.subr.bf16.mxu0 %v5611_v3 }
 0xee6   :  { %v3426_v8 = vsel %vm410_vm1, %v3071_v4, 0 }
 0xee7   :  { %v3031_v56 = vpop.permute.xlu0 %3030  ;;  %v3034_v0 = vpop.permute.xlu1 %3033 }
 0xee8   :  { %v3042_v60 = vpack.c.bf16 %v3031_v56, %v3031_v56  ;;  %v3043_v1 = vpack.c.bf16 %v3034_v0, %v3034_v0 }
 0xeea   :  { %5154 = vmatmul.mubr.msk.bf16.vlgmr.msra.gmra.mxu1 %vm410_vm1, %v3039_v59  ;;  %5172 = vmatmul.mubr.msk.bf16.vlgmr.msra.gmra.mxu0 %vm410_vm1, %v3042_v60 }
 0xeeb   :  { %5164 = vmatpush3.bf16.xpose.msra.mxu1 %v3334_v61  ;;  %5182 = vmatpush3.bf16.msra.mxu0 %v3568_v62 }
 0xeec   :  { %5165 = vmatprep.mubr.msk.bf16.mxu1 %vm5612_vm0, %v5611_v3  ;;  %5175 = vmatprep.subr.bf16.mxu1 %v5611_v3 }
 0xeed   :  { %5183 = vmatprep.mubr.msk.bf16.mxu0 %vm5612_vm0, %v5611_v3  ;;  %5193 = vmatprep.subr.bf16.mxu0 %v5611_v3 }
 0xef2   :  { %5166 = vmatmul.mubr.msk.bf16.vlgmr.msra.gmra.mxu1 %vm410_vm1, %v3041_v7 }
 0xef3   :  { %5176 = vmatpush3.bf16.xpose.msra.mxu1 %v3426_v8  ;;  %5177 = vmatprep.mubr.msk.bf16.mxu1 %vm5612_vm0, %v5611_v3 }
 0xef4   :  { %5187 = vmatprep.subr.bf16.mxu1 %v5611_v3 }
 0xefa   :  { %5178 = vmatmul.mubr.msk.bf16.vlgmr.msra.gmra.mxu1 %vm410_vm1, %v3043_v1 }
 0xefb   :  { %5189 = vmatprep.mubr.msk.bf16.mxu1 %vm5612_vm0, %v5611_v3 }
 0xf27   :  { %v3140_v12 = vpop.f32.mrf.mxu1 }
 0xf28   :  { %v3468_v14 = vsel %vm779_vm3, %v3140_v12, -inf }
 0xf29   :  { %v5137_v17 = vpop.f32.mrf.mxu1  ;;  %3469 = vmax.xlane.f32.xlu0 %v3468_v14 }
 0xf2b   :  { %v3143_v18 = vpop.f32.mrf.mxu1  ;;  %v3324_v19 = vpop.f32.mrf.mxu0 }
 0xf2c   :  { %v3480_v20 = vsel %vm779_vm3, %v3324_v19, -inf }
 0xf2d   :  { %v5138_v22 = vpop.f32.mrf.mxu1  ;;  %3481 = vmax.xlane.f32.xlu1 %v3480_v20  ;;  %v5161_v24 = vpop.f32.mrf.mxu0 }
 0xf2f   :  { %v3327_v21 = vpop.f32.mrf.mxu0 }
 0xf31   :  { %v5162_v25 = vpop.f32.mrf.mxu0 }
 0xf9a   :  { %v3186_v16 = vpop.f32.mrf.mxu1 }
 0xf9b   :  { %v3471_v28 = vsel %vm779_vm3, %v3186_v16, -inf }
 0xf9c   :  { %v5143_v29 = vpop.f32.mrf.mxu1  ;;  %3472 = vmax.xlane.f32.xlu1 %v3471_v28 }
 0xf9e   :  { %v3189_v26 = vpop.f32.mrf.mxu1 }
 0xfa0   :  { %v5144_v34 = vpop.f32.mrf.mxu1 }
 0xfa2   :  { %v3232_v35 = vpop.f32.mrf.mxu1 }
 0xfa3   :  { %v3474_v36 = vsel %vm779_vm3, %v3232_v35, -inf }
 0xfa4   :  { %v5149_v57 = vpop.f32.mrf.mxu1  ;;  %3475 = vmax.xlane.f32.xlu0 %v3474_v36 }
 0xfa6   :  { %v3235_v38 = vpop.f32.mrf.mxu1 }
 0xfa8   :  { %v5150_v39 = vpop.f32.mrf.mxu1 }
 0xfaa   :  { %v3278_v40 = vpop.f32.mrf.mxu1  ;;  %v3416_v27 = vpop.f32.mrf.mxu0 }
 0xfab   :  { %v3477_v33 = vsel %vm779_vm3, %v3278_v40, -inf  ;;  %v3486_v13 = vsel %vm779_vm3, %v3416_v27, -inf }
 0xfac   :  { %v5155_v41 = vpop.f32.mrf.mxu1  ;;  %3478 = vmax.xlane.f32.xlu0 %v3477_v33  ;;  %3487 = vmax.xlane.f32.xlu1 %v3486_v13  ;;  %v5173_v23 = vpop.f32.mrf.mxu0 }
 0xfae   :  { %v3281_v42 = vpop.f32.mrf.mxu1  ;;  %v3419_v43 = vpop.f32.mrf.mxu0 }
 0xfaf   :  { %v6593_v43 = vadd.f32 %v6489_v44, %v6552_v15 }
 0xfb0   :  { %v5156_v45 = vpop.f32.mrf.mxu1  ;;  %v5174_v46 = vpop.f32.mrf.mxu0 }
 0xfb2   :  { %v6559_v47 = vpop.f32.mrf.mxu1  ;;  %v3470_v61 = vpop.xlane.xlu0 %3469 }
 0xfb3   :  { %v3483_v48 = vsel %vm779_vm3, %v6559_v47, -inf  ;;  %v3492_v62 = vsub.f32 %v3140_v12, %v3470_v61 }
 0xfb4   :  { %3484 = vmax.xlane.f32.xlu0 %v3483_v48  ;;  %v5167_v49 = vpop.f32.mrf.mxu1 }
 0xfb5   :  { %v3500_v4 = vmul.f32 1.442695, %v3492_v62 }
 0xfb6   :  { %v3373_v50 = vpop.f32.mrf.mxu1  ;;  %v3482_v11 = vpop.xlane.xlu1 %3481 }
 0xfb7   :  { %v3496_v7 = vsub.f32 %v3324_v19, %v3482_v11  ;;  %5543 = vpow2.f32 %v3500_v4 }
 0xfb8   :  { %v5168_v10 = vpop.f32.mrf.mxu1 }
 0xfb9   :  { %v3508_v8 = vmul.f32 1.442695, %v3496_v7 }
 0xfba   :  { %v6563_v51 = vpop.f32.mrf.mxu1 }
 0xfbb   :  { %v3489_v53 = vsel %vm779_vm3, %v6563_v51, -inf  ;;  %5545 = vpow2.f32 %v3508_v8 }
 0xfbc   :  { %3490 = vmax.xlane.f32.xlu0 %v3489_v53  ;;  %v5179_v56 = vpop.f32.mrf.mxu1 }
 0xfbd   :  { %3076 = vrot.lane.b32.xlu1 %v6492_v9, %s5613_s30 }
 0xfbe   :  { %v3465_v59 = vpop.f32.mrf.mxu1 }
 0xfc0   :  { %v5180_v60 = vpop.f32.mrf.mxu1 }
 0xfc4   :  { %v5544_v0 = vpop.eup %5543 }
 0xfc5   :  { %v3516_v1 = vsel %vm779_vm3, %v5544_v0, 0.0 }
 0xfc8   :  { %v6572_v14 = vpop.eup %5545 }
 0xfc9   :  { %v3528_v17 = vsel %vm779_vm3, %v6572_v14, 0.0 }
 0xfd2   :  { %3073 = vrot.lane.b32.xlu0 %v6492_v9, %s5614_s0 }
 0xfe1   :  { %3517 = vadd.xlane.f32.xlu1 %v3516_v1 }
 0xfe5   :  { %3529 = vadd.xlane.f32.xlu1 %v3528_v17 }
0x1025   :  { %v3473_v12 = vpop.xlane.xlu1 %3472 }
0x1026   :  { %v3493_v18 = vsub.f32 %v3186_v16, %v3473_v12 }
0x1028   :  { %v3502_v20 = vmul.f32 1.442695, %v3493_v18 }
0x102a   :  { %5547 = vpow2.f32 %v3502_v20 }
0x102d   :  { %v3476_v19 = vpop.xlane.xlu0 %3475 }
0x102e   :  { %v3494_v22 = vsub.f32 %v3232_v35, %v3476_v19 }
0x1030   :  { %v3504_v57 = vmul.f32 1.442695, %v3494_v22 }
0x1035   :  { %v3479_v24 = vpop.xlane.xlu0 %3478  ;;  %v3488_v21 = vpop.xlane.xlu1 %3487 }
0x1036   :  { %v3495_v25 = vsub.f32 %v3278_v40, %v3479_v24  ;;  %v3498_v28 = vsub.f32 %v3416_v27, %v3488_v21 }
0x1037   :  { %v5548_v29 = vpop.eup %5547 }
0x1038   :  { %v3506_v26 = vmul.f32 1.442695, %v3495_v25  ;;  %v3512_v34 = vmul.f32 1.442695, %v3498_v28  ;;  %v3519_v36 = vsel %vm779_vm3, %v5548_v29, 0.0 }
0x1039   :  { %3520 = vadd.xlane.f32.xlu0 %v3519_v36  ;;  %v3077_v46 = vpop.permute.xlu1 %3076 }
0x103a   :  { %5549 = vpow2.f32 %v3506_v26  ;;  %v3094_v44 = vpack.c.bf16 %v3077_v46, %v3077_v46  ;;  %v3096_v26 = vpack.c.bf16 %v6593_v43, %v6593_v43 }
0x103b   :  { %5551 = vpow2.f32 %v3512_v34 }
0x103c   :  { %5553 = vpow2.f32 %v3504_v57  ;;  %v3660_v60 = vsel %vm879_vm2, %v3094_v44, 0  ;;  %v3752_v57 = vsel %vm879_vm2, %v3096_v26, 0  ;;  %v5429_v26 = vld [vmem:[%s6846_s9 + $0x8] sm:$0xff]  }
0x103d   :  { %v3485_v38 = vpop.xlane.xlu0 %3484 }
0x103e   :  { %v3497_v45 = vsub.f32 %v6559_v47, %v3485_v38 }
0x1040   :  { %v3510_v48 = vmul.f32 1.442695, %v3497_v45 }
0x1045   :  { %v3491_v16 = vpop.xlane.xlu0 %3490 }
0x1046   :  { %v3499_v49 = vsub.f32 %v6563_v51, %v3491_v16 }
0x1047   :  { %v6577_v39 = vpop.eup %5549 }
0x1048   :  { %v6579_v33 = vpop.eup %5551  ;;  %v3525_v35 = vsel %vm779_vm3, %v6577_v39, 0.0  ;;  %v3514_v10 = vmul.f32 1.442695, %v3499_v49 }
0x1049   :  { %v3074_v40 = vpop.permute.xlu0 %3073  ;;  %3526 = vadd.xlane.f32.xlu0 %v3525_v35  ;;  %v3534_v27 = vsel %vm779_vm3, %v6579_v33, 0.0  ;;  %v6585_v13 = vpop.eup %5553 }
0x104a   :  { %v3093_v41 = vpack.c.bf16 %v3074_v40, %v3074_v40  ;;  %3535 = vadd.xlane.f32.xlu1 %v3534_v27  ;;  %v3522_v42 = vsel %vm779_vm3, %v6585_v13, 0.0 }
0x104c   :  { %v3614_v23 = vsel %vm879_vm2, %v3093_v41, 0 }
0x104d   :  { %5188 = vmatpush3.bf16.msra.mxu1 %v3614_v23 }
0x104e   :  { %3523 = vadd.xlane.f32.xlu1 %v3522_v42  ;;  %5199 = vmatprep.subr.bf16.mxu1 %v5611_v3 }
0x105f   :  { %3083 = vrot.lane.b32.xlu1 %v6593_v43, %s5614_s0  ;;  %3079 = vrot.lane.b32.xlu0 %v6492_v9, %s5615_s17 }
0x106a   :  { %v3518_v50 = vpop.xlane.xlu1 %3517 }
0x106b   :  { %5555 = vrcp.f32 %v3518_v50 }
0x106c   :  { %5557 = vpow2.f32 %v3510_v48 }
0x106d   :  { %5559 = vpow2.f32 %v3514_v10 }
0x106e   :  { %v3530_v62 = vpop.xlane.xlu1 %3529 }
0x1078   :  { %v5556_v53 = vpop.eup %5555 }
0x1079   :  { %v3548_v15 = vmul.f32 %v5556_v53, %v5544_v0  ;;  %v6601_v56 = vpop.eup %5557 }
0x107a   :  { %v3531_v9 = vsel %vm779_vm3, %v6601_v56, 0.0  ;;  %v6607_v47 = vpop.eup %5559 }
0x107b   :  { %v3556_v59 = vpack.c.bf16 %v3548_v15, %v3548_v15  ;;  %v3537_v51 = vsel %vm779_vm3, %v6607_v47, 0.0 }
0x107d   :  { %5184 = vmatmul.mubr.msk.bf16.vlgmr.msra.gmra.mxu0 %vm779_vm3, %v3556_v59  ;;  %v5423_v59 = vld [vmem:[%s6846_s9 + $0x38] sm:$0xff]  }
0x107e   :  { %5194 = vmatpush3.bf16.msra.mxu0 %v3660_v60  ;;  %3532 = vadd.xlane.f32.xlu0 %v3531_v9  ;;  %v5424_v60 = vld [vmem:[%s6846_s9 + $0x30] sm:$0xff]  }
0x107f   :  { %5195 = vmatprep.mubr.msk.bf16.mxu0 %vm5612_vm0, %v5611_v3  ;;  %5205 = vmatprep.subr.bf16.mxu0 %v5611_v3 }
0x1083   :  { %3538 = vadd.xlane.f32.xlu1 %v3537_v51 }
0x1094   :  { %3089 = vrot.lane.b32.xlu1 %v6593_v43, %s5615_s17  ;;  %3086 = vrot.lane.b32.xlu0 %v6593_v43, %s5613_s30 }
0x10c2   :  { %v3521_v61 = vpop.xlane.xlu0 %3520 }
0x10c3   :  { %5561 = vrcp.f32 %v3521_v61 }
0x10d0   :  { %v5562_v11 = vpop.eup %5561 }
0x10d1   :  { %v3549_v4 = vmul.f32 %v5562_v11, %v5548_v29 }
0x10d2   :  { %v3527_v7 = vpop.xlane.xlu0 %3526 }
0x10d3   :  { %v3557_v8 = vpack.c.bf16 %v3549_v4, %v3549_v4  ;;  %5563 = vrcp.f32 %v3527_v7  ;;  %v3536_v0 = vpop.xlane.xlu1 %3535 }
0x10d5   :  { %5190 = vmatmul.mubr.msk.bf16.vlgmr.msra.gmra.mxu1 %vm779_vm3, %v3557_v8 }
0x10d6   :  { %v3080_v1 = vpop.permute.xlu0 %3079  ;;  %5201 = vmatprep.mubr.msk.bf16.mxu1 %vm5612_vm0, %v5611_v3 }
0x10d7   :  { %v3095_v17 = vpack.c.bf16 %v3080_v1, %v3080_v1  ;;  %v3524_v12 = vpop.xlane.xlu1 %3523 }
0x10d8   :  { %5565 = vrcp.f32 %v3524_v12 }
0x10d9   :  { %v3706_v18 = vsel %vm879_vm2, %v3095_v17, 0  ;;  %5567 = vrcp.f32 %v3530_v62 }
0x10da   :  { %5200 = vmatpush3.bf16.msra.mxu1 %v3706_v18  ;;  %5569 = vrcp.f32 %v3536_v0 }
0x10db   :  { %5211 = vmatprep.subr.bf16.mxu1 %v5611_v3  ;;  %v3084_v20 = vpop.permute.xlu1 %3083 }
0x10dc   :  { %v3097_v24 = vpack.c.bf16 %v3084_v20, %v3084_v20 }
0x10de   :  { %v3798_v28 = vsel %vm879_vm2, %v3097_v24, 0  ;;  %v5427_v24 = vld [vmem:[%s6846_s9 + $0x18] sm:$0xff]  }
0x10e0   :  { %v5564_v19 = vpop.eup %5563 }
0x10e1   :  { %v3551_v22 = vmul.f32 %v5564_v19, %v6577_v39 }
0x10e3   :  { %v3559_v21 = vpack.c.bf16 %v3551_v22, %v3551_v22  ;;  %v5426_v22 = vld [vmem:[%s6846_s9 + $0x20] sm:$0xff]  }
0x10e5   :  { %v5566_v25 = vpop.eup %5565  ;;  %5202 = vmatmul.mubr.msk.bf16.vlgmr.msra.gmra.mxu1 %vm779_vm3, %v3559_v21 }
0x10e6   :  { %5212 = vmatpush3.bf16.msra.mxu1 %v3798_v28  ;;  %v3550_v29 = vmul.f32 %v5566_v25, %v6585_v13  ;;  %5213 = vmatprep.mubr.msk.bf16.mxu1 %vm5612_vm0, %v5611_v3  ;;  %v5568_v36 = vpop.eup %5567  ;;  %v5428_v25 = vld [vmem:[%s6846_s9 + $0x10] sm:$0xff]  }
0x10e7   :  { %5223 = vmatprep.subr.bf16.mxu1 %v5611_v3  ;;  %v3552_v38 = vmul.f32 %v5568_v36, %v6572_v14  ;;  %v5570_v35 = vpop.eup %5569 }
0x10e8   :  { %v3558_v34 = vpack.c.bf16 %v3550_v29, %v3550_v29  ;;  %v3554_v41 = vmul.f32 %v5570_v35, %v6579_v33 }
0x10e9   :  { %v3560_v16 = vpack.c.bf16 %v3552_v38, %v3552_v38  ;;  %v5430_v38 = vld [vmem:[%s6846_s9] sm:$0xff]  }
0x10ea   :  { %5196 = vmatmul.mubr.msk.bf16.vlgmr.msra.gmra.mxu0 %vm779_vm3, %v3558_v34  ;;  %v3562_v23 = vpack.c.bf16 %v3554_v41, %v3554_v41 }
0x10eb   :  { %5206 = vmatpush3.bf16.msra.mxu0 %v3752_v57  ;;  %5207 = vmatprep.mubr.msk.bf16.mxu0 %vm5612_vm0, %v5611_v3 }
0x10ec   :  { %5217 = vmatprep.subr.bf16.mxu0 %v5611_v3 }
0x10f2   :  { %5208 = vmatmul.mubr.msk.bf16.vlgmr.msra.gmra.mxu0 %vm779_vm3, %v3560_v16 }
0x10f3   :  { %5219 = vmatprep.mubr.msk.bf16.mxu0 %vm5612_vm0, %v5611_v3 }
0x1107   :  { %v3533_v39 = vpop.xlane.xlu0 %3532 }
0x1108   :  { %5571 = vrcp.f32 %v3533_v39 }
0x110b   :  { %v3087_v40 = vpop.permute.xlu0 %3086 }
0x110c   :  { %v3098_v27 = vpack.c.bf16 %v3087_v40, %v3087_v40  ;;  %v3539_v13 = vpop.xlane.xlu1 %3538 }
0x110d   :  { %5573 = vrcp.f32 %v3539_v13 }
0x110e   :  { %v3844_v14 = vsel %vm879_vm2, %v3098_v27, 0 }
0x110f   :  { %5218 = vmatpush3.bf16.msra.mxu0 %v3844_v14 }
0x1110   :  { %5229 = vmatprep.subr.bf16.mxu0 %v5611_v3  ;;  %v3090_v42 = vpop.permute.xlu1 %3089 }
0x1111   :  { %v3099_v46 = vpack.c.bf16 %v3090_v42, %v3090_v42 }
0x1112   :  { %5220 = vmatmul.mubr.msk.bf16.vlgmr.msra.gmra.mxu0 %vm779_vm3, %v3562_v23 }
0x1113   :  { %5245 = vmatprep.mubr.msk.bf16.mxu0 %vm5612_vm0, %v5611_v3  ;;  %v3890_v33 = vsel %vm879_vm2, %v3099_v46, 0  ;;  %5230 = vmatpush3.bf16.msra.mxu0 %v5423_v59 }
0x1114   :  { %5231 = vmatprep.subr.bf16.mxu0 %v5611_v3 }
0x1115   :  { %v5572_v43 = vpop.eup %5571 }
0x1116   :  { %v3553_v45 = vmul.f32 %v5572_v43, %v6601_v56 }
0x1117   :  { %5232 = vmatpush3.bf16.msra.mxu0 %v5424_v60 }
0x1118   :  { %v3561_v48 = vpack.c.bf16 %v3553_v45, %v3553_v45  ;;  %5233 = vmatprep.subr.bf16.mxu0 %v5611_v3 }
0x111a   :  { %v5574_v49 = vpop.eup %5573  ;;  %5214 = vmatmul.mubr.msk.bf16.vlgmr.msra.gmra.mxu1 %vm779_vm3, %v3561_v48 }
0x111b   :  { %5224 = vmatpush3.bf16.msra.mxu1 %v3890_v33  ;;  %5225 = vmatprep.mubr.msk.bf16.mxu1 %vm5612_vm0, %v5611_v3  ;;  %v3555_v50 = vmul.f32 %v5574_v49, %v6607_v47 }
0x111d   :  { %v3563_v10 = vpack.c.bf16 %v3555_v50, %v3555_v50 }
0x1122   :  { %5226 = vmatmul.mubr.msk.bf16.vlgmr.msra.gmra.mxu1 %vm779_vm3, %v3563_v10 }
0x1123   :  { %4249 = vmatprep.mubr.bf16.mxu1 %v5610_v2  ;;  %v5425_v2 = vld [vmem:[%s6846_s9 + $0x28] sm:$0xff]  }
0x1124   :  { %5234 = vmatpush3.bf16.msra.mxu0 %v5425_v2 }
0x1125   :  { %5235 = vmatprep.subr.bf16.mxu0 %v5611_v3 }
0x1128   :  { %5236 = vmatpush3.bf16.msra.mxu0 %v5426_v22  ;;  %v5439_v22 = vld [vmem:[%s6847_s10 + $0x54] ss:$8 sps:$4 sm:$0xff]  }
0x1129   :  { %5237 = vmatprep.subr.bf16.mxu0 %v5611_v3 }
0x112c   :  { %5238 = vmatpush3.bf16.msra.mxu0 %v5427_v24  ;;  %v5437_v24 = vld [vmem:[%s6847_s10 + $0x50] ss:$8 sps:$4 sm:$0xff]  }
0x112d   :  { %5239 = vmatprep.subr.bf16.mxu0 %v5611_v3 }
0x1130   :  { %5240 = vmatpush3.bf16.msra.mxu0 %v5428_v25  ;;  %v5440_v25 = vld [vmem:[%s6847_s10 + $0x40] ss:$8 sps:$4 sm:$0xff]  }
0x1131   :  { %5241 = vmatprep.subr.bf16.mxu0 %v5611_v3 }
0x1134   :  { %5242 = vmatpush3.bf16.msra.mxu0 %v5429_v26  ;;  %v5448_v26 = vld [vmem:[%s6847_s10 + $0x24] ss:$8 sps:$4 sm:$0xff]  }
0x1135   :  { %5243 = vmatprep.subr.bf16.mxu0 %v5611_v3 }
0x1138   :  { %5244 = vmatpush3.bf16.msra.mxu0 %v5430_v38  ;;  %v5454_v38 = vld [vmem:[%s6847_s10 + $0x4] ss:$8 sps:$4 sm:$0xff]  }
0x113d   :  { %v6655_v53 = vpop.f32.mrf.mxu0 }
0x113f   :  { %v5185_v44 = vpop.f32.mrf.mxu0 }
0x1141   :  { %v3607_v15 = vpop.f32.mrf.mxu0 }
0x1143   :  { %v5186_v56 = vpop.f32.mrf.mxu0 }
0x1195   :  { %v3650_v9 = vpop.f32.mrf.mxu1 }
0x1197   :  { %v5191_v47 = vpop.f32.mrf.mxu1 }
0x1199   :  { %v3653_v51 = vpop.f32.mrf.mxu1 }
0x119b   :  { %v5192_v61 = vpop.f32.mrf.mxu1 }
0x11a5   :  { %v3742_v62 = vpop.f32.mrf.mxu1 }
0x11a7   :  { %v5203_v11 = vpop.f32.mrf.mxu1 }
0x11a9   :  { %v3745_v4 = vpop.f32.mrf.mxu1 }
0x11aa   :  { %v3696_v7 = vpop.f32.mrf.mxu0 }
0x11ab   :  { %v5204_v8 = vpop.f32.mrf.mxu1 }
0x11ac   :  { %v5197_v0 = vpop.f32.mrf.mxu0  ;;  %v5431_v8 = vld [vmem:[%s6847_s10 + $0x70] ss:$8 sps:$4 sm:$0xff]  }
0x11ae   :  { %v3699_v1 = vpop.f32.mrf.mxu0 }
0x11b0   :  { %v5198_v17 = vpop.f32.mrf.mxu0 }
0x11b2   :  { %v3788_v12 = vpop.f32.mrf.mxu0 }
0x11b4   :  { %v5209_v18 = vpop.f32.mrf.mxu0 }
0x11b6   :  { %v3791_v20 = vpop.f32.mrf.mxu0 }
0x11b7   :  { %v5436_v20 = vld [vmem:[%s6847_s10 + $0x64] ss:$8 sps:$4 sm:$0xff]  }
0x11b8   :  { %v5210_v19 = vpop.f32.mrf.mxu0 }
0x11b9   :  { %v5434_v19 = vld [vmem:[%s6847_s10 + $0x60] ss:$8 sps:$4 sm:$0xff]  }
0x11d2   :  { %v3880_v21 = vpop.f32.mrf.mxu0 }
0x11d3   :  { %v5293_v28 = vpack.i.bf16 %v3880_v21, %v3696_v7  ;;  %v5442_v21 = vld [vmem:[%s6847_s10 + $0x44] ss:$8 sps:$4 sm:$0xff]  }
0x11d4   :  { %v5221_v29 = vpop.f32.mrf.mxu0 }
0x11d5   :  { %5294 = vrot.lane.b32.xlu1 %v5293_v28, %s5613_s30  ;;  %v5445_v28 = vld [vmem:[%s6847_s10 + $0x34] ss:$8 sps:$4 sm:$0xff]   ;;  %v5443_v29 = vld [vmem:[%s6847_s10 + $0x30] ss:$8 sps:$4 sm:$0xff]  }
0x11d6   :  { %v3883_v34 = vpop.f32.mrf.mxu0 }
0x11d7   :  { %v5446_v34 = vld [vmem:[%s6847_s10 + $0x20] ss:$8 sps:$4 sm:$0xff]  }
0x11d8   :  { %v5222_v36 = vpop.f32.mrf.mxu0 }
0x11d9   :  { %v5449_v36 = vld [vmem:[%s6847_s10 + $0x10] ss:$8 sps:$4 sm:$0xff]  }
0x11da   :  { %v3834_v57 = vpop.f32.mrf.mxu1 }
0x11db   :  { %v5288_v16 = vpack.i.bf16 %v3834_v57, %v3650_v9  ;;  %v5451_v57 = vld [vmem:[%s6847_s10 + $0x14] ss:$8 sps:$4 sm:$0xff]  }
0x11dc   :  { %v5215_v39 = vpop.f32.mrf.mxu1 }
0x11dd   :  { %5289 = vrot.lane.b32.xlu0 %v5288_v16, %s5615_s17  ;;  %v5452_v16 = vld [vmem:[%s6847_s10] ss:$8 sps:$4 sm:$0xff]   ;;  %v5455_v39 = vld [vmem:[%s6848_s11 + $0x78] sm:$0xff]  }
0x11de   :  { %v3837_v35 = vpop.f32.mrf.mxu1  ;;  %4819 = vmatprep.subr.bf16.mxu0 %v5455_v39 }
0x11df   :  { %v5456_v35 = vld [vmem:[%s6848_s11 + $0x38] sm:$0xff]  }
0x11e0   :  { %v5216_v40 = vpop.f32.mrf.mxu1 }
0x11e1   :  { %v5457_v40 = vld [vmem:[%s6848_s11 + $0x70] sm:$0xff]  }
0x11e2   :  { %v3926_v27 = vpop.f32.mrf.mxu1 }
0x11e3   :  { %v5298_v13 = vpack.i.bf16 %v3926_v27, %v3742_v62  ;;  %v5458_v27 = vld [vmem:[%s6848_s11 + $0x30] sm:$0xff]  }
0x11e4   :  { %v5227_v41 = vpop.f32.mrf.mxu1 }
0x11e5   :  { %5299 = vrot.lane.b32.xlu0 %v5298_v13, %s5614_s0  ;;  %v5459_v13 = vld [vmem:[%s6848_s11 + $0x68] sm:$0xff]  }
0x11e6   :  { %v3929_v14 = vpop.f32.mrf.mxu1  ;;  %v5460_v41 = vld [vmem:[%s6848_s11 + $0x28] sm:$0xff]  }
0x11e7   :  { %v5461_v14 = vld [vmem:[%s6848_s11 + $0x60] sm:$0xff]  }
0x11e8   :  { %v5228_v23 = vpop.f32.mrf.mxu1 }
0x11e9   :  { %v5462_v23 = vld [vmem:[%s6848_s11 + $0x20] sm:$0xff]  }
0x1247   :  { %v5295_v45 = vpop.permute.xlu1 %5294 }
0x1248   :  { %v5297_v49 = vunpack.i.h.bf16 %v5295_v45  ;;  %v5296_v33 = vunpack.i.l.bf16 %v5295_v45 }
0x124f   :  { %v5290_v3 = vpop.permute.xlu0 %5289 }
0x1250   :  { %v5292_v42 = vunpack.i.h.bf16 %v5290_v3  ;;  %v5291_v43 = vunpack.i.l.bf16 %v5290_v3  ;;  %v5463_v3 = vld [vmem:[%s6848_s11 + $0x58] sm:$0xff]  }
0x1252   :  { %v3944_v46 = vsel %vm410_vm1, %v6655_v53, %v5291_v43  ;;  %v3959_v48 = vsel %vm410_vm1, %v3788_v12, %v5292_v42  ;;  %v3982_v53 = vrot.slane %v6375_v37, %v6152_v6  ;;  %v5433_v6 = vld [vmem:[%s6847_s10 + $0x74] ss:$8 sps:$4 sm:$0xff]  }
0x1253   :  { %v3945_v15 = vsel %vm1258_vm4, %v3944_v46, %v5296_v33  ;;  %v3960_v56 = vsel %vm1258_vm4, %v3959_v48, %v5297_v49  ;;  %4217 = vmatprep.subr.bf16.mxu1 %v5433_v6  ;;  %v5464_v42 = vld [vmem:[%s6848_s11 + $0x18] sm:$0xff]  }
0x1254   :  { %4218 = vmatpush1.bf16.msra.mxu1 %v5431_v8 }
0x1255   :  { %4219 = vmatprep.subr.bf16.mxu1 %v5436_v20 }
0x1257   :  { %v5300_v50 = vpop.permute.xlu0 %5299 }
0x1258   :  { %v5302_v10 = vunpack.i.h.bf16 %v5300_v50  ;;  %v5301_v44 = vunpack.i.l.bf16 %v5300_v50  ;;  %4220 = vmatpush1.bf16.msra.mxu1 %v5434_v19  ;;  %v6791_v50 = vld [vmem:[%s6849_s12] sm:$0xff] }
0x1259   :  { %4221 = vmatprep.subr.bf16.mxu1 %v5439_v22 }
0x125a   :  { %v3946_v59 = vsel %vm1260_vm5, %v3945_v15, %v5301_v44  ;;  %v3961_v60 = vsel %vm1260_vm5, %v3960_v56, %v5302_v10  ;;  %v4099_v10 = vrot.slane %v6791_v50, %v308_v31  ;;  %v4105_v15 = vrot.slane %v6791_v50, %v314_v32  ;;  %v5465_v31 = vld [vmem:[%s6848_s11 + $0x50] sm:$0xff]   ;;  %v5467_v32 = vld [vmem:[%s6848_s11 + $0x48] sm:$0xff]  }
0x125b   :  { %v3962_v2 = vpack.c.bf16 %v3961_v60, %v3946_v59 }
0x125c   :  { %4222 = vmatpush1.bf16.msra.mxu1 %v5437_v24 }
0x125d   :  { %5246 = vmatmul.mubr.bf16.vlgmr.msra.gmra.mxu0 %v3962_v2  ;;  %4223 = vmatprep.subr.bf16.mxu1 %v5442_v21 }
0x125e   :  { %4820 = vmatpush3.bf16.msra.mxu0 %v5456_v35 }
0x125f   :  { %4821 = vmatprep.subr.bf16.mxu0 %v5457_v40 }
0x1260   :  { %4224 = vmatpush1.bf16.msra.mxu1 %v5440_v25 }
0x1261   :  { %4225 = vmatprep.subr.bf16.mxu1 %v5445_v28 }
0x1262   :  { %4822 = vmatpush3.bf16.msra.mxu0 %v5458_v27 }
0x1263   :  { %4823 = vmatprep.subr.bf16.mxu0 %v5459_v13 }
0x1264   :  { %4226 = vmatpush1.bf16.msra.mxu1 %v5443_v29 }
0x1265   :  { %4227 = vmatprep.subr.bf16.mxu1 %v5448_v26 }
0x1266   :  { %4824 = vmatpush3.bf16.msra.mxu0 %v5460_v41 }
0x1267   :  { %4825 = vmatprep.subr.bf16.mxu0 %v5461_v14 }
0x1268   :  { %4228 = vmatpush1.bf16.msra.mxu1 %v5446_v34 }
0x1269   :  { %4229 = vmatprep.subr.bf16.mxu1 %v5451_v57 }
0x126a   :  { %4826 = vmatpush3.bf16.msra.mxu0 %v5462_v23 }
0x126b   :  { %4827 = vmatprep.subr.bf16.mxu0 %v5463_v3 }
0x126c   :  { %4230 = vmatpush1.bf16.msra.mxu1 %v5449_v36 }
0x126d   :  { %4231 = vmatprep.subr.bf16.mxu1 %v5454_v38 }
0x126e   :  { %4828 = vmatpush3.bf16.msra.mxu0 %v5464_v42 }
0x126f   :  { %4829 = vmatprep.subr.bf16.mxu0 %v5465_v31 }
0x1270   :  { %4232 = vmatpush1.bf16.msra.mxu1 %v5452_v16 }
0x131d   :  { %v4065_v9 = vpop.f32.mrf.mxu0 }
0x131e   :  { %v4066_v47 = vadd.f32 %v4065_v9, %v3982_v53 }
0x131f   :  { %v5247_v51 = vpop.f32.mrf.mxu0 }
0x1320   :  { %v4072_v61 = vadd.f32 %v4066_v47, %v6476_v63 }
0x1321   :  { %v4068_v62 = vpop.f32.mrf.mxu0 }
0x1322   :  { %v4069_v11 = vadd.f32 %v4068_v62, %v3982_v53  ;;  %4074 = vadd.xlane.f32.xlu1 %v4072_v61  ;;  %v5468_v62 = vld [vmem:[%s6848_s11 + $0x8] sm:$0xff]  }
0x1323   :  { %v5248_v4 = vpop.f32.mrf.mxu0 }
0x1324   :  { %v4073_v7 = vadd.f32 %v4069_v11, %v6478_v5  ;;  %v5469_v11 = vld [vmem:[%s6848_s11 + $0x40] sm:$0xff]  }
0x1325   :  { %v5470_v4 = vld [vmem:[%s6848_s11] sm:$0xff]  }
0x1326   :  { %4076 = vadd.xlane.f32.xlu0 %v4073_v7 }
0x13ab   :  { %v4075_v37 = vpop.xlane.xlu1 %4074 }
0x13ac   :  { %v4078_v0 = vmul.f32 0.0078125, %v4075_v37 }
0x13ae   :  { %v6708_v63 = vsub.f32 %v4072_v61, %v4078_v0  ;;  %v5466_v61 = vld [vmem:[%s6848_s11 + $0x10] sm:$0xff]  }
0x13af   :  { %v4077_v1 = vpop.xlane.xlu0 %4076  ;;  %4830 = vmatpush3.bf16.msra.mxu0 %v5466_v61 }
0x13b0   :  { %v4079_v17 = vmul.f32 0.0078125, %v4077_v1  ;;  %v4082_v5 = vmul.f32 %v6708_v63, %v6708_v63  ;;  %4831 = vmatprep.subr.bf16.mxu0 %v5467_v32 }
0x13b2   :  { %v6712_v12 = vsub.f32 %v4073_v7, %v4079_v17  ;;  %4084 = vadd.xlane.f32.xlu0 %v4082_v5  ;;  %v4125_v7 = vld [vmem:[%s6852_s15] sm:$0x3] }
0x13b3   :  { %4832 = vmatpush3.bf16.msra.mxu0 %v5468_v62  ;;  %v4134_v6 = vrot.slane %v4125_v7, %v6135_v58  ;;  %v4130_v37 = vrot.slane %v4125_v7, %v6019_v55  ;;  %v5587_v55 = vld [vmem:[%s6849_s12 + $0x8] sm:$0xff]  ;;  %s5616_s12 = smov [#allocation2]  }
0x13b4   :  { %v4083_v18 = vmul.f32 %v6712_v12, %v6712_v12  ;;  %4833 = vmatprep.subr.bf16.mxu0 %v5469_v11  ;;  %v4301_v58 = vrot.slane %v5587_v55, %v2778_v54  ;;  %s4482_s13 = sshll.u32 %s5616_s12, 4  ;;  %s4483_s13 = int_to_ptr.vmem [resolvable:$true] %s4482_s13 }
0x13b5   :  { %s5588_s24 = scalar_lea.vmem %s4483_s13, 256  ;;  %p5593_p1 = scmp.lt.s32.totalorder %s4483_s13, %s4483_s13 }
0x13b6   :  { %4086 = vadd.xlane.f32.xlu1 %v4083_v18  ;;  %p5589_p0 = scmp.ne.s32.totalorder %s4483_s13, %s5588_s24  ;;  %p5594_p2 = scmp.lt.s32.totalorder %s5588_s24, %s5588_s24 }
0x13b7   :  { %4834 = vmatpush3.bf16.msra.mxu0 %v5470_v4 }
0x13b8   :  { %p5595_p3 = por %p5594_p2, %p5593_p1 }
0x13ba   :  { %p5596_p4 = pnand %p5595_p3, %p5589_p0 }
0x143b   :  { %v4085_v43 = vpop.xlane.xlu0 %4084 }
0x143c   :  { %v4088_v45 = vmul.f32 0.0078125, %v4085_v43 }
0x143e   :  { %v4090_v46 = vadd.f32 1e-05, %v4088_v45 }
0x143f   :  { %v4087_v48 = vpop.xlane.xlu1 %4086 }
0x1440   :  { %5575 = vrsqrt.f32 %v4090_v46  ;;  %v4089_v49 = vmul.f32 0.0078125, %v4087_v48 }
0x1442   :  { %v4091_v33 = vadd.f32 1e-05, %v4089_v49 }
0x1444   :  { %5577 = vrsqrt.f32 %v4091_v33  ;;  %v4471_v33 = vsub.s32 7, %v5799_v30 }
0x144d   :  { %v5576_v44 = vpop.eup %5575 }
0x144e   :  { %v4094_v56 = vmul.f32 %v5576_v44, %v6708_v63 }
0x1450   :  { %v4100_v59 = vmul.f32 %v4099_v10, %v4094_v56  ;;  %v4472_v56 = vrot.slane %v6791_v50, %v4471_v33 }
0x1451   :  { %v5578_v60 = vpop.eup %5577 }
0x1452   :  { %v4095_v2 = vmul.f32 %v5578_v60, %v6712_v12  ;;  %v4106_v53 = vadd.f32 %v4105_v15, %v4100_v59 }
0x1454   :  { %v4101_v9 = vmul.f32 %v4099_v10, %v4095_v2  ;;  %v4466_v10 = vrot.slane %v6791_v50, %v320_v52 }
0x1456   :  { %v4107_v47 = vadd.f32 %v4105_v15, %v4101_v9 }
0x1458   :  { %v4108_v51 = vpack.c.bf16 %v4107_v47, %v4106_v53 }
0x145a   :  { %4250 = vmatmul.mubr.bf16.vlgmr.msra.gmra.mxu1 %v4108_v51 }
0x151a   :  { %v4251_v8 = vpop.f32.mrf.mxu1 }
0x151b   :  { %v4252_v5 = vadd.f32 %v4251_v8, %v4130_v37 }
0x151c   :  { %v4253_v0 = vpop.f32.mrf.mxu1 }
0x151d   :  { %v4254_v1 = vadd.f32 %v4253_v0, %v4134_v6  ;;  %v4260_v24 = vmax.f32 %v4252_v5, 0.0 }
0x151e   :  { %v4255_v63 = vpop.f32.mrf.mxu1 }
0x151f   :  { %v4256_v17 = vadd.f32 %v4255_v63, %v4130_v37  ;;  %v4261_v19 = vmax.f32 %v4254_v1, 0.0 }
0x1520   :  { %v4257_v12 = vpop.f32.mrf.mxu1 }
0x1521   :  { %v4258_v18 = vadd.f32 %v4257_v12, %v4134_v6  ;;  %v4262_v20 = vmax.f32 %v4256_v17, 0.0 }
0x1523   :  { %v4263_v22 = vmax.f32 %v4258_v18, 0.0  ;;  %v4264_v25 = vpack.c.bf16 %v4262_v20, %v4260_v24 }
0x1525   :  { %v4265_v21 = vpack.c.bf16 %v4263_v22, %v4261_v19 }
0x1527   :  { %4430 = vmatprep.mubr.bf16.mxu0 %v4265_v21 }
0x1528   :  { %4431 = vmatmul.mubr.bf16.vlgmr.msra.gmra.mxu0 %v4264_v25 }
0x15e8   :  { %v4835_v28 = vpop.f32.mrf.mxu0 }
0x15ea   :  { %v4836_v29 = vpop.f32.mrf.mxu0 }
0x15eb   :  { %v4837_v26 = vadd.f32 %v4836_v29, %v4835_v28 }
0x15ec   :  { %v4838_v34 = vpop.f32.mrf.mxu0 }
0x15ed   :  { %v4433_v36 = vadd.f32 %v4837_v26, %v4301_v58 }
0x15ee   :  { %v4839_v57 = vpop.f32.mrf.mxu0 }
0x15ef   :  { %v4840_v38 = vadd.f32 %v4839_v57, %v4838_v34  ;;  %v4439_v16 = vadd.f32 %v4433_v36, %v4106_v53 }
0x15f1   :  { %v4436_v39 = vadd.f32 %v4840_v38, %v4301_v58  ;;  %4441 = vadd.xlane.f32.xlu0 %v4439_v16 }
0x15f3   :  { %v4440_v35 = vadd.f32 %v4436_v39, %v4107_v47 }
0x15f5   :  { %4443 = vadd.xlane.f32.xlu1 %v4440_v35 }
0x167a   :  { %v4442_v40 = vpop.xlane.xlu0 %4441 }
0x167b   :  { %v4445_v27 = vmul.f32 0.0078125, %v4442_v40 }
0x167d   :  { %v4447_v13 = vsub.f32 %v4439_v16, %v4445_v27 }
0x167e   :  { %v4444_v41 = vpop.xlane.xlu1 %4443 }
0x167f   :  { %v4446_v14 = vmul.f32 0.0078125, %v4444_v41  ;;  %v4449_v23 = vmul.f32 %v4447_v13, %v4447_v13 }
0x1681   :  { %v4448_v3 = vsub.f32 %v4440_v35, %v4446_v14  ;;  %4451 = vadd.xlane.f32.xlu0 %v4449_v23 }
0x1683   :  { %v4450_v54 = vmul.f32 %v4448_v3, %v4448_v3 }
0x1685   :  { %4453 = vadd.xlane.f32.xlu1 %v4450_v54 }
0x170a   :  { %v4452_v42 = vpop.xlane.xlu0 %4451 }
0x170b   :  { %v4455_v43 = vmul.f32 0.0078125, %v4452_v42 }
0x170d   :  { %v4457_v45 = vadd.f32 1e-05, %v4455_v43 }
0x170e   :  { %v4454_v46 = vpop.xlane.xlu1 %4453 }
0x170f   :  { %5579 = vrsqrt.f32 %v4457_v45  ;;  %v4456_v48 = vmul.f32 0.0078125, %v4454_v46 }
0x1711   :  { %v4458_v49 = vadd.f32 1e-05, %v4456_v48 }
0x1713   :  { %5581 = vrsqrt.f32 %v4458_v49 }
0x171c   :  { %v5580_v44 = vpop.eup %5579 }
0x171d   :  { %v4461_v15 = vmul.f32 %v5580_v44, %v4447_v13 }
0x171f   :  { %v4467_v59 = vmul.f32 %v4466_v10, %v4461_v15 }
0x1720   :  { %v5582_v60 = vpop.eup %5581 }
0x1721   :  { %v4462_v2 = vmul.f32 %v5582_v60, %v4448_v3  ;;  %v4473_v53 = vadd.f32 %v4472_v56, %v4467_v59 }
0x1723   :  { %v4468_v9 = vmul.f32 %v4466_v10, %v4462_v2  ;;  %4475 = vst [vmem:[#allocation2] sm:$0xff] %v4473_v53 }
0x1725   :  { %v4474_v47 = vadd.f32 %v4472_v56, %v4468_v9 }
0x1727   :  { %4476 = vst [vmem:[#allocation2 + $0x8] sm:$0xff] %v4474_v47 }
0x1728   :  { %5599 = shalt.err (!%p5596_p4)
}
0x1729   :  { %s5617_s25 = smov 128   ;;  %s5618_s26 = smov 8  }
0x172a   :  { %4488 = dma.vmem_to_hbm [thread:$0]  %s4483_s13, 256, %s6853_s16, [#allocation3], %s5617_s25, %s5617_s25, %s5618_s26  }
0x172b   :  { %5608 = dma.done.wait [#allocation3], 256  }
0x172c   :  { %5609 = vsyncadd [#allocation3], 4294967040 }
0x172d   :  { %4492 = vsyncpa [#allocation3], 1 }

</bundles_post_ra>
